<compile_context>
chip_gen: v5e
topology: v5e:2x2
jax: 0.10.0
libtpu: 0.0.40
codegen_flags: <defaults>
</compile_context>

<pallas_src>
import functools

import jax
import jax.numpy as jnp
from jax.experimental import pallas as pl
from jax.experimental.pallas import tpu as pltpu


# TODO(synk): the real ProtoAD backbone is a *pretrained* wide_resnet50_2
# (layer1/2/3 -> 256/512/1024 channels at strides /4,/8,/16).  Pretrained
# weights cannot be reproduced in-script, so a deterministic 3-stage
# strided-conv+ReLU stand-in with the same stride pyramid (/4,/8,/16) and
# lane-aligned channel widths (128/256/512) is used for the feature extractor;
# the embedding_concat (unfold/expand/cat/fold) semantics are exact.

VMEM_LIMIT = 32 * 1024 * 1024


def _round_up(n, m):
    return (n + m - 1) // m * m


def _pick_tm(rows8, tm_max=512, min_steps=4):
    """Largest row tile (multiple of 8, dividing rows8, <= tm_max) that still
    leaves >= min_steps grid steps for pipelining / 2-TensorCore sharding."""
    best = None
    t = 8
    while t <= min(tm_max, rows8):
        if rows8 % t == 0 and rows8 // t >= min_steps:
            best = t
        t += 8
    if best is None:                      # tiny problem: few (or one) steps
        best = min(tm_max, rows8)
        while rows8 % best:
            best -= 8
    return best


# ---------------------------------------------------------------------------
# Kernel 1: one backbone stage = im2col-patch matmul + bias + ReLU (MXU path).
# ---------------------------------------------------------------------------
def _matmul_bias_relu_kernel(x_ref, w_ref, b_ref, o_ref):
    y = jnp.dot(x_ref[...], w_ref[...], preferred_element_type=jnp.float32)
    y = jnp.maximum(y + b_ref[...], 0.0)
    o_ref[...] = y.astype(o_ref.dtype)


def conv_relu_pallas(x_nhwc, w, b, k, *, tm_max=512):
    """Non-overlapping kxk stride-k conv + ReLU as a row-tiled Pallas matmul.

    x_nhwc: (B, H, W, Cin), w: (Cout, Cin, k, k) [PyTorch OIHW], b: (Cout,).
    Returns (B, H//k, W//k, Cout) in bf16.
    """
    B, H, W, Cin = x_nhwc.shape
    Cout = w.shape[0]
    assert H % k == 0 and W % k == 0
    Ho, Wo = H // k, W // k
    rows, k0 = B * Ho * Wo, Cin * k * k

    # im2col for stride==kernel is a pure reshape/transpose, done once in bf16.
    # Patch feature order is (kh, kw, cin); weights are reordered to match.
    # TODO(synk): fold this regroup into the kernel via a BlockSpec over x to
    # save one XLA pass per stage (kept outside for lowering robustness).
    p = x_nhwc.astype(jnp.bfloat16).reshape(B, Ho, k, Wo, k, Cin)
    patches = p.transpose(0, 1, 3, 2, 4, 5).reshape(rows, k0)
    wmat = w.transpose(0, 2, 3, 1).reshape(Cout, k0).T.astype(jnp.bfloat16)

    # Pad K / Cout to lane multiples (a no-op for stages 2/3 whose widths are
    # already 128-aligned) and rows to a multiple of 8; tm divides rows exactly.
    k_p = _round_up(k0, 128)
    cout_p = _round_up(Cout, 128)
    rows_p = _round_up(rows, 8)
    tm = _pick_tm(rows_p, tm_max)
    if (rows_p, k_p) != (rows, k0):
        patches = jnp.pad(patches, ((0, rows_p - rows), (0, k_p - k0)))
    if (k_p, cout_p) != (k0, Cout):
        wmat = jnp.pad(wmat, ((0, k_p - k0), (0, cout_p - Cout)))
    bias = b.astype(jnp.float32)
    if cout_p != Cout:
        bias = jnp.pad(bias, (0, cout_p - Cout))
    bias = bias.reshape(1, cout_p)

    out = pl.pallas_call(
        _matmul_bias_relu_kernel,
        grid=(rows_p // tm,),
        in_specs=[
            pl.BlockSpec((tm, k_p), lambda i: (i, 0)),                 # pipelined row tile
            pl.BlockSpec((k_p, cout_p), lambda i: (0, 0),
                         pipeline_mode=pl.Buffered(1)),                # resident weights
            pl.BlockSpec((1, cout_p), lambda i: (0, 0),
                         pipeline_mode=pl.Buffered(1)),                # resident bias
        ],
        out_specs=pl.BlockSpec((tm, cout_p), lambda i: (i, 0)),
        out_shape=jax.ShapeDtypeStruct((rows_p, cout_p), jnp.bfloat16),
        compiler_params=pltpu.CompilerParams(
            dimension_semantics=("parallel",),
            vmem_limit_bytes=VMEM_LIMIT),
    )(patches, wmat, bias)

    if (rows_p, cout_p) != (rows, Cout):
        out = out[:rows, :Cout]
    return out.reshape(B, Ho, Wo, Cout)


# ---------------------------------------------------------------------------
# Kernel 2: fused embedding_concat(f_1, embedding_concat(f_2, f_3)).
# unfold/expand/cat/fold with kernel==stride is exactly: NN-upsample f2 (x2)
# and f3 (x4) to f1 resolution, concat channels in the order f1|f2|f3.
# The primary kernel writes the result channels-first with the spatial axis
# flattened (lane-dense stores at real sizes), so the PyTorch NCHW layout is
# reached with a free reshape instead of an XLA transpose pass.
# ---------------------------------------------------------------------------
def _embed_nchw_kernel(f1_ref, f2_ref, f3_ref, o_ref, *, c1, c2, c3):
    # blocks: f1 (th*W1, C1); f2 (1, th/2, W1/2, C2); f3 (1, th/4, W1/4, C3)
    # out:    (1, C1+C2+C3, th*W1)
    f1 = f1_ref[...].astype(jnp.float32)                      # (th*W1, C1)
    o_ref[0, 0:c1, :] = f1.T.astype(o_ref.dtype)
    f2 = f2_ref[0].astype(jnp.float32)                        # (th/2, W1/2, C2)
    f2 = jnp.repeat(jnp.repeat(f2, 2, axis=0), 2, axis=1)     # x2 NN upsample
    sp = f2.shape[0] * f2.shape[1]
    o_ref[0, c1:c1 + c2, :] = f2.reshape(sp, c2).T.astype(o_ref.dtype)
    f3 = f3_ref[0].astype(jnp.float32)                        # (th/4, W1/4, C3)
    f3 = jnp.repeat(jnp.repeat(f3, 4, axis=0), 4, axis=1)     # x4 NN upsample
    o_ref[0, c1 + c2:c1 + c2 + c3, :] = f3.reshape(sp, c3).T.astype(o_ref.dtype)


def _embed_nhwc_kernel(f1_ref, f2_ref, f3_ref, o_ref, *, c1, c2, c3):
    # fallback for spatial sizes where the channels-first path is not legal
    o_ref[0, :, :, 0:c1] = f1_ref[0]
    f2 = jnp.repeat(jnp.repeat(f2_ref[0].astype(jnp.float32), 2, axis=0), 2, axis=1)
    o_ref[0, :, :, c1:c1 + c2] = f2.astype(o_ref.dtype)
    f3 = jnp.repeat(jnp.repeat(f3_ref[0].astype(jnp.float32), 4, axis=0), 4, axis=1)
    o_ref[0, :, :, c1 + c2:c1 + c2 + c3] = f3.astype(o_ref.dtype)


def _pick_th(H1, W1, c1, c2, c3, *, budget=18 << 20):
    """Largest spatial row tile th (multiple of 4, dividing H1, lane-dense
    output i.e. th*W1 % 128 == 0 unless th == H1) whose working set fits a
    conservative VMEM budget (v7x has only 64 MiB per TensorCore)."""
    ctot = c1 + c2 + c3

    def working_set(th):
        sp = th * W1
        io = 2 * sp * (c1 + c2 // 4 + c3 // 16 + ctot) * 2     # double-buffered bf16 blocks
        scratch = sp * ctot * 4                                 # f32 upsample/transpose temps
        return io + scratch

    legal = [t for t in range(4, H1 + 1, 4)
             if H1 % t == 0 and (t == H1 or (t * W1) % 128 == 0)]
    if not legal:
        return H1
    fitting = [t for t in legal if working_set(t) <= budget]
    return max(fitting) if fitting else min(legal)


def embedding_concat_pallas(f1, f2, f3):
    """f1:(B,H1,W1,C1), f2:(B,H1/2,W1/2,C2), f3:(B,H1/4,W1/4,C3) (bf16, NHWC)
    -> embedding (B, C1+C2+C3, H1, W1) channels-first (bf16)."""
    B, H1, W1, C1 = f1.shape
    _, H2, W2, C2 = f2.shape
    _, H3, W3, C3 = f3.shape
    Ctot = C1 + C2 + C3
    assert H1 == 2 * H2 == 4 * H3 and W1 == 2 * W2 == 4 * W3
    dt = f1.dtype

    if W1 % 8 == 0 and H1 % 4 == 0:
        th = _pick_th(H1, W1, C1, C2, C3)
        nh = H1 // th
        f1_flat = f1.reshape(B * H1 * W1, C1)                  # free reshape
        kernel = functools.partial(_embed_nchw_kernel, c1=C1, c2=C2, c3=C3)
        out = pl.pallas_call(
            kernel,
            grid=(B, nh),
            in_specs=[
                pl.BlockSpec((th * W1, C1), lambda b, h: (b * nh + h, 0)),
                pl.BlockSpec((1, th // 2, W2, C2), lambda b, h: (b, h, 0, 0)),
                pl.BlockSpec((1, th // 4, W3, C3), lambda b, h: (b, h, 0, 0)),
            ],
            out_specs=pl.BlockSpec((1, Ctot, th * W1), lambda b, h: (b, 0, h)),
            out_shape=jax.ShapeDtypeStruct((B, Ctot, H1 * W1), dt),
            compiler_params=pltpu.CompilerParams(
                dimension_semantics=("parallel", "parallel"),
                vmem_limit_bytes=VMEM_LIMIT),
        )(f1_flat, f2, f3)
        return out.reshape(B, Ctot, H1, W1)                    # free reshape

    # Fallback (odd spatial sizes): NHWC kernel + XLA transpose to NCHW.
    legal = [t for t in range(4, H1 + 1, 4) if H1 % t == 0] or [H1]
    fitting = [t for t in legal
               if 2 * t * W1 * (C1 + C2 // 4 + C3 // 16 + Ctot) * 2 <= (16 << 20)]
    th = max(fitting) if fitting else min(legal)
    kernel = functools.partial(_embed_nhwc_kernel, c1=C1, c2=C2, c3=C3)
    out = pl.pallas_call(
        kernel,
        grid=(B, H1 // th),
        in_specs=[
            pl.BlockSpec((1, th, W1, C1), lambda b, h: (b, h, 0, 0)),
            pl.BlockSpec((1, th // 2, W2, C2), lambda b, h: (b, h, 0, 0)),
            pl.BlockSpec((1, th // 4, W3, C3), lambda b, h: (b, h, 0, 0)),
        ],
        out_specs=pl.BlockSpec((1, th, W1, Ctot), lambda b, h: (b, h, 0, 0)),
        out_shape=jax.ShapeDtypeStruct((B, H1, W1, Ctot), dt),
        compiler_params=pltpu.CompilerParams(
            dimension_semantics=("parallel", "parallel"),
            vmem_limit_bytes=VMEM_LIMIT),
    )(f1, f2, f3)
    return jnp.transpose(out, (0, 3, 1, 2))


# ---------------------------------------------------------------------------
# Parameters (deterministic) and end-to-end forward
# ---------------------------------------------------------------------------
def init_params(key, c_in=3, c1=128, c2=256, c3=512):
    ks = jax.random.split(key, 6)

    def w(k, cout, cin, ksz):
        fan_in = cin * ksz * ksz
        return jax.random.normal(k, (cout, cin, ksz, ksz), jnp.float32) / jnp.sqrt(fan_in)

    return {
        "w1": w(ks[0], c1, c_in, 4), "b1": 0.01 * jax.random.normal(ks[1], (c1,), jnp.float32),
        "w2": w(ks[2], c2, c1, 2),   "b2": 0.01 * jax.random.normal(ks[3], (c2,), jnp.float32),
        "w3": w(ks[4], c3, c2, 2),   "b3": 0.01 * jax.random.normal(ks[5], (c3,), jnp.float32),
    }


def protoad_forward(x_nchw, params):
    """ProtoAD.forward: x (B, 3, H, W) NCHW -> embedding (B, C1+C2+C3, H/4, W/4) NCHW."""
    x = jnp.transpose(x_nchw, (0, 2, 3, 1))                    # NHWC (small tensor)
    f1 = conv_relu_pallas(x,  params["w1"], params["b1"], 4)   # (B, H/4,  W/4,  C1) bf16
    f2 = conv_relu_pallas(f1, params["w2"], params["b2"], 2)   # (B, H/8,  W/8,  C2) bf16
    f3 = conv_relu_pallas(f2, params["w3"], params["b3"], 2)   # (B, H/16, W/16, C3) bf16
    return embedding_concat_pallas(f1, f2, f3)                 # (B, Ctot, H/4, W/4) bf16


def _reference_forward(x_nchw, params):
    """Pure-JAX reference with the PyTorch embedding_concat semantics; feature
    maps are rounded to bf16 after each stage to mirror the kernels' bf16
    intermediates (accumulation stays f32)."""
    def conv(x, w, b, k):
        xb = x.astype(jnp.bfloat16).astype(jnp.float32)
        wb = w.astype(jnp.bfloat16).astype(jnp.float32)
        y = jax.lax.conv_general_dilated(
            xb, wb, window_strides=(k, k), padding="VALID",
            dimension_numbers=("NCHW", "OIHW", "NCHW"),
            precision=jax.lax.Precision.HIGHEST)
        y = jnp.maximum(y + b[None, :, None, None], 0.0)
        return y.astype(jnp.bfloat16).astype(jnp.float32)

    f1 = conv(x_nchw, params["w1"], params["b1"], 4)
    f2 = conv(f1, params["w2"], params["b2"], 2)
    f3 = conv(f2, params["w3"], params["b3"], 2)

    def up(f, s):   # exact effect of unfold/expand/cat/fold with kernel==stride
        return jnp.repeat(jnp.repeat(f, s, axis=2), s, axis=3)

    emb = jnp.concatenate([f2, up(f3, 2)], axis=1)
    emb = jnp.concatenate([f1, up(emb, 2)], axis=1)
    return emb


if __name__ == "__main__":
    key = jax.random.PRNGKey(0)
    kx, kp = jax.random.split(key)
    x = jax.random.normal(kx, (2, 3, 32, 32), jnp.float32)      # NCHW, like PyTorch
    params = init_params(kp)

    out = jax.block_until_ready(jax.jit(protoad_forward)(x, params))
    ref = _reference_forward(x, params)

    assert out.shape == (2, 128 + 256 + 512, 8, 8), out.shape
    out_f32 = out.astype(jnp.float32)
    max_err = float(jnp.max(jnp.abs(out_f32 - ref)))
    assert jnp.allclose(out_f32, ref, atol=3e-2, rtol=3e-2), max_err
    print("KERNEL_OK")
</pallas_src>

<mosaic_0001>
module attributes {stable_mosaic.version = 11 : i64} {
  func.func @_matmul_bias_relu_kernel(%arg0: i32, %arg1: memref<32x128xbf16, #tpu.memory_space<vmem>>, %arg2: memref<128x128xbf16, #tpu.memory_space<vmem>>, %arg3: memref<1x128xf32, #tpu.memory_space<vmem>>, %arg4: memref<32x128xbf16, #tpu.memory_space<vmem>>) attributes {dimension_semantics = [#tpu.dimension_semantics<parallel>], iteration_bounds = array<i64: 4>, scalar_prefetch = 0 : i64, scratch_operands = 0 : i64, tpu.core_type = #tpu.core_type<tc>, window_params = [{transform_indices = @transform_0, window_bounds = array<i64: 32, 128>}, {pipeline_mode = #tpu.pipeline_mode<synchronous>, transform_indices = @transform_1, window_bounds = array<i64: 128, 128>}, {pipeline_mode = #tpu.pipeline_mode<synchronous>, transform_indices = @transform_2, window_bounds = array<i64: 1, 128>}, {transform_indices = @transform_3, window_bounds = array<i64: 32, 128>}]} {
    %c0 = arith.constant 0 : index
    %c0_0 = arith.constant 0 : index
    %0 = vector.load %arg1[%c0, %c0_0] : memref<32x128xbf16, #tpu.memory_space<vmem>>, vector<32x128xbf16>
    %c0_1 = arith.constant 0 : index
    %c0_2 = arith.constant 0 : index
    %1 = vector.load %arg2[%c0_1, %c0_2] : memref<128x128xbf16, #tpu.memory_space<vmem>>, vector<128x128xbf16>
    %cst = arith.constant dense<0.000000e+00> : vector<32x128xf32>
    %2 = tpu.matmul %0, %1, %cst {dimension_numbers = #tpu.dot_dimension_numbers<[1], [0], [0], [1], [0, 0, 1, 1], [], []>} : vector<32x128xbf16>, vector<128x128xbf16>, vector<32x128xf32> -> vector<32x128xf32>
    %c0_3 = arith.constant 0 : index
    %c0_4 = arith.constant 0 : index
    %3 = vector.load %arg3[%c0_3, %c0_4] : memref<1x128xf32, #tpu.memory_space<vmem>>, vector<1x128xf32>
    %4 = vector.broadcast %3 : vector<1x128xf32> to vector<32x128xf32>
    %5 = arith.addf %2, %4 : vector<32x128xf32>
    %cst_5 = arith.constant 0.000000e+00 : f32
    %6 = vector.broadcast %cst_5 : f32 to vector<32x128xf32>
    %7 = arith.maximumf %5, %6 : vector<32x128xf32>
    %8 = arith.truncf %7 : vector<32x128xf32> to vector<32x128xbf16>
    %c0_6 = arith.constant 0 : index
    %c0_7 = arith.constant 0 : index
    %9 = vector.load %arg4[%c0_6, %c0_7] : memref<32x128xbf16, #tpu.memory_space<vmem>>, vector<32x128xbf16>
    tpu.vector_store %arg4[%c0_6, %c0_7], %8 {strides = array<i32>} : memref<32x128xbf16, #tpu.memory_space<vmem>>, vector<32x128xbf16>,
    return
  }
  func.func @transform_0(%arg0: i32) -> (i32, i32) {
    %c0_i32 = arith.constant 0 : i32
    %c0_i32_0 = arith.constant 0 : i32
    return %arg0, %c0_i32 : i32, i32
  }
  func.func @transform_1(%arg0: i32) -> (i32, i32) {
    %c0_i32 = arith.constant 0 : i32
    %c0_i32_0 = arith.constant 0 : i32
    %c0_i32_1 = arith.constant 0 : i32
    return %c0_i32, %c0_i32_0 : i32, i32
  }
  func.func @transform_2(%arg0: i32) -> (i32, i32) {
    %c0_i32 = arith.constant 0 : i32
    %c0_i32_0 = arith.constant 0 : i32
    %c0_i32_1 = arith.constant 0 : i32
    return %c0_i32, %c0_i32_0 : i32, i32
  }
  func.func @transform_3(%arg0: i32) -> (i32, i32) {
    %c0_i32 = arith.constant 0 : i32
    %c0_i32_0 = arith.constant 0 : i32
    return %arg0, %c0_i32 : i32, i32
  }
}

module attributes {stable_mosaic.version = 11 : i64} {
  func.func @_matmul_bias_relu_kernel(%arg0: i32, %arg1: memref<8x512xbf16, #tpu.memory_space<vmem>>, %arg2: memref<512x256xbf16, #tpu.memory_space<vmem>>, %arg3: memref<1x256xf32, #tpu.memory_space<vmem>>, %arg4: memref<8x256xbf16, #tpu.memory_space<vmem>>) attributes {dimension_semantics = [#tpu.dimension_semantics<parallel>], iteration_bounds = array<i64: 4>, scalar_prefetch = 0 : i64, scratch_operands = 0 : i64, tpu.core_type = #tpu.core_type<tc>, window_params = [{transform_indices = @transform_0, window_bounds = array<i64: 8, 512>}, {pipeline_mode = #tpu.pipeline_mode<synchronous>, transform_indices = @transform_1, window_bounds = array<i64: 512, 256>}, {pipeline_mode = #tpu.pipeline_mode<synchronous>, transform_indices = @transform_2, window_bounds = array<i64: 1, 256>}, {transform_indices = @transform_3, window_bounds = array<i64: 8, 256>}]} {
    %c0 = arith.constant 0 : index
    %c0_0 = arith.constant 0 : index
    %0 = vector.load %arg1[%c0, %c0_0] : memref<8x512xbf16, #tpu.memory_space<vmem>>, vector<8x512xbf16>
    %c0_1 = arith.constant 0 : index
    %c0_2 = arith.constant 0 : index
    %1 = vector.load %arg2[%c0_1, %c0_2] : memref<512x256xbf16, #tpu.memory_space<vmem>>, vector<512x256xbf16>
    %cst = arith.constant dense<0.000000e+00> : vector<8x256xf32>
    %2 = tpu.matmul %0, %1, %cst {dimension_numbers = #tpu.dot_dimension_numbers<[1], [0], [0], [1], [0, 0, 1, 1], [], []>} : vector<8x512xbf16>, vector<512x256xbf16>, vector<8x256xf32> -> vector<8x256xf32>
    %c0_3 = arith.constant 0 : index
    %c0_4 = arith.constant 0 : index
    %3 = vector.load %arg3[%c0_3, %c0_4] : memref<1x256xf32, #tpu.memory_space<vmem>>, vector<1x256xf32>
    %4 = vector.broadcast %3 : vector<1x256xf32> to vector<8x256xf32>
    %5 = arith.addf %2, %4 : vector<8x256xf32>
    %cst_5 = arith.constant 0.000000e+00 : f32
    %6 = vector.broadcast %cst_5 : f32 to vector<8x256xf32>
    %7 = arith.maximumf %5, %6 : vector<8x256xf32>
    %8 = arith.truncf %7 : vector<8x256xf32> to vector<8x256xbf16>
    %c0_6 = arith.constant 0 : index
    %c0_7 = arith.constant 0 : index
    %9 = vector.load %arg4[%c0_6, %c0_7] : memref<8x256xbf16, #tpu.memory_space<vmem>>, vector<8x256xbf16>
    tpu.vector_store %arg4[%c0_6, %c0_7], %8 {strides = array<i32>} : memref<8x256xbf16, #tpu.memory_space<vmem>>, vector<8x256xbf16>,
    return
  }
  func.func @transform_0(%arg0: i32) -> (i32, i32) {
    %c0_i32 = arith.constant 0 : i32
    %c0_i32_0 = arith.constant 0 : i32
    return %arg0, %c0_i32 : i32, i32
  }
  func.func @transform_1(%arg0: i32) -> (i32, i32) {
    %c0_i32 = arith.constant 0 : i32
    %c0_i32_0 = arith.constant 0 : i32
    %c0_i32_1 = arith.constant 0 : i32
    return %c0_i32, %c0_i32_0 : i32, i32
  }
  func.func @transform_2(%arg0: i32) -> (i32, i32) {
    %c0_i32 = arith.constant 0 : i32
    %c0_i32_0 = arith.constant 0 : i32
    %c0_i32_1 = arith.constant 0 : i32
    return %c0_i32, %c0_i32_0 : i32, i32
  }
  func.func @transform_3(%arg0: i32) -> (i32, i32) {
    %c0_i32 = arith.constant 0 : i32
    %c0_i32_0 = arith.constant 0 : i32
    return %arg0, %c0_i32 : i32, i32
  }
}

module attributes {stable_mosaic.version = 11 : i64} {
  func.func @_matmul_bias_relu_kernel(%arg0: i32, %arg1: memref<8x1024xbf16, #tpu.memory_space<vmem>>, %arg2: memref<1024x512xbf16, #tpu.memory_space<vmem>>, %arg3: memref<1x512xf32, #tpu.memory_space<vmem>>, %arg4: memref<8x512xbf16, #tpu.memory_space<vmem>>) attributes {dimension_semantics = [#tpu.dimension_semantics<parallel>], iteration_bounds = array<i64: 1>, scalar_prefetch = 0 : i64, scratch_operands = 0 : i64, tpu.core_type = #tpu.core_type<tc>, window_params = [{transform_indices = @transform_0, window_bounds = array<i64: 8, 1024>}, {pipeline_mode = #tpu.pipeline_mode<synchronous>, transform_indices = @transform_1, window_bounds = array<i64: 1024, 512>}, {pipeline_mode = #tpu.pipeline_mode<synchronous>, transform_indices = @transform_2, window_bounds = array<i64: 1, 512>}, {transform_indices = @transform_3, window_bounds = array<i64: 8, 512>}]} {
    %c0 = arith.constant 0 : index
    %c0_0 = arith.constant 0 : index
    %0 = vector.load %arg1[%c0, %c0_0] : memref<8x1024xbf16, #tpu.memory_space<vmem>>, vector<8x1024xbf16>
    %c0_1 = arith.constant 0 : index
    %c0_2 = arith.constant 0 : index
    %1 = vector.load %arg2[%c0_1, %c0_2] : memref<1024x512xbf16, #tpu.memory_space<vmem>>, vector<1024x512xbf16>
    %cst = arith.constant dense<0.000000e+00> : vector<8x512xf32>
    %2 = tpu.matmul %0, %1, %cst {dimension_numbers = #tpu.dot_dimension_numbers<[1], [0], [0], [1], [0, 0, 1, 1], [], []>} : vector<8x1024xbf16>, vector<1024x512xbf16>, vector<8x512xf32> -> vector<8x512xf32>
    %c0_3 = arith.constant 0 : index
    %c0_4 = arith.constant 0 : index
    %3 = vector.load %arg3[%c0_3, %c0_4] : memref<1x512xf32, #tpu.memory_space<vmem>>, vector<1x512xf32>
    %4 = vector.broadcast %3 : vector<1x512xf32> to vector<8x512xf32>
    %5 = arith.addf %2, %4 : vector<8x512xf32>
    %cst_5 = arith.constant 0.000000e+00 : f32
    %6 = vector.broadcast %cst_5 : f32 to vector<8x512xf32>
    %7 = arith.maximumf %5, %6 : vector<8x512xf32>
    %8 = arith.truncf %7 : vector<8x512xf32> to vector<8x512xbf16>
    %c0_6 = arith.constant 0 : index
    %c0_7 = arith.constant 0 : index
    %9 = vector.load %arg4[%c0_6, %c0_7] : memref<8x512xbf16, #tpu.memory_space<vmem>>, vector<8x512xbf16>
    tpu.vector_store %arg4[%c0_6, %c0_7], %8 {strides = array<i32>} : memref<8x512xbf16, #tpu.memory_space<vmem>>, vector<8x512xbf16>,
    return
  }
  func.func @transform_0(%arg0: i32) -> (i32, i32) {
    %c0_i32 = arith.constant 0 : i32
    %c0_i32_0 = arith.constant 0 : i32
    return %arg0, %c0_i32 : i32, i32
  }
  func.func @transform_1(%arg0: i32) -> (i32, i32) {
    %c0_i32 = arith.constant 0 : i32
    %c0_i32_0 = arith.constant 0 : i32
    %c0_i32_1 = arith.constant 0 : i32
    return %c0_i32, %c0_i32_0 : i32, i32
  }
  func.func @transform_2(%arg0: i32) -> (i32, i32) {
    %c0_i32 = arith.constant 0 : i32
    %c0_i32_0 = arith.constant 0 : i32
    %c0_i32_1 = arith.constant 0 : i32
    return %c0_i32, %c0_i32_0 : i32, i32
  }
  func.func @transform_3(%arg0: i32) -> (i32, i32) {
    %c0_i32 = arith.constant 0 : i32
    %c0_i32_0 = arith.constant 0 : i32
    return %arg0, %c0_i32 : i32, i32
  }
}

module attributes {stable_mosaic.version = 11 : i64} {
  func.func @_embed_nchw_kernel(%arg0: i32, %arg1: i32, %arg2: memref<64x128xbf16, #tpu.memory_space<vmem>>, %arg3: memref<1x4x4x256xbf16, #tpu.memory_space<vmem>>, %arg4: memref<1x2x2x512xbf16, #tpu.memory_space<vmem>>, %arg5: memref<1x896x64xbf16, #tpu.memory_space<vmem>>) attributes {dimension_semantics = [#tpu.dimension_semantics<parallel>, #tpu.dimension_semantics<parallel>], iteration_bounds = array<i64: 2, 1>, scalar_prefetch = 0 : i64, scratch_operands = 0 : i64, tpu.core_type = #tpu.core_type<tc>, window_params = [{transform_indices = @transform_0, window_bounds = array<i64: 64, 128>}, {transform_indices = @transform_1, window_bounds = array<i64: 1, 4, 4, 256>}, {transform_indices = @transform_2, window_bounds = array<i64: 1, 2, 2, 512>}, {transform_indices = @transform_3, window_bounds = array<i64: 1, 896, 64>}]} {
    %c0 = arith.constant 0 : index
    %c0_0 = arith.constant 0 : index
    %0 = vector.load %arg2[%c0, %c0_0] : memref<64x128xbf16, #tpu.memory_space<vmem>>, vector<64x128xbf16>
    %1 = arith.extf %0 : vector<64x128xbf16> to vector<64x128xf32>
    %2 = tpu.transpose %1, [1, 0] : vector<64x128xf32> -> vector<128x64xf32>
    %3 = arith.truncf %2 : vector<128x64xf32> to vector<128x64xbf16>
    %c0_1 = arith.constant 0 : index
    %c0_2 = arith.constant 0 : index
    %c0_3 = arith.constant 0 : index
    %4 = vector.load %arg5[%c0_1, %c0_2, %c0_3] : memref<1x896x64xbf16, #tpu.memory_space<vmem>>, vector<1x128x64xbf16>
    %5 = vector.shape_cast %4 : vector<1x128x64xbf16> to vector<128x64xbf16>
    %6 = vector.shape_cast %3 : vector<128x64xbf16> to vector<1x128x64xbf16>
    tpu.vector_store %arg5[%c0_1, %c0_2, %c0_3], %6 {strides = array<i32>} : memref<1x896x64xbf16, #tpu.memory_space<vmem>>, vector<1x128x64xbf16>,
    %c0_4 = arith.constant 0 : index
    %c0_5 = arith.constant 0 : index
    %c0_6 = arith.constant 0 : index
    %c0_7 = arith.constant 0 : index
    %7 = vector.load %arg3[%c0_4, %c0_5, %c0_6, %c0_7] : memref<1x4x4x256xbf16, #tpu.memory_space<vmem>>, vector<1x4x4x256xbf16>
    %8 = vector.shape_cast %7 : vector<1x4x4x256xbf16> to vector<4x4x256xbf16>
    %9 = arith.extf %8 : vector<4x4x256xbf16> to vector<4x4x256xf32>
    %10 = vector.shape_cast %9 : vector<4x4x256xf32> to vector<4x1x4x256xf32>
    %11 = vector.broadcast %10 : vector<4x1x4x256xf32> to vector<4x2x4x256xf32>
    %12 = vector.shape_cast %11 : vector<4x2x4x256xf32> to vector<8x4x256xf32>
    %13 = vector.shape_cast %12 : vector<8x4x256xf32> to vector<8x4x1x256xf32>
    %14 = vector.broadcast %13 : vector<8x4x1x256xf32> to vector<8x4x2x256xf32>
    %15 = vector.shape_cast %14 : vector<8x4x2x256xf32> to vector<8x8x256xf32>
    %16 = vector.shape_cast %15 : vector<8x8x256xf32> to vector<64x256xf32>
    %17 = tpu.transpose %16, [1, 0] : vector<64x256xf32> -> vector<256x64xf32>
    %18 = arith.truncf %17 : vector<256x64xf32> to vector<256x64xbf16>
    %c0_8 = arith.constant 0 : index
    %c128 = arith.constant 128 : index
    %c0_9 = arith.constant 0 : index
    %19 = vector.load %arg5[%c0_8, %c128, %c0_9] : memref<1x896x64xbf16, #tpu.memory_space<vmem>>, vector<1x256x64xbf16>
    %20 = vector.shape_cast %19 : vector<1x256x64xbf16> to vector<256x64xbf16>
    %21 = vector.shape_cast %18 : vector<256x64xbf16> to vector<1x256x64xbf16>
    tpu.vector_store %arg5[%c0_8, %c128, %c0_9], %21 {strides = array<i32>} : memref<1x896x64xbf16, #tpu.memory_space<vmem>>, vector<1x256x64xbf16>,
    %c0_10 = arith.constant 0 : index
    %c0_11 = arith.constant 0 : index
    %c0_12 = arith.constant 0 : index
    %c0_13 = arith.constant 0 : index
    %22 = vector.load %arg4[%c0_10, %c0_11, %c0_12, %c0_13] : memref<1x2x2x512xbf16, #tpu.memory_space<vmem>>, vector<1x2x2x512xbf16>
    %23 = vector.shape_cast %22 : vector<1x2x2x512xbf16> to vector<2x2x512xbf16>
    %24 = arith.extf %23 : vector<2x2x512xbf16> to vector<2x2x512xf32>
    %25 = vector.shape_cast %24 : vector<2x2x512xf32> to vector<2x1x2x512xf32>
    %26 = vector.broadcast %25 : vector<2x1x2x512xf32> to vector<2x4x2x512xf32>
    %27 = vector.shape_cast %26 : vector<2x4x2x512xf32> to vector<8x2x512xf32>
    %28 = vector.shape_cast %27 : vector<8x2x512xf32> to vector<8x2x1x512xf32>
    %29 = vector.broadcast %28 : vector<8x2x1x512xf32> to vector<8x2x4x512xf32>
    %30 = vector.shape_cast %29 : vector<8x2x4x512xf32> to vector<8x8x512xf32>
    %31 = vector.shape_cast %30 : vector<8x8x512xf32> to vector<64x512xf32>
    %32 = tpu.transpose %31, [1, 0] : vector<64x512xf32> -> vector<512x64xf32>
    %33 = arith.truncf %32 : vector<512x64xf32> to vector<512x64xbf16>
    %c0_14 = arith.constant 0 : index
    %c384 = arith.constant 384 : index
    %c0_15 = arith.constant 0 : index
    %34 = vector.load %arg5[%c0_14, %c384, %c0_15] : memref<1x896x64xbf16, #tpu.memory_space<vmem>>, vector<1x512x64xbf16>
    %35 = vector.shape_cast %34 : vector<1x512x64xbf16> to vector<512x64xbf16>
    %36 = vector.shape_cast %33 : vector<512x64xbf16> to vector<1x512x64xbf16>
    tpu.vector_store %arg5[%c0_14, %c384, %c0_15], %36 {strides = array<i32>} : memref<1x896x64xbf16, #tpu.memory_space<vmem>>, vector<1x512x64xbf16>,
    return
  }
  func.func @transform_0(%arg0: i32, %arg1: i32) -> (i32, i32) {
    %c1_i32 = arith.constant 1 : i32
    %0 = arith.muli %arg0, %c1_i32 : i32
    %1 = arith.addi %0, %arg1 : i32
    %c0_i32 = arith.constant 0 : i32
    %c0_i32_0 = arith.constant 0 : i32
    return %1, %c0_i32 : i32, i32
  }
  func.func @transform_1(%arg0: i32, %arg1: i32) -> (i32, i32, i32, i32) {
    %c0_i32 = arith.constant 0 : i32
    %c0_i32_0 = arith.constant 0 : i32
    %c0_i32_1 = arith.constant 0 : i32
    return %arg0, %arg1, %c0_i32, %c0_i32_0 : i32, i32, i32, i32
  }
  func.func @transform_2(%arg0: i32, %arg1: i32) -> (i32, i32, i32, i32) {
    %c0_i32 = arith.constant 0 : i32
    %c0_i32_0 = arith.constant 0 : i32
    %c0_i32_1 = arith.constant 0 : i32
    return %arg0, %arg1, %c0_i32, %c0_i32_0 : i32, i32, i32, i32
  }
  func.func @transform_3(%arg0: i32, %arg1: i32) -> (i32, i32, i32) {
    %c0_i32 = arith.constant 0 : i32
    %c0_i32_0 = arith.constant 0 : i32
    return %arg0, %c0_i32, %arg1 : i32, i32, i32
  }
}

</mosaic_0001>

<bundles_post_ra>
// kernel: protoad_forward.4
= control target key start
LH: loop header
LB: loop body
LE: loop exit
PB: predicated region body
PF: predicated region fallthrough
CT: control target
= control target key end

     0   :  { %s462_s12 = smov 0   ;;  %s509_s0 = inlined_call_operand.vmem [shape: bf16[128,128], index: 0, kind: input, shape index: {}]   ;;  %s510_s1 = inlined_call_operand.vmem [shape: bf16[128,128], index: 1, kind: input, shape index: {}]   ;;  %s511_s2 = inlined_call_operand.vmem [shape: f32[1,128], index: 2, kind: input, shape index: {}]   ;;  %s512_s3 = inlined_call_operand.vmem [shape: bf16[128,128], index: 3, kind: output, shape index: {}]  }
   0x1 LB: > { %s345_s13 = sadd.s32 4294967295, %s440_s12   ;;  %p349_p0 = scmp.ge.s32.totalorder %s440_s12, 1  ;;  %s440_s12 = sphi %s462_s12, %s13_s12  }
   0x2   : > { %p138_p1 = scmp.lt.s32.totalorder %s440_s12, 5 }
   0x4   : > { %p139_p2 = pnand %p349_p0, %p138_p1 }
   0x5   : > { %s350_s22 = sshll.u32 (!%p139_p2), %s345_s13, 2 }
   0x6   : > { %142 = sbr.rel (%p139_p2) target bundleno = 185 (0xb9), region = 32  ;;  %p163_p3 = scmp.lt.s32.totalorder (!%p139_p2), %s350_s22, 15 }
   0xb   : > { %v405_v0 = vld [vmem:[%s510_s1 + $0x38] sm:$0xff]  ;;  %v404_v1 = vld [vmem:[%s510_s1 + $0x30] sm:$0xff]  ;;  %v403_v2 = vld [vmem:[%s510_s1 + $0x28] sm:$0xff]  ;;  %s514_s22 = smov (!%p163_p3, %s350_s22), 15 }
   0xc   : > { %258 = vmatpush.bf16.msra.mxu0 %v405_v0  ;;  %417 = vmatpush.bf16.msra.mxu1 %v405_v0  ;;  %v402_v3 = vld [vmem:[%s510_s1 + $0x20] sm:$0xff]  ;;  %v401_v4 = vld [vmem:[%s510_s1 + $0x18] sm:$0xff]  ;;  %v400_v5 = vld [vmem:[%s510_s1 + $0x10] sm:$0xff]  ;;  %s351_s29 = sshll.u32 %s514_s22, 2 }
   0xd   : > { %v399_v6 = vld [vmem:[%s510_s1 + $0x8] sm:$0xff]  ;;  %v398_v7 = vld [vmem:[%s510_s1] sm:$0xff]  ;;  %s166_s7 = scalar_lea.vmem %s509_s0, %s351_s29  ;;  %s172_s13 = scalar_lea.vmem %s512_s3, %s351_s29 }
   0xe   : > { %v396_v8 = vld [vmem:[%s166_s7] sm:$0xff]  ;;  %v397_v9 = vld [vmem:[%s166_s7 + $0x8] sm:$0xff] }
   0xf   : > { %v433_v12 = vld [vmem:[%s511_s2] ss:$0 sm:$0xff] }
  0x10   : > { %259 = vmatpush.bf16.msra.mxu0 %v404_v1  ;;  %418 = vmatpush.bf16.msra.mxu1 %v404_v1 }
  0x14   : > { %260 = vmatpush.bf16.msra.mxu0 %v403_v2  ;;  %419 = vmatpush.bf16.msra.mxu1 %v403_v2 }
  0x18   : > { %261 = vmatpush.bf16.msra.mxu0 %v402_v3  ;;  %420 = vmatpush.bf16.msra.mxu1 %v402_v3 }
  0x1c   : > { %262 = vmatpush.bf16.msra.mxu0 %v401_v4  ;;  %421 = vmatpush.bf16.msra.mxu1 %v401_v4 }
  0x20   : > { %263 = vmatpush.bf16.msra.mxu0 %v400_v5  ;;  %422 = vmatpush.bf16.msra.mxu1 %v400_v5 }
  0x24   : > { %264 = vmatpush.bf16.msra.mxu0 %v399_v6  ;;  %423 = vmatpush.bf16.msra.mxu1 %v399_v6 }
  0x28   : > { %265 = vmatpush.bf16.msra.mxu0 %v398_v7  ;;  %424 = vmatpush.bf16.msra.mxu1 %v398_v7 }
  0x2b   : > { %266 = vmatmul.bf16.vlgmr.msra.gmra.mxu0 %v396_v8  ;;  %271 = vmatmul.bf16.vlgmr.msra.gmra.mxu1 %v397_v9 }
  0xa8   : > { %v267_v10 = vpop.f32.mrf.mxu0  ;;  %v272_v11 = vpop.f32.mrf.mxu1 }
  0xa9   : > { %v268_v13 = vadd.f32 %v433_v12, %v267_v10  ;;  %v273_v14 = vadd.f32 %v433_v12, %v272_v11 }
  0xab   : > { %v277_v19 = vmax.f32 %v268_v13, 0.0  ;;  %v279_v20 = vmax.f32 %v273_v14, 0.0 }
  0xb0   : > { %v269_v15 = vpop.f32.mrf.mxu0  ;;  %v274_v16 = vpop.f32.mrf.mxu1 }
  0xb1   : > { %v270_v17 = vadd.f32 %v433_v12, %v269_v15  ;;  %v275_v18 = vadd.f32 %v433_v12, %v274_v16 }
  0xb3   : > { %v278_v21 = vmax.f32 %v270_v17, 0.0  ;;  %v280_v22 = vmax.f32 %v275_v18, 0.0 }
  0xb5   : > { %v409_v23 = vpack.c.bf16 %v278_v21, %v277_v19  ;;  %v414_v24 = vpack.c.bf16 %v280_v22, %v279_v20 }
  0xb7   : > { %410 = vst [vmem:[%s172_s13] sm:$0xff] %v409_v23  }
  0xb8   : > { %416 = vst [vmem:[%s172_s13 + $0x8] sm:$0xff] %v414_v24  }
  0xb9 PF: > { %s13_s12 = sadd.s32 1, %s440_s12  }
  0xba   : > { %p10_p4 = scmp.ge.s32.totalorder %s13_s12, 6  }
  0xbc   :  { %12 = sbr.rel (!%p10_p4) target bundleno = 1 (0x1), region = 62 }

// kernel: protoad_forward.5
= control target key start
LH: loop header
LB: loop body
LE: loop exit
PB: predicated region body
PF: predicated region fallthrough
CT: control target
= control target key end

     0   :  { %s1109_s12 = smov 0   ;;  %s1537_s0 = inlined_call_operand.vmem [shape: bf16[32,512], index: 0, kind: input, shape index: {}]   ;;  %s1538_s1 = inlined_call_operand.vmem [shape: bf16[512,256], index: 1, kind: input, shape index: {}]   ;;  %s1539_s2 = inlined_call_operand.vmem [shape: f32[1,256], index: 2, kind: input, shape index: {}]   ;;  %s1540_s3 = inlined_call_operand.vmem [shape: bf16[32,256], index: 3, kind: output, shape index: {}]  }
   0x1 LB: > { %s740_s13 = sadd.s32 4294967295, %s1087_s12   ;;  %p744_p0 = scmp.ge.s32.totalorder %s1087_s12, 1  ;;  %s1087_s12 = sphi %s1109_s12, %s13_s12  }
   0x2   : > { %p137_p1 = scmp.lt.s32.totalorder %s1087_s12, 5 }
   0x4   : > { %p138_p2 = pnand %p744_p0, %p137_p1 }
   0x5   : > { %p161_p3 = scmp.lt.s32.totalorder (!%p138_p2), %s740_s13, 3 }
   0x6   : > { %141 = sbr.rel (%p138_p2) target bundleno = 220 (0xdc), region = 32 }
   0xb   : > { %v807_v0 = vld [vmem:[%s1538_s1 + $0x70] sm:$0xf]  ;;  %v1024_v1 = vld [vmem:[%s1538_s1 + $0x74] sm:$0xf0]  ;;  %v799_v11 = vld [vmem:[%s1538_s1 + $0x60] sm:$0xf] }
   0xc   : > { %v871_v2 = vld [vmem:[%s1538_s1 + $0xf0] sm:$0xf]  ;;  %v808_v3 = vor.u32 %v1024_v1, %v807_v0  ;;  %v1040_v4 = vld [vmem:[%s1538_s1 + $0xf4] sm:$0xf0]  ;;  %v1022_v13 = vld [vmem:[%s1538_s1 + $0x64] sm:$0xf0] }
   0xd   : > { %v935_v5 = vld [vmem:[%s1538_s1 + $0x170] sm:$0xf]  ;;  %v1056_v6 = vld [vmem:[%s1538_s1 + $0x174] sm:$0xf0]  ;;  %v872_v7 = vor.u32 %v1040_v4, %v871_v2  ;;  %v863_v14 = vld [vmem:[%s1538_s1 + $0xe0] sm:$0xf]  ;;  %v800_v16 = vor.u32 %v1022_v13, %v799_v11 }
   0xe   : > { %v936_v8 = vor.u32 %v1056_v6, %v935_v5  ;;  %v999_v9 = vld [vmem:[%s1538_s1 + $0x1f0] sm:$0xf]  ;;  %v1072_v10 = vld [vmem:[%s1538_s1 + $0x1f4] sm:$0xf0]  ;;  %577 = vmatpush.bf16.msra.mxu0 %v808_v3  ;;  %v1038_v15 = vld [vmem:[%s1538_s1 + $0xe4] sm:$0xf0] }
   0xf   : > { %v1000_v12 = vor.u32 %v1072_v10, %v999_v9  ;;  %590 = vmatpush.bf16.msra.mxu1 %v872_v7  ;;  %v864_v17 = vor.u32 %v1038_v15, %v863_v14  ;;  %v927_v18 = vld [vmem:[%s1538_s1 + $0x160] sm:$0xf]  ;;  %v1054_v19 = vld [vmem:[%s1538_s1 + $0x164] sm:$0xf0]  ;;  %v791_v23 = vld [vmem:[%s1538_s1 + $0x50] sm:$0xf] }
  0x10   : > { %603 = vmatpush.bf16.msra.mxu2 %v936_v8  ;;  %v991_v20 = vld [vmem:[%s1538_s1 + $0x1e0] sm:$0xf]  ;;  %v928_v21 = vor.u32 %v1054_v19, %v927_v18  ;;  %v1070_v22 = vld [vmem:[%s1538_s1 + $0x1e4] sm:$0xf0]  ;;  %v1020_v24 = vld [vmem:[%s1538_s1 + $0x54] sm:$0xf0] }
  0x11   : > { %616 = vmatpush.bf16.msra.mxu3 %v1000_v12  ;;  %v992_v25 = vor.u32 %v1070_v22, %v991_v20  ;;  %v855_v26 = vld [vmem:[%s1538_s1 + $0xd0] sm:$0xf]  ;;  %v1036_v27 = vld [vmem:[%s1538_s1 + $0xd4] sm:$0xf0]  ;;  %v792_v29 = vor.u32 %v1020_v24, %v791_v23  ;;  %v783_v35 = vld [vmem:[%s1538_s1 + $0x40] sm:$0xf] }
  0x12   : > { %v919_v28 = vld [vmem:[%s1538_s1 + $0x150] sm:$0xf]  ;;  %578 = vmatpush.bf16.msra.mxu0 %v800_v16  ;;  %v1052_v30 = vld [vmem:[%s1538_s1 + $0x154] sm:$0xf0]  ;;  %v856_v33 = vor.u32 %v1036_v27, %v855_v26  ;;  %v1018_v36 = vld [vmem:[%s1538_s1 + $0x44] sm:$0xf0] }
  0x13   : > { %v983_v31 = vld [vmem:[%s1538_s1 + $0x1d0] sm:$0xf]  ;;  %v1068_v32 = vld [vmem:[%s1538_s1 + $0x1d4] sm:$0xf0]  ;;  %591 = vmatpush.bf16.msra.mxu1 %v864_v17  ;;  %v920_v34 = vor.u32 %v1052_v30, %v919_v28  ;;  %v847_v37 = vld [vmem:[%s1538_s1 + $0xc0] sm:$0xf]  ;;  %v784_v44 = vor.u32 %v1018_v36, %v783_v35 }
  0x14   : > { %604 = vmatpush.bf16.msra.mxu2 %v928_v21  ;;  %v984_v38 = vor.u32 %v1068_v32, %v983_v31  ;;  %v1034_v39 = vld [vmem:[%s1538_s1 + $0xc4] sm:$0xf0]  ;;  %v911_v40 = vld [vmem:[%s1538_s1 + $0x140] sm:$0xf]  ;;  %v775_v47 = vld [vmem:[%s1538_s1 + $0x30] sm:$0xf] }
  0x15   : > { %617 = vmatpush.bf16.msra.mxu3 %v992_v25  ;;  %v1050_v41 = vld [vmem:[%s1538_s1 + $0x144] sm:$0xf0]  ;;  %v975_v42 = vld [vmem:[%s1538_s1 + $0x1c0] sm:$0xf]  ;;  %v848_v45 = vor.u32 %v1034_v39, %v847_v37  ;;  %v1016_v48 = vld [vmem:[%s1538_s1 + $0x34] sm:$0xf0] }
  0x16   : > { %v1066_v43 = vld [vmem:[%s1538_s1 + $0x1c4] sm:$0xf0]  ;;  %579 = vmatpush.bf16.msra.mxu0 %v792_v29  ;;  %v912_v46 = vor.u32 %v1050_v41, %v911_v40  ;;  %v839_v49 = vld [vmem:[%s1538_s1 + $0xb0] sm:$0xf]  ;;  %v1032_v51 = vld [vmem:[%s1538_s1 + $0xb4] sm:$0xf0]  ;;  %v776_v56 = vor.u32 %v1016_v48, %v775_v47 }
  0x17   : > { %592 = vmatpush.bf16.msra.mxu1 %v856_v33  ;;  %v976_v50 = vor.u32 %v1066_v43, %v975_v42  ;;  %v903_v52 = vld [vmem:[%s1538_s1 + $0x130] sm:$0xf]  ;;  %v1048_v53 = vld [vmem:[%s1538_s1 + $0x134] sm:$0xf0]  ;;  %v840_v57 = vor.u32 %v1032_v51, %v839_v49  ;;  %v767_v59 = vld [vmem:[%s1538_s1 + $0x20] sm:$0xf] }
  0x18   : > { %605 = vmatpush.bf16.msra.mxu2 %v920_v34  ;;  %v967_v54 = vld [vmem:[%s1538_s1 + $0x1b0] sm:$0xf]  ;;  %v1064_v55 = vld [vmem:[%s1538_s1 + $0x1b4] sm:$0xf0]  ;;  %v904_v58 = vor.u32 %v1048_v53, %v903_v52  ;;  %v1014_v60 = vld [vmem:[%s1538_s1 + $0x24] sm:$0xf0] }
  0x19   : > { %618 = vmatpush.bf16.msra.mxu3 %v984_v38  ;;  %v831_v61 = vld [vmem:[%s1538_s1 + $0xa0] sm:$0xf]  ;;  %v968_v62 = vor.u32 %v1064_v55, %v967_v54  ;;  %v1030_v63 = vld [vmem:[%s1538_s1 + $0xa4] sm:$0xf0]  ;;  %v768_v4 = vor.u32 %v1014_v60, %v767_v59  ;;  %v759_v7 = vld [vmem:[%s1538_s1 + $0x10] sm:$0xf] }
  0x1a   : > { %580 = vmatpush.bf16.msra.mxu0 %v784_v44  ;;  %v895_v0 = vld [vmem:[%s1538_s1 + $0x120] sm:$0xf]  ;;  %v1046_v1 = vld [vmem:[%s1538_s1 + $0x124] sm:$0xf0]  ;;  %v832_v5 = vor.u32 %v1030_v63, %v831_v61  ;;  %v1012_v8 = vld [vmem:[%s1538_s1 + $0x14] sm:$0xf0] }
  0x1b   : > { %593 = vmatpush.bf16.msra.mxu1 %v848_v45  ;;  %v959_v2 = vld [vmem:[%s1538_s1 + $0x1a0] sm:$0xf]  ;;  %v1062_v3 = vld [vmem:[%s1538_s1 + $0x1a4] sm:$0xf0]  ;;  %v896_v6 = vor.u32 %v1046_v1, %v895_v0  ;;  %v823_v9 = vld [vmem:[%s1538_s1 + $0x90] sm:$0xf]  ;;  %v760_v16 = vor.u32 %v1012_v8, %v759_v7 }
  0x1c   : > { %606 = vmatpush.bf16.msra.mxu2 %v912_v46  ;;  %v960_v10 = vor.u32 %v1062_v3, %v959_v2  ;;  %v1028_v11 = vld [vmem:[%s1538_s1 + $0x94] sm:$0xf0]  ;;  %v887_v12 = vld [vmem:[%s1538_s1 + $0x110] sm:$0xf]  ;;  %v751_v17 = vld [vmem:[%s1538_s1] sm:$0xf] }
  0x1d   : > { %619 = vmatpush.bf16.msra.mxu3 %v976_v50  ;;  %v1044_v13 = vld [vmem:[%s1538_s1 + $0x114] sm:$0xf0]  ;;  %v951_v14 = vld [vmem:[%s1538_s1 + $0x190] sm:$0xf]  ;;  %v1010_v18 = vld [vmem:[%s1538_s1 + $0x4] sm:$0xf0]  ;;  %v824_v20 = vor.u32 %v1028_v11, %v823_v9 }
  0x1e   : > { %581 = vmatpush.bf16.msra.mxu0 %v776_v56  ;;  %v1060_v15 = vld [vmem:[%s1538_s1 + $0x194] sm:$0xf0]  ;;  %v815_v19 = vld [vmem:[%s1538_s1 + $0x80] sm:$0xf]  ;;  %v888_v21 = vor.u32 %v1044_v13, %v887_v12  ;;  %v1026_v22 = vld [vmem:[%s1538_s1 + $0x84] sm:$0xf0]  ;;  %v752_v31 = vor.u32 %v1010_v18, %v751_v17 }
  0x1f   : > { %594 = vmatpush.bf16.msra.mxu1 %v840_v57  ;;  %v879_v23 = vld [vmem:[%s1538_s1 + $0x100] sm:$0xf]  ;;  %v1042_v24 = vld [vmem:[%s1538_s1 + $0x104] sm:$0xf0]  ;;  %v952_v25 = vor.u32 %v1060_v15, %v951_v14  ;;  %v1023_v28 = vld [vmem:[%s1538_s1 + $0x74] sm:$0xf]  ;;  %v816_v35 = vor.u32 %v1026_v22, %v815_v19 }
  0x20   : > { %607 = vmatpush.bf16.msra.mxu2 %v904_v58  ;;  %v943_v26 = vld [vmem:[%s1538_s1 + $0x180] sm:$0xf]  ;;  %v1058_v27 = vld [vmem:[%s1538_s1 + $0x184] sm:$0xf0]  ;;  %v809_v29 = vld [vmem:[%s1538_s1 + $0x78] sm:$0xf0]  ;;  %v880_v36 = vor.u32 %v1042_v24, %v879_v23 }
  0x21   : > { %620 = vmatpush.bf16.msra.mxu3 %v968_v62  ;;  %v1039_v30 = vld [vmem:[%s1538_s1 + $0xf4] sm:$0xf]  ;;  %v873_v32 = vld [vmem:[%s1538_s1 + $0xf8] sm:$0xf0]  ;;  %s1542_s13 = smov (!%p161_p3, %s740_s13), 3  ;;  %v944_v39 = vor.u32 %v1058_v27, %v943_v26  ;;  %v812_v40 = vor.u32 %v1023_v28, %v809_v29 }
  0x22   : > { %582 = vmatpush.bf16.msra.mxu0 %v768_v4  ;;  %v1055_v33 = vld [vmem:[%s1538_s1 + $0x174] sm:$0xf]  ;;  %v937_v34 = vld [vmem:[%s1538_s1 + $0x178] sm:$0xf0]  ;;  %v1021_v41 = vld [vmem:[%s1538_s1 + $0x64] sm:$0xf]  ;;  %v876_v43 = vor.u32 %v1039_v30, %v873_v32 }
  0x23   : > { %595 = vmatpush.bf16.msra.mxu1 %v832_v5  ;;  %v1071_v37 = vld [vmem:[%s1538_s1 + $0x1f4] sm:$0xf]  ;;  %v1001_v38 = vld [vmem:[%s1538_s1 + $0x1f8] sm:$0xf0]  ;;  %v801_v42 = vld [vmem:[%s1538_s1 + $0x68] sm:$0xf0]  ;;  %v940_v44 = vor.u32 %v1055_v33, %v937_v34 }
  0x24   : > { %608 = vmatpush.bf16.msra.mxu2 %v896_v6  ;;  %v1037_v45 = vld [vmem:[%s1538_s1 + $0xe4] sm:$0xf]  ;;  %v865_v46 = vld [vmem:[%s1538_s1 + $0xe8] sm:$0xf0]  ;;  %s1007_s16 = sshll.u32 %s1542_s13, 4  ;;  %v1004_v47 = vor.u32 %v1071_v37, %v1001_v38  ;;  %v804_v51 = vor.u32 %v1021_v41, %v801_v42  ;;  %s1008_s26 = sshll.u32 %s1542_s13, 3 }
  0x25   : > { %621 = vmatpush.bf16.msra.mxu3 %v960_v10  ;;  %v1053_v48 = vld [vmem:[%s1538_s1 + $0x164] sm:$0xf]  ;;  %v929_v49 = vld [vmem:[%s1538_s1 + $0x168] sm:$0xf0]  ;;  %s165_s25 = scalar_lea.vmem %s1537_s0, %s1007_s16  ;;  %v868_v59 = vor.u32 %v1037_v45, %v865_v46  ;;  %v1019_v61 = vld [vmem:[%s1538_s1 + $0x54] sm:$0xf]  ;;  %s170_s29 = scalar_lea.vmem %s1540_s3, %s1008_s26 }
  0x26   : > { %583 = vmatpush.bf16.msra.mxu0 %v760_v16  ;;  %v1069_v50 = vld [vmem:[%s1538_s1 + $0x1e4] sm:$0xf]  ;;  %v993_v52 = vld [vmem:[%s1538_s1 + $0x1e8] sm:$0xf0]  ;;  %v932_v60 = vor.u32 %v1053_v48, %v929_v49  ;;  %v793_v62 = vld [vmem:[%s1538_s1 + $0x58] sm:$0xf0] }
  0x27   : > { %596 = vmatpush.bf16.msra.mxu1 %v824_v20  ;;  %v172_v53 = vld [vmem:[%s165_s25 + $0x8] sm:$0xff]  ;;  %v171_v54 = vld [vmem:[%s165_s25] sm:$0xff]  ;;  %v1035_v63 = vld [vmem:[%s1538_s1 + $0xd4] sm:$0xf]  ;;  %v996_v0 = vor.u32 %v1069_v50, %v993_v52  ;;  %v796_v10 = vor.u32 %v1019_v61, %v793_v62 }
  0x28   : > { %609 = vmatpush.bf16.msra.mxu2 %v888_v21  ;;  %v247_v55 = vunpack.c.l.b16 %v172_v53  ;;  %v248_v56 = vunpack.c.h.b16 %v172_v53  ;;  %v245_v57 = vunpack.c.l.b16 %v171_v54  ;;  %v246_v58 = vunpack.c.h.b16 %v171_v54  ;;  %v857_v2 = vld [vmem:[%s1538_s1 + $0xd8] sm:$0xf0]  ;;  %v1051_v3 = vld [vmem:[%s1538_s1 + $0x154] sm:$0xf]  ;;  %v1017_v13 = vld [vmem:[%s1538_s1 + $0x44] sm:$0xf] }
  0x29   : > { %622 = vmatpush.bf16.msra.mxu3 %v952_v25  ;;  %v921_v4 = vld [vmem:[%s1538_s1 + $0x158] sm:$0xf0]  ;;  %v1067_v7 = vld [vmem:[%s1538_s1 + $0x1d4] sm:$0xf]  ;;  %v860_v11 = vor.u32 %v1035_v63, %v857_v2  ;;  %v785_v14 = vld [vmem:[%s1538_s1 + $0x48] sm:$0xf0] }
  0x2a   : > { %584 = vmatpush.bf16.msra.mxu0 %v752_v31  ;;  %v1376_v1 = vpack.c.b16 %v247_v55, %v247_v55  ;;  %v1387_v5 = vpack.c.b16 %v245_v57, %v245_v57  ;;  %v1389_v6 = vpack.c.b16 %v248_v56, %v248_v56  ;;  %v985_v8 = vld [vmem:[%s1538_s1 + $0x1d8] sm:$0xf0]  ;;  %v1397_v9 = vpack.c.b16 %v246_v58, %v246_v58  ;;  %v1033_v15 = vld [vmem:[%s1538_s1 + $0xc4] sm:$0xf]  ;;  %v849_v17 = vld [vmem:[%s1538_s1 + $0xc8] sm:$0xf0] }
  0x2b   : > { %597 = vmatpush.bf16.msra.mxu1 %v816_v35  ;;  %v924_v12 = vor.u32 %v1051_v3, %v921_v4  ;;  %v988_v16 = vor.u32 %v1067_v7, %v985_v8  ;;  %v1049_v18 = vld [vmem:[%s1538_s1 + $0x144] sm:$0xf]  ;;  %v913_v19 = vld [vmem:[%s1538_s1 + $0x148] sm:$0xf0]  ;;  %v788_v22 = vor.u32 %v1017_v13, %v785_v14  ;;  %v852_v23 = vor.u32 %v1033_v15, %v849_v17  ;;  %v1015_v25 = vld [vmem:[%s1538_s1 + $0x34] sm:$0xf] }
  0x2c   : > { %610 = vmatpush.bf16.msra.mxu2 %v880_v36  ;;  %v1065_v20 = vld [vmem:[%s1538_s1 + $0x1c4] sm:$0xf]  ;;  %v977_v21 = vld [vmem:[%s1538_s1 + $0x1c8] sm:$0xf0]  ;;  %v916_v24 = vor.u32 %v1049_v18, %v913_v19  ;;  %v777_v26 = vld [vmem:[%s1538_s1 + $0x38] sm:$0xf0] }
  0x2d   : > { %623 = vmatpush.bf16.msra.mxu3 %v944_v39  ;;  %585 = vmatmul.bf16.vlgmr.msra.gmra.mxu0 %v1387_v5  ;;  %v1031_v27 = vld [vmem:[%s1538_s1 + $0xb4] sm:$0xf]  ;;  %v980_v28 = vor.u32 %v1065_v20, %v977_v21  ;;  %v841_v29 = vld [vmem:[%s1538_s1 + $0xb8] sm:$0xf0]  ;;  %v780_v34 = vor.u32 %v1015_v25, %v777_v26  ;;  %v1013_v37 = vld [vmem:[%s1538_s1 + $0x24] sm:$0xf] }
  0x2e   : > { %629 = vmatpush.bf16.msrb.mxu0 %v812_v40  ;;  %598 = vmatmul.bf16.vlgmr.msra.gmra.mxu1 %v1397_v9  ;;  %v1047_v30 = vld [vmem:[%s1538_s1 + $0x134] sm:$0xf]  ;;  %v905_v31 = vld [vmem:[%s1538_s1 + $0x138] sm:$0xf0]  ;;  %v844_v35 = vor.u32 %v1031_v27, %v841_v29  ;;  %v769_v38 = vld [vmem:[%s1538_s1 + $0x28] sm:$0xf0] }
  0x2f   : > { %642 = vmatpush.bf16.msrb.mxu1 %v876_v43  ;;  %611 = vmatmul.bf16.vlgmr.msra.gmra.mxu2 %v1376_v1  ;;  %v1063_v32 = vld [vmem:[%s1538_s1 + $0x1b4] sm:$0xf]  ;;  %v969_v33 = vld [vmem:[%s1538_s1 + $0x1b8] sm:$0xf0]  ;;  %v908_v36 = vor.u32 %v1047_v30, %v905_v31  ;;  %v1029_v39 = vld [vmem:[%s1538_s1 + $0xa4] sm:$0xf]  ;;  %v772_v46 = vor.u32 %v1013_v37, %v769_v38 }
  0x30   : > { %655 = vmatpush.bf16.msrb.mxu2 %v940_v44  ;;  %624 = vmatmul.bf16.vlgmr.msra.gmra.mxu3 %v1389_v6  ;;  %v972_v40 = vor.u32 %v1063_v32, %v969_v33  ;;  %v833_v41 = vld [vmem:[%s1538_s1 + $0xa8] sm:$0xf0]  ;;  %v1045_v42 = vld [vmem:[%s1538_s1 + $0x124] sm:$0xf]  ;;  %v1011_v49 = vld [vmem:[%s1538_s1 + $0x14] sm:$0xf] }
  0x31   : > { %668 = vmatpush.bf16.msrb.mxu3 %v1004_v47  ;;  %v897_v43 = vld [vmem:[%s1538_s1 + $0x128] sm:$0xf0]  ;;  %v1061_v44 = vld [vmem:[%s1538_s1 + $0x1a4] sm:$0xf]  ;;  %v836_v47 = vor.u32 %v1029_v39, %v833_v41  ;;  %v761_v50 = vld [vmem:[%s1538_s1 + $0x18] sm:$0xf0] }
  0x32   : > { %630 = vmatpush.bf16.msrb.mxu0 %v804_v51  ;;  %v961_v45 = vld [vmem:[%s1538_s1 + $0x1a8] sm:$0xf0]  ;;  %v900_v48 = vor.u32 %v1045_v42, %v897_v43  ;;  %v1027_v51 = vld [vmem:[%s1538_s1 + $0x94] sm:$0xf]  ;;  %v825_v53 = vld [vmem:[%s1538_s1 + $0x98] sm:$0xf0]  ;;  %v764_v58 = vor.u32 %v1011_v49, %v761_v50 }
  0x33   : > { %643 = vmatpush.bf16.msrb.mxu1 %v868_v59  ;;  %v964_v52 = vor.u32 %v1061_v44, %v961_v45  ;;  %v1043_v54 = vld [vmem:[%s1538_s1 + $0x114] sm:$0xf]  ;;  %v889_v55 = vld [vmem:[%s1538_s1 + $0x118] sm:$0xf0]  ;;  %v828_v59 = vor.u32 %v1027_v51, %v825_v53  ;;  %v1009_v61 = vld [vmem:[%s1538_s1 + $0x4] sm:$0xf] }
  0x34   : > { %656 = vmatpush.bf16.msrb.mxu2 %v932_v60  ;;  %v1059_v56 = vld [vmem:[%s1538_s1 + $0x194] sm:$0xf]  ;;  %v953_v57 = vld [vmem:[%s1538_s1 + $0x198] sm:$0xf0]  ;;  %v892_v60 = vor.u32 %v1043_v54, %v889_v55  ;;  %v753_v62 = vld [vmem:[%s1538_s1 + $0x8] sm:$0xf0] }
  0x35   : > { %669 = vmatpush.bf16.msrb.mxu3 %v996_v0  ;;  %v1025_v63 = vld [vmem:[%s1538_s1 + $0x84] sm:$0xf]  ;;  %v956_v0 = vor.u32 %v1059_v56, %v953_v57  ;;  %v817_v2 = vld [vmem:[%s1538_s1 + $0x88] sm:$0xf0]  ;;  %v237_v21 = vld [vmem:[%s1539_s2] sm:$0x3] }
  0x36   : > { %631 = vmatpush.bf16.msrb.mxu0 %v796_v10  ;;  %v1041_v3 = vld [vmem:[%s1538_s1 + $0x104] sm:$0xf]  ;;  %v881_v4 = vld [vmem:[%s1538_s1 + $0x108] sm:$0xf0]  ;;  %v756_v10 = vor.u32 %v1009_v61, %v753_v62 }
  0x37   : > { %644 = vmatpush.bf16.msrb.mxu1 %v860_v11  ;;  %v1057_v7 = vld [vmem:[%s1538_s1 + $0x184] sm:$0xf]  ;;  %v945_v8 = vld [vmem:[%s1538_s1 + $0x188] sm:$0xf0]  ;;  %v820_v11 = vor.u32 %v1025_v63, %v817_v2 }
  0x38   : > { %657 = vmatpush.bf16.msrb.mxu2 %v924_v12  ;;  %v884_v12 = vor.u32 %v1041_v3, %v881_v4  ;;  %v948_v13 = vor.u32 %v1057_v7, %v945_v8 }
  0x39   : > { %670 = vmatpush.bf16.msrb.mxu3 %v988_v16 }
  0x3a   : > { %632 = vmatpush.bf16.msrb.mxu0 %v788_v22 }
  0x3b   : > { %645 = vmatpush.bf16.msrb.mxu1 %v852_v23 }
  0x3c   : > { %658 = vmatpush.bf16.msrb.mxu2 %v916_v24 }
  0x3d   : > { %671 = vmatpush.bf16.msrb.mxu3 %v980_v28 }
  0x3e   : > { %633 = vmatpush.bf16.msrb.mxu0 %v780_v34 }
  0x3f   : > { %646 = vmatpush.bf16.msrb.mxu1 %v844_v35 }
  0x40   : > { %659 = vmatpush.bf16.msrb.mxu2 %v908_v36 }
  0x41   : > { %672 = vmatpush.bf16.msrb.mxu3 %v972_v40 }
  0x42   : > { %634 = vmatpush.bf16.msrb.mxu0 %v772_v46 }
  0x43   : > { %647 = vmatpush.bf16.msrb.mxu1 %v836_v47 }
  0x44   : > { %660 = vmatpush.bf16.msrb.mxu2 %v900_v48 }
  0x45   : > { %673 = vmatpush.bf16.msrb.mxu3 %v964_v52 }
  0x46   : > { %635 = vmatpush.bf16.msrb.mxu0 %v764_v58 }
  0x47   : > { %648 = vmatpush.bf16.msrb.mxu1 %v828_v59 }
  0x48   : > { %661 = vmatpush.bf16.msrb.mxu2 %v892_v60 }
  0x49   : > { %674 = vmatpush.bf16.msrb.mxu3 %v956_v0 }
  0x4a   : > { %636 = vmatpush.bf16.msrb.mxu0 %v756_v10 }
  0x4b   : > { %649 = vmatpush.bf16.msrb.mxu1 %v820_v11 }
  0x4c   : > { %662 = vmatpush.bf16.msrb.mxu2 %v884_v12 }
  0x4d   : > { %675 = vmatpush.bf16.msrb.mxu3 %v948_v13  ;;  %637 = vmatmul.bf16.vlgmr.msrb.gmra.mxu0 %v1387_v5  ;;  %v239_v5 = vperm.slane %v237_v21, 0 }
  0x4e   : > { %650 = vmatmul.bf16.vlgmr.msrb.gmra.mxu1 %v1397_v9  ;;  %v240_v9 = vperm.slane %v237_v21, 1 }
  0x4f   : > { %663 = vmatmul.bf16.vlgmr.msrb.gmra.mxu2 %v1376_v1 }
  0x50   : > { %676 = vmatmul.bf16.vlgmr.msrb.gmra.mxu3 %v1389_v6 }
  0xaa   : > { %v586_v14 = vpop.f32.mrf.mxu0 }
  0xab   : > { %v599_v15 = vpop.f32.mrf.mxu1  ;;  %v587_v23 = vadd.f32 %v586_v14, %v239_v5 }
  0xad   : > { %v600_v24 = vadd.f32 %v599_v15, %v587_v23 }
  0xb2   : > { %v612_v16 = vpop.f32.mrf.mxu2  ;;  %v588_v18 = vpop.f32.mrf.mxu0 }
  0xb3   : > { %v625_v17 = vpop.f32.mrf.mxu3  ;;  %v601_v19 = vpop.f32.mrf.mxu1  ;;  %v613_v26 = vadd.f32 %v612_v16, %v600_v24 }
  0xb5   : > { %v626_v29 = vadd.f32 %v625_v17, %v613_v26 }
  0xb7   : > { %v681_v35 = vmax.f32 %v626_v29, 0.0 }
  0xba   : > { %v614_v20 = vpop.f32.mrf.mxu2 }
  0xbb   : > { %v627_v22 = vpop.f32.mrf.mxu3 }
  0xca   : > { %v638_v1 = vpop.f32.mrf.mxu0 }
  0xcb   : > { %v639_v25 = vadd.f32 %v638_v1, %v240_v9  ;;  %v651_v6 = vpop.f32.mrf.mxu1 }
  0xcd   : > { %v652_v27 = vadd.f32 %v651_v6, %v639_v25 }
  0xd2   : > { %v664_v28 = vpop.f32.mrf.mxu2  ;;  %v640_v32 = vpop.f32.mrf.mxu0 }
  0xd3   : > { %v665_v30 = vadd.f32 %v664_v28, %v652_v27  ;;  %v677_v31 = vpop.f32.mrf.mxu3  ;;  %v653_v33 = vpop.f32.mrf.mxu1 }
  0xd5   : > { %v678_v34 = vadd.f32 %v677_v31, %v665_v30 }
  0xd7   : > { %v682_v36 = vmax.f32 %v678_v34, 0.0 }
  0xd9   : > { %v683_v37 = vpack.c.bf16 %v682_v36, %v681_v35 }
  0xda   : > { %v666_v38 = vpop.f32.mrf.mxu2 }
  0xdb   : > { %684 = vst [vmem:[%s170_s29] sm:$0xff] %v683_v37  ;;  %v679_v39 = vpop.f32.mrf.mxu3 }
  0xdc PF: > { %s13_s12 = sadd.s32 1, %s1087_s12  }
  0xdd   : > { %p10_p4 = scmp.ge.s32.totalorder %s13_s12, 6  }
  0xdf   :  { %12 = sbr.rel (!%p10_p4) target bundleno = 1 (0x1), region = 62 }

// kernel: protoad_forward.7
= control target key start
LH: loop header
LB: loop body
LE: loop exit
PB: predicated region body
PF: predicated region fallthrough
CT: control target
= control target key end

     0   :  { %s1607_s12 = smov 0   ;;  %s1609_s13 = smov 0   ;;  %s1999_s0 = inlined_call_operand.vmem [shape: bf16[128,128], index: 0, kind: input, shape index: {}]   ;;  %s2000_s1 = inlined_call_operand.vmem [shape: bf16[2,4,4,256], index: 1, kind: input, shape index: {}]   ;;  %s2001_s2 = inlined_call_operand.vmem [shape: bf16[2,2,2,512], index: 2, kind: input, shape index: {}]   ;;  %s2002_s3 = inlined_call_operand.vmem [shape: bf16[2,896,64], index: 3, kind: output, shape index: {}]  }
   0x1   :  { %s1611_s14 = smov 0  }
   0x2 LB: > { %s25_s15 = sadd.s32 1, %s1581_s13  ;;  %p1207_p0 = scmp.ge.s32.totalorder %s1585_s14, 1  ;;  %s1585_s14 = sphi %s1611_s14, %s13_s14   ;;  %s1581_s13 = sphi %s1609_s13, %s2004_s13   ;;  %s1577_s12 = sphi %s1607_s12, %s2003_s12  }
   0x3   : > { %p27_p1 = scmp.ge.s32.totalorder %s25_s15, 2  ;;  %p191_p2 = scmp.lt.s32.totalorder %s1585_s14, 3 }
   0x5   : > { %s2006_s15 = smov (%p27_p1, %s25_s15), 0  ;;  %p192_p3 = pnand %p1207_p0, %p191_p2 }
   0x6   : > { %s1208_s16 = sshll.u32 (!%p192_p3), %s1577_s12, 3  ;;  %p247_p5 = scmp.lt.s32.totalorder (!%p192_p3), %s1577_s12, 1 }
   0x7   : > { %195 = sbr.rel (%p192_p3) target bundleno = 437 (0x1b5), region = 32  ;;  %p240_p4 = scmp.lt.s32.totalorder (!%p192_p3), %s1208_s16, 15 }
   0xc   : > { %s2008_s16 = smov (!%p240_p4, %s1208_s16), 15  ;;  %s2010_s12 = smov (!%p247_p5, %s1577_s12), 1  ;;  %vm372_vm0 = vcmask 1040384   ;;  %vm374_vm1 = vcmask 1041409   ;;  %vm377_vm2 = vcmask 1042434   ;;  %vm380_vm3 = vcmask 1043459  }
   0xd   : > { %s1209_s17 = sshll.u32 %s2008_s16, 2  ;;  %s1216_s21 = sshll.u32 %s2010_s12, 4  ;;  %vm452_vm4 = vcmask 1041408   ;;  %vm685_vm5 = vcmask 1042433   ;;  %vm719_vm6 = vcmask 1043456   ;;  %vm339_vm7 = vcmask 519168  }
   0xe   : > { %s1628_s20 = scalar_lea.vmem %s1999_s0, %s1209_s17  ;;  %s255_s24 = scalar_lea.vmem %s2000_s1, %s1216_s21 }
   0xf   : > { %v1218_v0 = vld [vmem:[%s1628_s20] sm:$0xff]   ;;  %v1245_v3 = vld [vmem:[%s1628_s20 + $0x8] sm:$0xff]   ;;  %v1246_v7 = vld [vmem:[%s1628_s20 + $0x10] sm:$0xff]   ;;  %s1212_s25 = sshll.u32 %s2010_s12, 3  ;;  %s1249_s29 = smul.u32 448, %s2010_s12 }
  0x10   : > { %v1219_v1 = vunpack.c.l.bf16 %v1218_v0  ;;  %v1220_v2 = vunpack.c.h.bf16 %v1218_v0  ;;  %v1223_v4 = vunpack.c.l.bf16 %v1245_v3  ;;  %v1224_v5 = vunpack.c.h.bf16 %v1245_v3  ;;  %v1234_v6 = vld [vmem:[%s255_s24] sm:$0xff]   ;;  %v1248_v26 = vld [vmem:[%s255_s24 + $0x8] sm:$0xff]   ;;  %v1247_v47 = vld [vmem:[%s1628_s20 + $0x18] sm:$0xff]   ;;  %s265_s28 = scalar_lea.vmem %s2001_s2, %s1212_s25 }
  0x11   : > { %v1235_v8 = vunpack.c.l.bf16 %v1234_v6  ;;  %v1236_v10 = vunpack.c.h.bf16 %v1234_v6  ;;  %v1227_v11 = vunpack.c.l.bf16 %v1246_v7  ;;  %v1228_v32 = vunpack.c.h.bf16 %v1246_v7  ;;  %s1764_s5 = scalar_lea.vmem %s2002_s3, %s1249_s29 }
  0x12   : > { %291 = vxpose.xlu0.b32.start [1/8] (short) %v1219_v1, 128  ;;  %v1239_v35 = vunpack.c.l.bf16 %v1248_v26  ;;  %v1231_v51 = vunpack.c.l.bf16 %v1247_v47  ;;  %v1240_v52 = vunpack.c.h.bf16 %v1248_v26 }
  0x13   : > { %v368_v9 = vrot.slane %v1235_v8, 3  ;;  %v369_v21 = vrot.slane %v1236_v10, 3 }
  0x14   : > { %v370_v44 = vrot.slane %v1239_v35, 3  ;;  %v371_v6 = vrot.slane %v1240_v52, 3 }
  0x15   : > { %v373_v12 = vsel %vm372_vm0, %v1235_v8, %v368_v9  ;;  %v375_v13 = vsel %vm374_vm1, %v1235_v8, %v368_v9  ;;  %v378_v14 = vsel %vm377_vm2, %v1235_v8, %v368_v9  ;;  %v381_v15 = vsel %vm380_vm3, %v1235_v8, %v368_v9 }
  0x16   : > { %v376_v16 = vrot.slane %v375_v13, 1  ;;  %v379_v17 = vrot.slane %v378_v14, 2  ;;  %v382_v18 = vrot.slane %v381_v15, 3  ;;  %v404_v19 = vperm.slane %v373_v12, 0 }
  0x17   : > { %v405_v20 = vperm.slane %v373_v12, 1  ;;  %v384_v38 = vsel %vm374_vm1, %v1236_v10, %v369_v21  ;;  %v386_v39 = vsel %vm377_vm2, %v1236_v10, %v369_v21  ;;  %v388_v41 = vsel %vm380_vm3, %v1236_v10, %v369_v21 }
  0x18   : > { %v406_v22 = vperm.slane %v376_v16, 0  ;;  %v407_v23 = vperm.slane %v376_v16, 1  ;;  %v408_v24 = vperm.slane %v379_v17, 0  ;;  %v409_v25 = vperm.slane %v379_v17, 1 }
  0x19   : > { %v410_v27 = vperm.slane %v382_v18, 0  ;;  %v411_v28 = vperm.slane %v382_v18, 1  ;;  %v436_v29 = vrot.slane %v405_v20, 6  ;;  %v385_v42 = vrot.slane %v384_v38, 1 }
  0x1a   : > { %292 = vxpose.xlu0.b32.cont [2/8] (short) %v1220_v2, 128  ;;  %v437_v30 = vrot.slane %v407_v23, 6  ;;  %v438_v31 = vrot.slane %v409_v25, 6  ;;  %v387_v43 = vrot.slane %v386_v39, 2  ;;  %v383_v45 = vsel %vm372_vm0, %v1236_v10, %v369_v21 }
  0x1b   : > { %v439_v33 = vrot.slane %v411_v28, 6  ;;  %v453_v34 = vsel %vm452_vm4, %v404_v19, %v436_v29  ;;  %v389_v46 = vrot.slane %v388_v41, 3  ;;  %v413_v48 = vperm.slane %v383_v45, 1  ;;  %v1670_v28 = vld [vmem:[%s265_s28] sm:$0xff]  }
  0x1c   : > { %v454_v36 = vsel %vm452_vm4, %v406_v22, %v437_v30  ;;  %v455_v37 = vsel %vm452_vm4, %v408_v24, %v438_v31  ;;  %469 = vst [vmem:[#allocation1] ss:$4 sm:$0xff] %v453_v34  ;;  %v415_v49 = vperm.slane %v385_v42, 1  ;;  %v417_v50 = vperm.slane %v387_v43, 1 }
  0x1d   : > { %v456_v40 = vsel %vm452_vm4, %v410_v27, %v439_v33  ;;  %471 = vst [vmem:[#allocation1 + $0x1] ss:$4 sm:$0xff] %v454_v36  ;;  %v391_v53 = vsel %vm374_vm1, %v1239_v35, %v370_v44  ;;  %v419_v54 = vperm.slane %v389_v46, 1  ;;  %v412_v55 = vperm.slane %v383_v45, 0 }
  0x1e   : > { %473 = vst [vmem:[#allocation1 + $0x2] ss:$4 sm:$0xff] %v455_v37  ;;  %v414_v56 = vperm.slane %v385_v42, 0  ;;  %v416_v57 = vperm.slane %v387_v43, 0  ;;  %v418_v58 = vperm.slane %v389_v46, 0  ;;  %v393_v61 = vsel %vm377_vm2, %v1239_v35, %v370_v44 }
  0x1f   : > { %475 = vst [vmem:[#allocation1 + $0x3] ss:$4 sm:$0xff] %v456_v40  ;;  %v395_v62 = vsel %vm380_vm3, %v1239_v35, %v370_v44  ;;  %v440_v0 = vrot.slane %v413_v48, 6  ;;  %v441_v1 = vrot.slane %v415_v49, 6  ;;  %v442_v2 = vrot.slane %v417_v50, 6 }
  0x20   : > { %477 = vst [vmem:[#allocation1 + $0x20] ss:$4 sm:$0xff] %v453_v34  ;;  %v390_v3 = vsel %vm372_vm0, %v1239_v35, %v370_v44  ;;  %v394_v7 = vrot.slane %v393_v61, 2  ;;  %v396_v8 = vrot.slane %v395_v62, 3  ;;  %v1232_v15 = vunpack.c.h.bf16 %v1247_v47 }
  0x21   : > { %479 = vst [vmem:[#allocation1 + $0x21] ss:$4 sm:$0xff] %v454_v36  ;;  %v457_v9 = vsel %vm452_vm4, %v412_v55, %v440_v0  ;;  %v458_v10 = vsel %vm452_vm4, %v414_v56, %v441_v1  ;;  %v421_v12 = vperm.slane %v390_v3, 1  ;;  %v398_v19 = vsel %vm374_vm1, %v1240_v52, %v371_v6 }
  0x22   : > { %293 = vxpose.xlu0.b32.cont [3/8] (short) %v1223_v4, 128  ;;  %481 = vst [vmem:[#allocation1 + $0x22] ss:$4 sm:$0xff] %v455_v37  ;;  %v392_v4 = vrot.slane %v391_v53, 1  ;;  %v425_v18 = vperm.slane %v394_v7, 1  ;;  %v400_v20 = vsel %vm377_vm2, %v1240_v52, %v371_v6  ;;  %v420_v21 = vperm.slane %v390_v3, 0 }
  0x23   : > { %483 = vst [vmem:[#allocation1 + $0x23] ss:$4 sm:$0xff] %v456_v40  ;;  %v427_v22 = vperm.slane %v396_v8, 1  ;;  %v444_v23 = vrot.slane %v421_v12, 6  ;;  %v424_v26 = vperm.slane %v394_v7, 0  ;;  %v397_v29 = vsel %vm372_vm0, %v1240_v52, %v371_v6 }
  0x24   : > { %v423_v16 = vperm.slane %v392_v4, 1  ;;  %v422_v24 = vperm.slane %v392_v4, 0  ;;  %v446_v27 = vrot.slane %v425_v18, 6  ;;  %v399_v30 = vrot.slane %v398_v19, 1 }
  0x25   : > { %v401_v31 = vrot.slane %v400_v20, 2  ;;  %v402_v33 = vsel %vm380_vm3, %v1240_v52, %v371_v6  ;;  %v426_v34 = vperm.slane %v396_v8, 0  ;;  %v447_v35 = vrot.slane %v427_v22, 6 }
  0x26   : > { %v484_v59 = vld.sshfl [vmem:[#allocation1] sm:$0xff pattern:$0x73625140]  ;;  %v485_v60 = vld.sshfl [vmem:[#allocation1 + $0x8] sm:$0xff pattern:$0x73625140]  ;;  %v461_v36 = vsel %vm452_vm4, %v420_v21, %v444_v23  ;;  %v463_v41 = vsel %vm452_vm4, %v424_v26, %v446_v27 }
  0x27   : > { %v1275_v63 = vpack.i.bf16 %v485_v60, %v484_v59  ;;  %488 = vst [vmem:[#allocation1] ss:$4 sm:$0xff] %v457_v9  ;;  %v445_v25 = vrot.slane %v423_v16, 6  ;;  %v403_v46 = vrot.slane %v402_v33, 3  ;;  %v429_v47 = vperm.slane %v397_v29, 1 }
  0x28   : > { %489 = vst [vmem:[#allocation1 + $0x1] ss:$4 sm:$0xff] %v458_v10  ;;  %v464_v48 = vsel %vm452_vm4, %v426_v34, %v447_v35  ;;  %v431_v49 = vperm.slane %v399_v30, 1  ;;  %v433_v50 = vperm.slane %v401_v31, 1  ;;  %v428_v56 = vperm.slane %v397_v29, 0 }
  0x29   : > { %1276 = vxpose.xlu1.b32.start [1/8] (short) %v1275_v63, 128  ;;  %v462_v37 = vsel %vm452_vm4, %v422_v24, %v445_v25  ;;  %v430_v59 = vperm.slane %v399_v30, 0  ;;  %v432_v62 = vperm.slane %v401_v31, 0  ;;  %v434_v1 = vperm.slane %v403_v46, 0 }
  0x2a   : > { %294 = vxpose.xlu0.b32.cont [4/8] (short) %v1224_v5, 128  ;;  %v443_v5 = vrot.slane %v419_v54, 6  ;;  %v1661_v14 = vld.sshfl [vmem:[#allocation1 + $0x20] sm:$0xff pattern:$0x73625140]  ;;  %v449_v60 = vrot.slane %v431_v49, 6  ;;  %v450_v63 = vrot.slane %v433_v50, 6 }
  0x2b   : > { %v1663_v17 = vld.sshfl [vmem:[#allocation1 + $0x28] sm:$0xff pattern:$0x73625140] }
  0x2c   : > { %v460_v13 = vsel %vm452_vm4, %v418_v58, %v443_v5  ;;  %492 = vst [vmem:[#allocation1 + $0x20] ss:$4 sm:$0xff] %v457_v9  ;;  %v448_v58 = vrot.slane %v429_v47, 6  ;;  %v466_v4 = vsel %vm452_vm4, %v430_v59, %v449_v60  ;;  %v467_v7 = vsel %vm452_vm4, %v432_v62, %v450_v63 }
  0x2d   : > { %491 = vst [vmem:[#allocation1 + $0x3] ss:$4 sm:$0xff] %v460_v13 }
  0x2e   : > { %493 = vst [vmem:[#allocation1 + $0x21] ss:$4 sm:$0xff] %v458_v10  ;;  %v465_v3 = vsel %vm452_vm4, %v428_v56, %v448_v58 }
  0x2f   : > { %495 = vst [vmem:[#allocation1 + $0x23] ss:$4 sm:$0xff] %v460_v13 }
  0x32   : > { %295 = vxpose.xlu0.b32.cont [5/8] (short) %v1227_v11, 128  ;;  %v459_v11 = vsel %vm452_vm4, %v416_v57, %v442_v2  ;;  %v435_v57 = vperm.slane %v403_v46, 1 }
  0x33   : > { %490 = vst [vmem:[#allocation1 + $0x2] ss:$4 sm:$0xff] %v459_v11 }
  0x34   : > { %494 = vst [vmem:[#allocation1 + $0x22] ss:$4 sm:$0xff] %v459_v11  ;;  %v451_v2 = vrot.slane %v435_v57, 6 }
  0x36   : > { %v468_v10 = vsel %vm452_vm4, %v434_v1, %v451_v2 }
  0x3a   : > { %296 = vxpose.xlu0.b32.cont [6/8] (short) %v1228_v32, 128  ;;  %v1243_v32 = vunpack.c.l.bf16 %v1670_v28  ;;  %v1678_v42 = vld.sshfl [vmem:[#allocation1] sm:$0xff pattern:$0x73625140]  ;;  %v1680_v43 = vld.sshfl [vmem:[#allocation1 + $0x8] sm:$0xff pattern:$0x73625140] }
  0x3b   : > { %500 = vst [vmem:[#allocation1] ss:$4 sm:$0xff] %v461_v36  ;;  %v1687_v52 = vld.sshfl [vmem:[#allocation1 + $0x28] sm:$0xff pattern:$0x73625140] }
  0x3c   : > { %v674_v38 = vrot.slane %v1243_v32, 1  ;;  %v675_v39 = vrot.slane %v1243_v32, 2  ;;  %v676_v40 = vrot.slane %v1243_v32, 3  ;;  %501 = vst [vmem:[#allocation1 + $0x1] ss:$4 sm:$0xff] %v462_v37 }
  0x3d   : > { %502 = vst [vmem:[#allocation1 + $0x2] ss:$4 sm:$0xff] %v463_v41 }
  0x3e   : > { %v683_v44 = vsel %vm374_vm1, %v1243_v32, %v674_v38  ;;  %v684_v45 = vsel %vm380_vm3, %v675_v39, %v676_v40  ;;  %503 = vst [vmem:[#allocation1 + $0x3] ss:$4 sm:$0xff] %v464_v48  ;;  %v680_v54 = vsel %vm372_vm0, %v1243_v32, %v674_v38  ;;  %v681_v55 = vsel %vm377_vm2, %v675_v39, %v676_v40 }
  0x3f   : > { %v686_v53 = vsel %vm685_vm5, %v683_v44, %v684_v45  ;;  %v682_v0 = vsel %vm452_vm4, %v680_v54, %v681_v55  ;;  %v1244_v44 = vunpack.c.h.bf16 %v1670_v28 }
  0x40   : > { %v687_v61 = vrot.slane %v686_v53, 1  ;;  %v698_v5 = vperm.slane %v682_v0, 3  ;;  %v696_v11 = vperm.slane %v682_v0, 1  ;;  %v697_v12 = vperm.slane %v682_v0, 2 }
  0x41   : > { %v695_v21 = vperm.slane %v682_v0, 0  ;;  %v679_v46 = vrot.slane %v1244_v44, 3 }
  0x42   : > { %297 = vxpose.xlu0.b32.cont [7/8] (short) %v1231_v51, 128  ;;  %v1685_v51 = vld.sshfl [vmem:[#allocation1 + $0x20] sm:$0xff pattern:$0x73625140]  ;;  %v702_v6 = vperm.slane %v687_v61, 3  ;;  %v700_v13 = vperm.slane %v687_v61, 1  ;;  %v712_v16 = vrot.slane %v698_v5, 4 }
  0x43   : > { %504 = vst [vmem:[#allocation1 + $0x20] ss:$4 sm:$0xff] %v461_v36  ;;  %v711_v22 = vrot.slane %v696_v11, 4  ;;  %v699_v24 = vperm.slane %v687_v61, 0  ;;  %v1277_v36 = vpack.i.bf16 %v1663_v17, %v1661_v14  ;;  %v677_v14 = vrot.slane %v1244_v44, 1 }
  0x44   : > { %505 = vst [vmem:[#allocation1 + $0x21] ss:$4 sm:$0xff] %v462_v37  ;;  %v714_v18 = vrot.slane %v702_v6, 4  ;;  %v721_v23 = vsel %vm719_vm6, %v697_v12, %v712_v16  ;;  %v713_v25 = vrot.slane %v700_v13, 4  ;;  %v678_v17 = vrot.slane %v1244_v44, 2 }
  0x45   : > { %506 = vst [vmem:[#allocation1 + $0x22] ss:$4 sm:$0xff] %v463_v41  ;;  %v1696_v8 = vld.sshfl [vmem:[#allocation1] sm:$0xff pattern:$0x73625140]  ;;  %v720_v27 = vsel %vm719_vm6, %v695_v21, %v711_v22  ;;  %1278 = vxpose.xlu1.b32.cont [2/8] (short) %v1277_v36, 128  ;;  %v1279_v41 = vpack.i.bf16 %v1680_v43, %v1678_v42  ;;  %v688_v47 = vsel %vm372_vm0, %v1244_v44, %v677_v14 }
  0x46   : > { %507 = vst [vmem:[#allocation1 + $0x23] ss:$4 sm:$0xff] %v464_v48  ;;  %v1698_v9 = vld.sshfl [vmem:[#allocation1 + $0x8] sm:$0xff pattern:$0x73625140]  ;;  %v1709_v29 = vsel %vm719_vm6, %v699_v24, %v713_v25  ;;  %v689_v48 = vsel %vm377_vm2, %v678_v17, %v679_v46  ;;  %v691_v49 = vsel %vm374_vm1, %v1244_v44, %v677_v14  ;;  %v692_v50 = vsel %vm380_vm3, %v678_v17, %v679_v46 }
  0x47   : > { %512 = vst [vmem:[#allocation1] ss:$4 sm:$0xff] %v465_v3  ;;  %v690_v42 = vsel %vm452_vm4, %v688_v47, %v689_v48  ;;  %v693_v28 = vsel %vm685_vm5, %v691_v49, %v692_v50  ;;  %v1281_v63 = vpack.i.bf16 %v1687_v52, %v1685_v51 }
  0x48   : > { %513 = vst [vmem:[#allocation1 + $0x1] ss:$4 sm:$0xff] %v466_v4  ;;  %v694_v43 = vrot.slane %v693_v28, 1  ;;  %v704_v53 = vperm.slane %v690_v42, 1  ;;  %v705_v54 = vperm.slane %v690_v42, 2  ;;  %v706_v55 = vperm.slane %v690_v42, 3 }
  0x49   : > { %514 = vst [vmem:[#allocation1 + $0x2] ss:$4 sm:$0xff] %v467_v7  ;;  %v703_v2 = vperm.slane %v690_v42, 0 }
  0x4a   : > { %298 = vxpose.xlu0.b32.end [8/8] (short) %v1232_v15, 128  ;;  %v701_v15 = vperm.slane %v687_v61, 2  ;;  %515 = vst [vmem:[#allocation1 + $0x3] ss:$4 sm:$0xff] %v468_v10  ;;  %v708_v56 = vperm.slane %v694_v43, 1  ;;  %v709_v57 = vperm.slane %v694_v43, 2  ;;  %v710_v58 = vperm.slane %v694_v43, 3 }
  0x4b   : > { %732 = vst [vmem:[#allocation1 + $0x10] ss:$2 sm:$0xff] %v721_v23  ;;  %v716_v59 = vrot.slane %v706_v55, 4  ;;  %v707_v6 = vperm.slane %v694_v43, 0 }
  0x4c   : > { %v723_v26 = vsel %vm719_vm6, %v701_v15, %v714_v18  ;;  %v718_v0 = vrot.slane %v710_v58, 4  ;;  %v1283_v15 = vpack.i.bf16 %v1698_v9, %v1696_v8 }
  0x4d   : > { %v1701_v19 = vld.sshfl [vmem:[#allocation1 + $0x20] sm:$0xff pattern:$0x73625140]  ;;  %v1703_v20 = vld.sshfl [vmem:[#allocation1 + $0x28] sm:$0xff pattern:$0x73625140]  ;;  %1280 = vxpose.xlu1.b32.cont [3/8] (short) %v1279_v41, 128 }
  0x4e   : > { %516 = vst [vmem:[#allocation1 + $0x20] ss:$4 sm:$0xff] %v465_v3  ;;  %v715_v3 = vrot.slane %v704_v53, 4 }
  0x4f   : > { %517 = vst [vmem:[#allocation1 + $0x21] ss:$4 sm:$0xff] %v466_v4  ;;  %v725_v4 = vsel %vm719_vm6, %v705_v54, %v716_v59 }
  0x50   : > { %518 = vst [vmem:[#allocation1 + $0x22] ss:$4 sm:$0xff] %v467_v7  ;;  %v717_v7 = vrot.slane %v708_v56, 4  ;;  %v724_v52 = vsel %vm719_vm6, %v703_v2, %v715_v3 }
  0x51   : > { %519 = vst [vmem:[#allocation1 + $0x23] ss:$4 sm:$0xff] %v468_v10  ;;  %v1711_v30 = vld.sshfl [vmem:[#allocation1] sm:$0xff pattern:$0x73625140]  ;;  %v727_v10 = vsel %vm719_vm6, %v709_v57, %v718_v0 }
  0x52   : > { %734 = vst [vmem:[#allocation1 + $0x11] ss:$2 sm:$0xff] %v723_v26  ;;  %v1713_v31 = vld.sshfl [vmem:[#allocation1 + $0x8] sm:$0xff pattern:$0x73625140]  ;;  %v726_v12 = vsel %vm719_vm6, %v707_v6, %v717_v7 }
  0x53   : > { %740 = vst [vmem:[#allocation1 + $0x30] ss:$2 sm:$0xff] %v721_v23 }
  0x54   : > { %742 = vst [vmem:[#allocation1 + $0x31] ss:$2 sm:$0xff] %v723_v26 }
  0x55   : > { %728 = vst [vmem:[#allocation1] ss:$2 sm:$0xff] %v720_v27  ;;  %1282 = vxpose.xlu1.b32.cont [4/8] (short) %v1281_v63, 128 }
  0x56   : > { %730 = vst [vmem:[#allocation1 + $0x1] ss:$2 sm:$0xff] %v1709_v29 }
  0x58   : > { %v1716_v32 = vld.sshfl [vmem:[#allocation1 + $0x20] sm:$0xff pattern:$0x73625140]  ;;  %v1718_v33 = vld.sshfl [vmem:[#allocation1 + $0x28] sm:$0xff pattern:$0x73625140] }
  0x59   : > { %736 = vst [vmem:[#allocation1 + $0x20] ss:$2 sm:$0xff] %v720_v27  ;;  %v1720_v34 = vld.sshfl [vmem:[#allocation1 + $0x10] sm:$0xff pattern:$0x75316420]  ;;  %v1289_v41 = vpack.i.bf16 %v1718_v33, %v1716_v32 }
  0x5a   : > { %v1722_v35 = vld.sshfl [vmem:[#allocation1 + $0x18] sm:$0xff pattern:$0x75316420]  ;;  %738 = vst [vmem:[#allocation1 + $0x21] ss:$2 sm:$0xff] %v1709_v29 }
  0x5b   : > { %753 = vst [vmem:[#allocation1 + $0x10] ss:$2 sm:$0xff] %v721_v23  ;;  %v1727_v37 = vld.sshfl [vmem:[#allocation1 + $0x30] sm:$0xff pattern:$0x75316420]  ;;  %v1467_v21 = vpack.i.bf16 %v1722_v35, %v1720_v34 }
  0x5c   : > { %754 = vst [vmem:[#allocation1 + $0x11] ss:$2 sm:$0xff] %v723_v26  ;;  %v1729_v38 = vld.sshfl [vmem:[#allocation1 + $0x38] sm:$0xff pattern:$0x75316420] }
  0x5d   : > { %757 = vst [vmem:[#allocation1 + $0x30] ss:$2 sm:$0xff] %v721_v23  ;;  %v743_v39 = vld.sshfl [vmem:[#allocation1] sm:$0xff pattern:$0x75316420]  ;;  %1284 = vxpose.xlu1.b32.cont [5/8] (short) %v1283_v15, 128  ;;  %v1469_v8 = vpack.i.bf16 %v1729_v38, %v1727_v37  ;;  %v1287_v37 = vpack.i.bf16 %v1713_v31, %v1711_v30 }
  0x5e   : > { %758 = vst [vmem:[#allocation1 + $0x31] ss:$2 sm:$0xff] %v723_v26  ;;  %v744_v40 = vld.sshfl [vmem:[#allocation1 + $0x8] sm:$0xff pattern:$0x75316420] }
  0x5f   : > { %v1371_v45 = vpack.i.bf16 %v744_v40, %v743_v39  ;;  %751 = vst [vmem:[#allocation1] ss:$2 sm:$0xff] %v720_v27 }
  0x60   : > { %752 = vst [vmem:[#allocation1 + $0x1] ss:$2 sm:$0xff] %v1709_v29 }
  0x61   : > { %1372 = vxpose.xlu2.b32.start [1/8] (short) %v1371_v45, 128  ;;  %v747_v62 = vld.sshfl [vmem:[#allocation1 + $0x20] sm:$0xff pattern:$0x75316420]  ;;  %v748_v1 = vld.sshfl [vmem:[#allocation1 + $0x28] sm:$0xff pattern:$0x75316420] }
  0x62   : > { %v1373_v5 = vpack.i.bf16 %v748_v1, %v747_v62  ;;  %755 = vst [vmem:[#allocation1 + $0x20] ss:$2 sm:$0xff] %v720_v27 }
  0x63   : > { %v761_v60 = vld.sshfl [vmem:[#allocation1 + $0x10] sm:$0xff pattern:$0x75316420]  ;;  %v762_v61 = vld.sshfl [vmem:[#allocation1 + $0x18] sm:$0xff pattern:$0x75316420] }
  0x64   : > { %769 = vst [vmem:[#allocation1 + $0x10] ss:$2 sm:$0xff] %v725_v4  ;;  %v1471_v39 = vpack.i.bf16 %v762_v61, %v761_v60 }
  0x65   : > { %770 = vst [vmem:[#allocation1 + $0x11] ss:$2 sm:$0xff] %v727_v10  ;;  %v765_v11 = vld.sshfl [vmem:[#allocation1 + $0x30] sm:$0xff pattern:$0x75316420] }
  0x66   : > { %756 = vst [vmem:[#allocation1 + $0x21] ss:$2 sm:$0xff] %v1709_v29  ;;  %v766_v51 = vld.sshfl [vmem:[#allocation1 + $0x38] sm:$0xff pattern:$0x75316420]  ;;  %v1285_v29 = vpack.i.bf16 %v1703_v20, %v1701_v19 }
  0x67   : > { %773 = vst [vmem:[#allocation1 + $0x30] ss:$2 sm:$0xff] %v725_v4  ;;  %v759_v13 = vld.sshfl [vmem:[#allocation1] sm:$0xff pattern:$0x75316420]  ;;  %v1473_v20 = vpack.i.bf16 %v766_v51, %v765_v11 }
  0x68   : > { %774 = vst [vmem:[#allocation1 + $0x31] ss:$2 sm:$0xff] %v727_v10  ;;  %v760_v16 = vld.sshfl [vmem:[#allocation1 + $0x8] sm:$0xff pattern:$0x75316420]  ;;  %1286 = vxpose.xlu1.b32.cont [6/8] (short) %v1285_v29, 128 }
  0x69   : > { %1374 = vxpose.xlu2.b32.cont [2/8] (short) %v1373_v5, 128  ;;  %v1375_v18 = vpack.i.bf16 %v760_v16, %v759_v13  ;;  %767 = vst [vmem:[#allocation1] ss:$2 sm:$0xff] %v724_v52 }
  0x6a   : > { %768 = vst [vmem:[#allocation1 + $0x1] ss:$2 sm:$0xff] %v726_v12 }
  0x6c   : > { %v777_v22 = vld.sshfl [vmem:[#allocation1 + $0x10] sm:$0xff pattern:$0x75316420]  ;;  %v778_v23 = vld.sshfl [vmem:[#allocation1 + $0x18] sm:$0xff pattern:$0x75316420] }
  0x6d   : > { %785 = vst [vmem:[#allocation1 + $0x10] ss:$2 sm:$0xff] %v725_v4  ;;  %v763_v24 = vld.sshfl [vmem:[#allocation1 + $0x20] sm:$0xff pattern:$0x75316420]  ;;  %v1475_v17 = vpack.i.bf16 %v778_v23, %v777_v22 }
  0x6e   : > { %786 = vst [vmem:[#allocation1 + $0x11] ss:$2 sm:$0xff] %v727_v10  ;;  %v764_v25 = vld.sshfl [vmem:[#allocation1 + $0x28] sm:$0xff pattern:$0x75316420] }
  0x6f   : > { %v1377_v26 = vpack.i.bf16 %v764_v25, %v763_v24  ;;  %771 = vst [vmem:[#allocation1 + $0x20] ss:$2 sm:$0xff] %v724_v52  ;;  %v781_v9 = vld.sshfl [vmem:[#allocation1 + $0x30] sm:$0xff pattern:$0x75316420] }
  0x70   : > { %772 = vst [vmem:[#allocation1 + $0x21] ss:$2 sm:$0xff] %v726_v12  ;;  %v782_v27 = vld.sshfl [vmem:[#allocation1 + $0x38] sm:$0xff pattern:$0x75316420]  ;;  %1288 = vxpose.xlu1.b32.cont [7/8] (short) %v1287_v37, 128 }
  0x71   : > { %1376 = vxpose.xlu2.b32.cont [3/8] (short) %v1375_v18, 128  ;;  %789 = vst [vmem:[#allocation1 + $0x30] ss:$2 sm:$0xff] %v725_v4  ;;  %v775_v34 = vld.sshfl [vmem:[#allocation1] sm:$0xff pattern:$0x75316420]  ;;  %v1477_v33 = vpack.i.bf16 %v782_v27, %v781_v9 }
  0x72   : > { %790 = vst [vmem:[#allocation1 + $0x31] ss:$2 sm:$0xff] %v727_v10  ;;  %v776_v35 = vld.sshfl [vmem:[#allocation1 + $0x8] sm:$0xff pattern:$0x75316420] }
  0x73   : > { %v1379_v36 = vpack.i.bf16 %v776_v35, %v775_v34  ;;  %783 = vst [vmem:[#allocation1] ss:$2 sm:$0xff] %v724_v52 }
  0x74   : > { %784 = vst [vmem:[#allocation1 + $0x1] ss:$2 sm:$0xff] %v726_v12 }
  0x75   : > { %v793_v48 = vld.sshfl [vmem:[#allocation1 + $0x10] sm:$0xff pattern:$0x75316420]  ;;  %v794_v49 = vld.sshfl [vmem:[#allocation1 + $0x18] sm:$0xff pattern:$0x75316420] }
  0x76   : > { %v1479_v42 = vpack.i.bf16 %v794_v49, %v793_v48 }
  0x77   : > { %v779_v38 = vld.sshfl [vmem:[#allocation1 + $0x20] sm:$0xff pattern:$0x75316420]  ;;  %v780_v40 = vld.sshfl [vmem:[#allocation1 + $0x28] sm:$0xff pattern:$0x75316420] }
  0x78   : > { %v1381_v19 = vpack.i.bf16 %v780_v40, %v779_v38  ;;  %787 = vst [vmem:[#allocation1 + $0x20] ss:$2 sm:$0xff] %v724_v52  ;;  %1290 = vxpose.xlu1.b32.end [8/8] (short) %v1289_v41, 128 }
  0x79   : > { %1378 = vxpose.xlu2.b32.cont [4/8] (short) %v1377_v26, 128  ;;  %788 = vst [vmem:[#allocation1 + $0x21] ss:$2 sm:$0xff] %v726_v12  ;;  %v797_v43 = vld.sshfl [vmem:[#allocation1 + $0x30] sm:$0xff pattern:$0x75316420] }
  0x7a   : > { %v798_v53 = vld.sshfl [vmem:[#allocation1 + $0x38] sm:$0xff pattern:$0x75316420] }
  0x7b   : > { %v791_v44 = vld.sshfl [vmem:[#allocation1] sm:$0xff pattern:$0x75316420]  ;;  %v792_v45 = vld.sshfl [vmem:[#allocation1 + $0x8] sm:$0xff pattern:$0x75316420]  ;;  %v1481_v55 = vpack.i.bf16 %v798_v53, %v797_v43 }
  0x7c   : > { %v1383_v14 = vpack.i.bf16 %v792_v45, %v791_v44 }
  0x80   : > { %v795_v30 = vld.sshfl [vmem:[#allocation1 + $0x20] sm:$0xff pattern:$0x75316420]  ;;  %v796_v31 = vld.sshfl [vmem:[#allocation1 + $0x28] sm:$0xff pattern:$0x75316420] }
  0x81   : > { %1380 = vxpose.xlu2.b32.cont [5/8] (short) %v1379_v36, 128  ;;  %v1385_v46 = vpack.i.bf16 %v796_v31, %v795_v30 }
  0x89   : > { %1382 = vxpose.xlu2.b32.cont [6/8] (short) %v1381_v19, 128 }
  0x91   : > { %1384 = vxpose.xlu2.b32.cont [7/8] (short) %v1383_v14, 128 }
  0x92   : > { %1468 = vxpose.xlu0.b32.start [1/8] (short) %v1467_v21, 128 }
  0x99   : > { %1386 = vxpose.xlu2.b32.end [8/8] (short) %v1385_v46, 128 }
  0x9a   : > { %1470 = vxpose.xlu0.b32.cont [2/8] (short) %v1469_v8, 128 }
  0xa2   : > { %1472 = vxpose.xlu0.b32.cont [3/8] (short) %v1471_v39, 128 }
  0xaa   : > { %1474 = vxpose.xlu0.b32.cont [4/8] (short) %v1473_v20, 128 }
  0xb2   : > { %1476 = vxpose.xlu0.b32.cont [5/8] (short) %v1475_v17, 128 }
  0xb6   : > { %v307_v32 = vpop.trf.xlu0 }
  0xb7   : > { %v323_v47 = vpack.c.bf16 %v307_v32, %v307_v32 }
  0xb9   : > { %340 = vst.msk [vmem:[%s1764_s5] sm:$0xf] %vm339_vm7, %v323_v47 }
  0xba   : > { %1478 = vxpose.xlu0.b32.cont [6/8] (short) %v1477_v33, 128 }
  0xbe   : > { %v308_v50 = vpop.trf.xlu0 }
  0xbf   : > { %v324_v28 = vpack.c.bf16 %v308_v50, %v308_v50 }
  0xc1   : > { %341 = vst.msk [vmem:[%s1764_s5 + $0x4] sm:$0xf] %vm339_vm7, %v324_v28 }
  0xc2   : > { %1480 = vxpose.xlu0.b32.cont [7/8] (short) %v1479_v42, 128 }
  0xc6   : > { %v309_v54 = vpop.trf.xlu0 }
  0xc7   : > { %v325_v56 = vpack.c.bf16 %v309_v54, %v309_v54 }
  0xc9   : > { %342 = vst.msk [vmem:[%s1764_s5 + $0x8] sm:$0xf] %vm339_vm7, %v325_v56 }
  0xca   : > { %1482 = vxpose.xlu0.b32.end [8/8] (short) %v1481_v55, 128 }
  0xce   : > { %v310_v57 = vpop.trf.xlu0 }
  0xcf   : > { %v326_v58 = vpack.c.bf16 %v310_v57, %v310_v57 }
  0xd1   : > { %343 = vst.msk [vmem:[%s1764_s5 + $0xc] sm:$0xf] %vm339_vm7, %v326_v58 }
  0xd6   : > { %v311_v59 = vpop.trf.xlu0 }
  0xd7   : > { %v327_v60 = vpack.c.bf16 %v311_v59, %v311_v59 }
  0xd9   : > { %344 = vst.msk [vmem:[%s1764_s5 + $0x10] sm:$0xf] %vm339_vm7, %v327_v60 }
  0xde   : > { %v312_v61 = vpop.trf.xlu0 }
  0xdf   : > { %v328_v62 = vpack.c.bf16 %v312_v61, %v312_v61 }
  0xe1   : > { %345 = vst.msk [vmem:[%s1764_s5 + $0x14] sm:$0xf] %vm339_vm7, %v328_v62 }
  0xe4   : > { %v1291_v12 = vpop.trf.xlu1 }
  0xe5   : > { %v1295_v15 = vunpack.i.h.bf16 %v1291_v12  ;;  %v1292_v16 = vunpack.i.l.bf16 %v1291_v12 }
  0xe6   : > { %v313_v63 = vpop.trf.xlu0 }
  0xe7   : > { %v329_v0 = vpack.c.bf16 %v313_v63, %v313_v63  ;;  %v620_v21 = vpack.c.bf16 %v1295_v15, %v1295_v15  ;;  %v604_v23 = vpack.c.bf16 %v1292_v16, %v1292_v16 }
  0xe9   : > { %346 = vst.msk [vmem:[%s1764_s5 + $0x18] sm:$0xf] %vm339_vm7, %v329_v0 }
  0xea   : > { %652 = vst.msk [vmem:[%s1764_s5 + $0x80] sm:$0xf] %vm339_vm7, %v620_v21 }
  0xeb   : > { %636 = vst.msk [vmem:[%s1764_s5 + $0x40] sm:$0xf] %vm339_vm7, %v604_v23 }
  0xec   : > { %v1296_v9 = vpop.trf.xlu1 }
  0xed   : > { %v1300_v29 = vunpack.i.h.bf16 %v1296_v9  ;;  %v1297_v34 = vunpack.i.l.bf16 %v1296_v9 }
  0xee   : > { %v314_v1 = vpop.trf.xlu0 }
  0xef   : > { %v330_v2 = vpack.c.bf16 %v314_v1, %v314_v1  ;;  %v621_v36 = vpack.c.bf16 %v1300_v29, %v1300_v29  ;;  %v605_v37 = vpack.c.bf16 %v1297_v34, %v1297_v34 }
  0xf1   : > { %347 = vst.msk [vmem:[%s1764_s5 + $0x1c] sm:$0xf] %vm339_vm7, %v330_v2 }
  0xf2   : > { %653 = vst.msk [vmem:[%s1764_s5 + $0x84] sm:$0xf] %vm339_vm7, %v621_v36 }
  0xf3   : > { %637 = vst.msk [vmem:[%s1764_s5 + $0x44] sm:$0xf] %vm339_vm7, %v605_v37 }
  0xf4   : > { %v1301_v41 = vpop.trf.xlu1 }
  0xf5   : > { %v1305_v45 = vunpack.i.h.bf16 %v1301_v41  ;;  %v1302_v14 = vunpack.i.l.bf16 %v1301_v41 }
  0xf6   : > { %v315_v3 = vpop.trf.xlu0 }
  0xf7   : > { %v331_v4 = vpack.c.bf16 %v315_v3, %v315_v3  ;;  %v622_v30 = vpack.c.bf16 %v1305_v45, %v1305_v45  ;;  %v606_v46 = vpack.c.bf16 %v1302_v14, %v1302_v14 }
  0xf9   : > { %348 = vst.msk [vmem:[%s1764_s5 + $0x20] sm:$0xf] %vm339_vm7, %v331_v4 }
  0xfa   : > { %v1387_v18 = vpop.trf.xlu2  ;;  %654 = vst.msk [vmem:[%s1764_s5 + $0x88] sm:$0xf] %vm339_vm7, %v622_v30 }
  0xfb   : > { %v1391_v22 = vunpack.i.h.bf16 %v1387_v18  ;;  %v1388_v24 = vunpack.i.l.bf16 %v1387_v18  ;;  %638 = vst.msk [vmem:[%s1764_s5 + $0x48] sm:$0xf] %vm339_vm7, %v606_v46 }
  0xfc   : > { %v1306_v49 = vpop.trf.xlu1 }
  0xfd   : > { %v975_v25 = vpack.c.bf16 %v1391_v22, %v1391_v22  ;;  %v959_v26 = vpack.c.bf16 %v1388_v24, %v1388_v24  ;;  %v1310_v42 = vunpack.i.h.bf16 %v1306_v49  ;;  %v1307_v28 = vunpack.i.l.bf16 %v1306_v49 }
  0xfe   : > { %v316_v5 = vpop.trf.xlu0 }
  0xff   : > { %v332_v6 = vpack.c.bf16 %v316_v5, %v316_v5  ;;  %1039 = vst.msk [vmem:[%s1764_s5 + $0x100] sm:$0xf] %vm339_vm7, %v975_v25  ;;  %v623_v53 = vpack.c.bf16 %v1310_v42, %v1310_v42  ;;  %v607_v55 = vpack.c.bf16 %v1307_v28, %v1307_v28 }
 0x100   : > { %1023 = vst.msk [vmem:[%s1764_s5 + $0xc0] sm:$0xf] %vm339_vm7, %v959_v26 }
 0x101   : > { %349 = vst.msk [vmem:[%s1764_s5 + $0x24] sm:$0xf] %vm339_vm7, %v332_v6 }
 0x102   : > { %v1392_v35 = vpop.trf.xlu2  ;;  %655 = vst.msk [vmem:[%s1764_s5 + $0x8c] sm:$0xf] %vm339_vm7, %v623_v53 }
 0x103   : > { %v1396_v39 = vunpack.i.h.bf16 %v1392_v35  ;;  %v1393_v38 = vunpack.i.l.bf16 %v1392_v35  ;;  %639 = vst.msk [vmem:[%s1764_s5 + $0x4c] sm:$0xf] %vm339_vm7, %v607_v55 }
 0x104   : > { %v1311_v60 = vpop.trf.xlu1 }
 0x105   : > { %v976_v40 = vpack.c.bf16 %v1396_v39, %v1396_v39  ;;  %v960_v19 = vpack.c.bf16 %v1393_v38, %v1393_v38  ;;  %v1315_v63 = vunpack.i.h.bf16 %v1311_v60  ;;  %v1312_v0 = vunpack.i.l.bf16 %v1311_v60 }
 0x106   : > { %v317_v7 = vpop.trf.xlu0 }
 0x107   : > { %v333_v10 = vpack.c.bf16 %v317_v7, %v317_v7  ;;  %1040 = vst.msk [vmem:[%s1764_s5 + $0x104] sm:$0xf] %vm339_vm7, %v976_v40  ;;  %v624_v5 = vpack.c.bf16 %v1315_v63, %v1315_v63  ;;  %v608_v6 = vpack.c.bf16 %v1312_v0, %v1312_v0 }
 0x108   : > { %1024 = vst.msk [vmem:[%s1764_s5 + $0xc4] sm:$0xf] %vm339_vm7, %v960_v19 }
 0x109   : > { %350 = vst.msk [vmem:[%s1764_s5 + $0x28] sm:$0xf] %vm339_vm7, %v333_v10 }
 0x10a   : > { %v1397_v17 = vpop.trf.xlu2  ;;  %656 = vst.msk [vmem:[%s1764_s5 + $0x90] sm:$0xf] %vm339_vm7, %v624_v5 }
 0x10b   : > { %v1401_v31 = vunpack.i.h.bf16 %v1397_v17  ;;  %v1398_v32 = vunpack.i.l.bf16 %v1397_v17  ;;  %640 = vst.msk [vmem:[%s1764_s5 + $0x50] sm:$0xf] %vm339_vm7, %v608_v6 }
 0x10d   : > { %v977_v33 = vpack.c.bf16 %v1401_v31, %v1401_v31  ;;  %v961_v47 = vpack.c.bf16 %v1398_v32, %v1398_v32 }
 0x10e   : > { %v318_v11 = vpop.trf.xlu0 }
 0x10f   : > { %v334_v51 = vpack.c.bf16 %v318_v11, %v318_v11  ;;  %1041 = vst.msk [vmem:[%s1764_s5 + $0x108] sm:$0xf] %vm339_vm7, %v977_v33 }
 0x110   : > { %1025 = vst.msk [vmem:[%s1764_s5 + $0xc8] sm:$0xf] %vm339_vm7, %v961_v47 }
 0x111   : > { %351 = vst.msk [vmem:[%s1764_s5 + $0x2c] sm:$0xf] %vm339_vm7, %v334_v51 }
 0x112   : > { %v1402_v43 = vpop.trf.xlu2 }
 0x113   : > { %v1406_v54 = vunpack.i.h.bf16 %v1402_v43  ;;  %v1403_v56 = vunpack.i.l.bf16 %v1402_v43 }
 0x115   : > { %v978_v57 = vpack.c.bf16 %v1406_v54, %v1406_v54  ;;  %v962_v58 = vpack.c.bf16 %v1403_v56, %v1403_v56 }
 0x116   : > { %v319_v52 = vpop.trf.xlu0 }
 0x117   : > { %v335_v13 = vpack.c.bf16 %v319_v52, %v319_v52  ;;  %1042 = vst.msk [vmem:[%s1764_s5 + $0x10c] sm:$0xf] %vm339_vm7, %v978_v57  ;;  %v1316_v52 = vpop.trf.xlu1 }
 0x118   : > { %1026 = vst.msk [vmem:[%s1764_s5 + $0xcc] sm:$0xf] %vm339_vm7, %v962_v58  ;;  %v1320_v15 = vunpack.i.h.bf16 %v1316_v52  ;;  %v1317_v16 = vunpack.i.l.bf16 %v1316_v52 }
 0x119   : > { %352 = vst.msk [vmem:[%s1764_s5 + $0x30] sm:$0xf] %vm339_vm7, %v335_v13 }
 0x11a   : > { %v1407_v1 = vpop.trf.xlu2  ;;  %v625_v24 = vpack.c.bf16 %v1320_v15, %v1320_v15  ;;  %v609_v25 = vpack.c.bf16 %v1317_v16, %v1317_v16 }
 0x11b   : > { %v1411_v4 = vunpack.i.h.bf16 %v1407_v1  ;;  %v1408_v7 = vunpack.i.l.bf16 %v1407_v1 }
 0x11c   : > { %657 = vst.msk [vmem:[%s1764_s5 + $0x94] sm:$0xf] %vm339_vm7, %v625_v24 }
 0x11d   : > { %v979_v10 = vpack.c.bf16 %v1411_v4, %v1411_v4  ;;  %v963_v11 = vpack.c.bf16 %v1408_v7, %v1408_v7  ;;  %641 = vst.msk [vmem:[%s1764_s5 + $0x54] sm:$0xf] %vm339_vm7, %v609_v25 }
 0x11e   : > { %v320_v8 = vpop.trf.xlu0 }
 0x11f   : > { %v336_v27 = vpack.c.bf16 %v320_v8, %v320_v8  ;;  %1043 = vst.msk [vmem:[%s1764_s5 + $0x110] sm:$0xf] %vm339_vm7, %v979_v10  ;;  %v1321_v29 = vpop.trf.xlu1 }
 0x120   : > { %1027 = vst.msk [vmem:[%s1764_s5 + $0xd0] sm:$0xf] %vm339_vm7, %v963_v11  ;;  %v1325_v36 = vunpack.i.h.bf16 %v1321_v29  ;;  %v1322_v39 = vunpack.i.l.bf16 %v1321_v29 }
 0x121   : > { %353 = vst.msk [vmem:[%s1764_s5 + $0x34] sm:$0xf] %vm339_vm7, %v336_v27 }
 0x122   : > { %v1412_v18 = vpop.trf.xlu2  ;;  %v610_v41 = vpack.c.bf16 %v1322_v39, %v1322_v39 }
 0x123   : > { %v1416_v23 = vunpack.i.h.bf16 %v1412_v18  ;;  %v1413_v26 = vunpack.i.l.bf16 %v1412_v18 }
 0x124   : > { %642 = vst.msk [vmem:[%s1764_s5 + $0x58] sm:$0xf] %vm339_vm7, %v610_v41 }
 0x125   : > { %v980_v8 = vpack.c.bf16 %v1416_v23, %v1416_v23  ;;  %v964_v9 = vpack.c.bf16 %v1413_v26, %v1413_v26 }
 0x126   : > { %v321_v20 = vpop.trf.xlu0 }
 0x127   : > { %v337_v44 = vpack.c.bf16 %v321_v20, %v321_v20  ;;  %1044 = vst.msk [vmem:[%s1764_s5 + $0x114] sm:$0xf] %vm339_vm7, %v980_v8  ;;  %v626_v20 = vpack.c.bf16 %v1325_v36, %v1325_v36  ;;  %v1326_v30 = vpop.trf.xlu1 }
 0x128   : > { %1028 = vst.msk [vmem:[%s1764_s5 + $0xd4] sm:$0xf] %vm339_vm7, %v964_v9  ;;  %v1330_v32 = vunpack.i.h.bf16 %v1326_v30  ;;  %v1327_v33 = vunpack.i.l.bf16 %v1326_v30 }
 0x129   : > { %354 = vst.msk [vmem:[%s1764_s5 + $0x38] sm:$0xf] %vm339_vm7, %v337_v44 }
 0x12a   : > { %v1417_v37 = vpop.trf.xlu2  ;;  %658 = vst.msk [vmem:[%s1764_s5 + $0x98] sm:$0xf] %vm339_vm7, %v626_v20  ;;  %v627_v42 = vpack.c.bf16 %v1330_v32, %v1330_v32  ;;  %v611_v28 = vpack.c.bf16 %v1327_v33, %v1327_v33 }
 0x12b   : > { %v1421_v19 = vunpack.i.h.bf16 %v1417_v37  ;;  %v1418_v44 = vunpack.i.l.bf16 %v1417_v37 }
 0x12c   : > { %659 = vst.msk [vmem:[%s1764_s5 + $0x9c] sm:$0xf] %vm339_vm7, %v627_v42 }
 0x12d   : > { %v981_v45 = vpack.c.bf16 %v1421_v19, %v1421_v19  ;;  %v965_v14 = vpack.c.bf16 %v1418_v44, %v1418_v44  ;;  %643 = vst.msk [vmem:[%s1764_s5 + $0x5c] sm:$0xf] %vm339_vm7, %v611_v28 }
 0x12e   : > { %v322_v48 = vpop.trf.xlu0 }
 0x12f   : > { %v338_v50 = vpack.c.bf16 %v322_v48, %v322_v48  ;;  %1045 = vst.msk [vmem:[%s1764_s5 + $0x118] sm:$0xf] %vm339_vm7, %v981_v45  ;;  %v1331_v56 = vpop.trf.xlu1 }
 0x130   : > { %1029 = vst.msk [vmem:[%s1764_s5 + $0xd8] sm:$0xf] %vm339_vm7, %v965_v14  ;;  %v1332_v60 = vunpack.i.l.bf16 %v1331_v56 }
 0x131   : > { %355 = vst.msk [vmem:[%s1764_s5 + $0x3c] sm:$0xf] %vm339_vm7, %v338_v50 }
 0x132   : > { %v1422_v47 = vpop.trf.xlu2 }
 0x133   : > { %v1426_v50 = vunpack.i.h.bf16 %v1422_v47  ;;  %v1423_v43 = vunpack.i.l.bf16 %v1422_v47 }
 0x135   : > { %v982_v53 = vpack.c.bf16 %v1426_v50, %v1426_v50  ;;  %v966_v54 = vpack.c.bf16 %v1423_v43, %v1423_v43 }
 0x136   : > { %v1483_v59 = vpop.trf.xlu0 }
 0x137   : > { %v1487_v61 = vunpack.i.h.bf16 %v1483_v59  ;;  %v1484_v62 = vunpack.i.l.bf16 %v1483_v59  ;;  %1046 = vst.msk [vmem:[%s1764_s5 + $0x11c] sm:$0xf] %vm339_vm7, %v982_v53  ;;  %v1335_v59 = vunpack.i.h.bf16 %v1331_v56  ;;  %v1336_v7 = vpop.trf.xlu1 }
 0x138   : > { %1030 = vst.msk [vmem:[%s1764_s5 + $0xdc] sm:$0xf] %vm339_vm7, %v966_v54  ;;  %v1337_v52 = vunpack.i.l.bf16 %v1336_v7 }
 0x139   : > { %v1007_v2 = vpack.c.bf16 %v1487_v61, %v1487_v61  ;;  %v991_v3 = vpack.c.bf16 %v1484_v62, %v1484_v62  ;;  %v628_v1 = vpack.c.bf16 %v1335_v59, %v1335_v59 }
 0x13a   : > { %v1427_v61 = vpop.trf.xlu2 }
 0x13b   : > { %1071 = vst.msk [vmem:[%s1764_s5 + $0x180] sm:$0xf] %vm339_vm7, %v1007_v2  ;;  %v1431_v0 = vunpack.i.h.bf16 %v1427_v61  ;;  %v612_v2 = vpack.c.bf16 %v1332_v60, %v1332_v60 }
 0x13c   : > { %1055 = vst.msk [vmem:[%s1764_s5 + $0x140] sm:$0xf] %vm339_vm7, %v991_v3  ;;  %v1428_v3 = vunpack.i.l.bf16 %v1427_v61 }
 0x13d   : > { %v983_v4 = vpack.c.bf16 %v1431_v0, %v1431_v0  ;;  %660 = vst.msk [vmem:[%s1764_s5 + $0xa0] sm:$0xf] %vm339_vm7, %v628_v1 }
 0x13e   : > { %v1488_v51 = vpop.trf.xlu0  ;;  %v967_v5 = vpack.c.bf16 %v1428_v3, %v1428_v3  ;;  %644 = vst.msk [vmem:[%s1764_s5 + $0x60] sm:$0xf] %vm339_vm7, %v612_v2 }
 0x13f   : > { %v1492_v12 = vunpack.i.h.bf16 %v1488_v51  ;;  %v1489_v13 = vunpack.i.l.bf16 %v1488_v51  ;;  %1047 = vst.msk [vmem:[%s1764_s5 + $0x120] sm:$0xf] %vm339_vm7, %v983_v4  ;;  %v1340_v51 = vunpack.i.h.bf16 %v1336_v7  ;;  %v1341_v26 = vpop.trf.xlu1 }
 0x140   : > { %1031 = vst.msk [vmem:[%s1764_s5 + $0xe0] sm:$0xf] %vm339_vm7, %v967_v5  ;;  %v1342_v29 = vunpack.i.l.bf16 %v1341_v26 }
 0x141   : > { %v1008_v21 = vpack.c.bf16 %v1492_v12, %v1492_v12  ;;  %v992_v22 = vpack.c.bf16 %v1489_v13, %v1489_v13  ;;  %v629_v18 = vpack.c.bf16 %v1340_v51, %v1340_v51 }
 0x142   : > { %v1432_v12 = vpop.trf.xlu2 }
 0x143   : > { %1072 = vst.msk [vmem:[%s1764_s5 + $0x184] sm:$0xf] %vm339_vm7, %v1008_v21  ;;  %v1436_v16 = vunpack.i.h.bf16 %v1432_v12  ;;  %v613_v21 = vpack.c.bf16 %v1337_v52, %v1337_v52 }
 0x144   : > { %1056 = vst.msk [vmem:[%s1764_s5 + $0x144] sm:$0xf] %vm339_vm7, %v992_v22  ;;  %v1433_v22 = vunpack.i.l.bf16 %v1432_v12 }
 0x145   : > { %v984_v23 = vpack.c.bf16 %v1436_v16, %v1436_v16  ;;  %661 = vst.msk [vmem:[%s1764_s5 + $0xa4] sm:$0xf] %vm339_vm7, %v629_v18 }
 0x146   : > { %v1493_v27 = vpop.trf.xlu0  ;;  %v968_v24 = vpack.c.bf16 %v1433_v22, %v1433_v22  ;;  %645 = vst.msk [vmem:[%s1764_s5 + $0x64] sm:$0xf] %vm339_vm7, %v613_v21 }
 0x147   : > { %v1497_v34 = vunpack.i.h.bf16 %v1493_v27  ;;  %v1494_v35 = vunpack.i.l.bf16 %v1493_v27  ;;  %1048 = vst.msk [vmem:[%s1764_s5 + $0x124] sm:$0xf] %vm339_vm7, %v984_v23  ;;  %v1345_v27 = vunpack.i.h.bf16 %v1341_v26  ;;  %v1346_v44 = vpop.trf.xlu1 }
 0x148   : > { %1032 = vst.msk [vmem:[%s1764_s5 + $0xe4] sm:$0xf] %vm339_vm7, %v968_v24  ;;  %v1347_v30 = vunpack.i.l.bf16 %v1346_v44 }
 0x149   : > { %v1009_v38 = vpack.c.bf16 %v1497_v34, %v1497_v34  ;;  %v993_v40 = vpack.c.bf16 %v1494_v35, %v1494_v35  ;;  %v630_v37 = vpack.c.bf16 %v1345_v27, %v1345_v27 }
 0x14a   : > { %v1437_v34 = vpop.trf.xlu2 }
 0x14b   : > { %1073 = vst.msk [vmem:[%s1764_s5 + $0x188] sm:$0xf] %vm339_vm7, %v1009_v38  ;;  %v1441_v39 = vunpack.i.h.bf16 %v1437_v34  ;;  %v614_v38 = vpack.c.bf16 %v1342_v29, %v1342_v29 }
 0x14c   : > { %1057 = vst.msk [vmem:[%s1764_s5 + $0x148] sm:$0xf] %vm339_vm7, %v993_v40  ;;  %v1438_v40 = vunpack.i.l.bf16 %v1437_v34 }
 0x14d   : > { %v985_v19 = vpack.c.bf16 %v1441_v39, %v1441_v39  ;;  %662 = vst.msk [vmem:[%s1764_s5 + $0xa8] sm:$0xf] %vm339_vm7, %v630_v37 }
 0x14e   : > { %v1498_v17 = vpop.trf.xlu0  ;;  %v969_v20 = vpack.c.bf16 %v1438_v40, %v1438_v40  ;;  %646 = vst.msk [vmem:[%s1764_s5 + $0x68] sm:$0xf] %vm339_vm7, %v614_v38 }
 0x14f   : > { %v1502_v31 = vunpack.i.h.bf16 %v1498_v17  ;;  %v1499_v46 = vunpack.i.l.bf16 %v1498_v17  ;;  %1049 = vst.msk [vmem:[%s1764_s5 + $0x128] sm:$0xf] %vm339_vm7, %v985_v19  ;;  %v1350_v17 = vunpack.i.h.bf16 %v1346_v44  ;;  %v1351_v43 = vpop.trf.xlu1 }
 0x150   : > { %1033 = vst.msk [vmem:[%s1764_s5 + $0xe8] sm:$0xf] %vm339_vm7, %v969_v20  ;;  %v1352_v56 = vunpack.i.l.bf16 %v1351_v43 }
 0x151   : > { %v1010_v48 = vpack.c.bf16 %v1502_v31, %v1502_v31  ;;  %v994_v49 = vpack.c.bf16 %v1499_v46, %v1499_v46  ;;  %v631_v47 = vpack.c.bf16 %v1350_v17, %v1350_v17 }
 0x152   : > { %v1442_v31 = vpop.trf.xlu2 }
 0x153   : > { %1074 = vst.msk [vmem:[%s1764_s5 + $0x18c] sm:$0xf] %vm339_vm7, %v1010_v48  ;;  %v1446_v33 = vunpack.i.h.bf16 %v1442_v31  ;;  %v615_v48 = vpack.c.bf16 %v1347_v30, %v1347_v30 }
 0x154   : > { %1058 = vst.msk [vmem:[%s1764_s5 + $0x14c] sm:$0xf] %vm339_vm7, %v994_v49  ;;  %v1443_v49 = vunpack.i.l.bf16 %v1442_v31 }
 0x155   : > { %v986_v50 = vpack.c.bf16 %v1446_v33, %v1446_v33  ;;  %663 = vst.msk [vmem:[%s1764_s5 + $0xac] sm:$0xf] %vm339_vm7, %v631_v47 }
 0x156   : > { %v1503_v55 = vpop.trf.xlu0  ;;  %v970_v42 = vpack.c.bf16 %v1443_v49, %v1443_v49  ;;  %647 = vst.msk [vmem:[%s1764_s5 + $0x6c] sm:$0xf] %vm339_vm7, %v615_v48 }
 0x157   : > { %v1507_v57 = vunpack.i.h.bf16 %v1503_v55  ;;  %v1504_v58 = vunpack.i.l.bf16 %v1503_v55  ;;  %1050 = vst.msk [vmem:[%s1764_s5 + $0x12c] sm:$0xf] %vm339_vm7, %v986_v50  ;;  %v1355_v55 = vunpack.i.h.bf16 %v1351_v43  ;;  %v1356_v3 = vpop.trf.xlu1 }
 0x158   : > { %1034 = vst.msk [vmem:[%s1764_s5 + $0xec] sm:$0xf] %vm339_vm7, %v970_v42  ;;  %v1357_v7 = vunpack.i.l.bf16 %v1356_v3 }
 0x159   : > { %v1011_v62 = vpack.c.bf16 %v1507_v57, %v1507_v57  ;;  %v995_v63 = vpack.c.bf16 %v1504_v58, %v1504_v58  ;;  %v632_v61 = vpack.c.bf16 %v1355_v55, %v1355_v55 }
 0x15a   : > { %v1447_v57 = vpop.trf.xlu2 }
 0x15b   : > { %1075 = vst.msk [vmem:[%s1764_s5 + $0x190] sm:$0xf] %vm339_vm7, %v1011_v62  ;;  %v1451_v60 = vunpack.i.h.bf16 %v1447_v57  ;;  %v616_v62 = vpack.c.bf16 %v1352_v56, %v1352_v56 }
 0x15c   : > { %1059 = vst.msk [vmem:[%s1764_s5 + $0x150] sm:$0xf] %vm339_vm7, %v995_v63  ;;  %v1448_v63 = vunpack.i.l.bf16 %v1447_v57 }
 0x15d   : > { %v987_v0 = vpack.c.bf16 %v1451_v60, %v1451_v60  ;;  %664 = vst.msk [vmem:[%s1764_s5 + $0xb0] sm:$0xf] %vm339_vm7, %v632_v61 }
 0x15e   : > { %v1508_v6 = vpop.trf.xlu0  ;;  %v971_v1 = vpack.c.bf16 %v1448_v63, %v1448_v63  ;;  %648 = vst.msk [vmem:[%s1764_s5 + $0x70] sm:$0xf] %vm339_vm7, %v616_v62 }
 0x15f   : > { %v1512_v10 = vunpack.i.h.bf16 %v1508_v6  ;;  %v1509_v11 = vunpack.i.l.bf16 %v1508_v6  ;;  %1051 = vst.msk [vmem:[%s1764_s5 + $0x130] sm:$0xf] %vm339_vm7, %v987_v0  ;;  %v1360_v6 = vunpack.i.h.bf16 %v1356_v3  ;;  %v1361_v22 = vpop.trf.xlu1 }
 0x160   : > { %1035 = vst.msk [vmem:[%s1764_s5 + $0xf0] sm:$0xf] %vm339_vm7, %v971_v1  ;;  %v1362_v26 = vunpack.i.l.bf16 %v1361_v22 }
 0x161   : > { %v1012_v13 = vpack.c.bf16 %v1512_v10, %v1512_v10  ;;  %v996_v15 = vpack.c.bf16 %v1509_v11, %v1509_v11  ;;  %v633_v12 = vpack.c.bf16 %v1360_v6, %v1360_v6 }
 0x162   : > { %v1452_v10 = vpop.trf.xlu2 }
 0x163   : > { %1076 = vst.msk [vmem:[%s1764_s5 + $0x194] sm:$0xf] %vm339_vm7, %v1012_v13  ;;  %v1456_v52 = vunpack.i.h.bf16 %v1452_v10  ;;  %v617_v13 = vpack.c.bf16 %v1357_v7, %v1357_v7 }
 0x164   : > { %1060 = vst.msk [vmem:[%s1764_s5 + $0x154] sm:$0xf] %vm339_vm7, %v996_v15  ;;  %v1453_v15 = vunpack.i.l.bf16 %v1452_v10 }
 0x165   : > { %v988_v16 = vpack.c.bf16 %v1456_v52, %v1456_v52  ;;  %665 = vst.msk [vmem:[%s1764_s5 + $0xb4] sm:$0xf] %vm339_vm7, %v633_v12 }
 0x166   : > { %v1513_v25 = vpop.trf.xlu0  ;;  %v972_v18 = vpack.c.bf16 %v1453_v15, %v1453_v15  ;;  %649 = vst.msk [vmem:[%s1764_s5 + $0x74] sm:$0xf] %vm339_vm7, %v617_v13 }
 0x167   : > { %v1517_v8 = vunpack.i.h.bf16 %v1513_v25  ;;  %v1514_v9 = vunpack.i.l.bf16 %v1513_v25  ;;  %1052 = vst.msk [vmem:[%s1764_s5 + $0x134] sm:$0xf] %vm339_vm7, %v988_v16  ;;  %v1365_v25 = vunpack.i.h.bf16 %v1361_v22  ;;  %v1366_v40 = vpop.trf.xlu1 }
 0x168   : > { %1036 = vst.msk [vmem:[%s1764_s5 + $0xf4] sm:$0xf] %vm339_vm7, %v972_v18  ;;  %v1367_v44 = vunpack.i.l.bf16 %v1366_v40 }
 0x169   : > { %v1013_v35 = vpack.c.bf16 %v1517_v8, %v1517_v8  ;;  %v997_v36 = vpack.c.bf16 %v1514_v9, %v1514_v9  ;;  %v634_v34 = vpack.c.bf16 %v1365_v25, %v1365_v25 }
 0x16a   : > { %v1457_v8 = vpop.trf.xlu2 }
 0x16b   : > { %1077 = vst.msk [vmem:[%s1764_s5 + $0x198] sm:$0xf] %vm339_vm7, %v1013_v35  ;;  %v1461_v29 = vunpack.i.h.bf16 %v1457_v8  ;;  %v618_v35 = vpack.c.bf16 %v1362_v26, %v1362_v26 }
 0x16c   : > { %1061 = vst.msk [vmem:[%s1764_s5 + $0x158] sm:$0xf] %vm339_vm7, %v997_v36  ;;  %v1458_v36 = vunpack.i.l.bf16 %v1457_v8 }
 0x16d   : > { %v989_v39 = vpack.c.bf16 %v1461_v29, %v1461_v29  ;;  %666 = vst.msk [vmem:[%s1764_s5 + $0xb8] sm:$0xf] %vm339_vm7, %v634_v34 }
 0x16e   : > { %v1518_v41 = vpop.trf.xlu0  ;;  %v973_v37 = vpack.c.bf16 %v1458_v36, %v1458_v36  ;;  %650 = vst.msk [vmem:[%s1764_s5 + $0x78] sm:$0xf] %vm339_vm7, %v618_v35 }
 0x16f   : > { %v1522_v45 = vunpack.i.h.bf16 %v1518_v41  ;;  %v1519_v14 = vunpack.i.l.bf16 %v1518_v41  ;;  %1053 = vst.msk [vmem:[%s1764_s5 + $0x138] sm:$0xf] %vm339_vm7, %v989_v39  ;;  %v1370_v41 = vunpack.i.h.bf16 %v1366_v40 }
 0x170   : > { %1037 = vst.msk [vmem:[%s1764_s5 + $0xf8] sm:$0xf] %vm339_vm7, %v973_v37 }
 0x171   : > { %v1014_v46 = vpack.c.bf16 %v1522_v45, %v1522_v45  ;;  %v998_v32 = vpack.c.bf16 %v1519_v14, %v1519_v14  ;;  %v635_v31 = vpack.c.bf16 %v1370_v41, %v1370_v41 }
 0x172   : > { %v1462_v45 = vpop.trf.xlu2 }
 0x173   : > { %1078 = vst.msk [vmem:[%s1764_s5 + $0x19c] sm:$0xf] %vm339_vm7, %v1014_v46  ;;  %v1466_v30 = vunpack.i.h.bf16 %v1462_v45  ;;  %v619_v46 = vpack.c.bf16 %v1367_v44, %v1367_v44 }
 0x174   : > { %1062 = vst.msk [vmem:[%s1764_s5 + $0x15c] sm:$0xf] %vm339_vm7, %v998_v32  ;;  %v1463_v32 = vunpack.i.l.bf16 %v1462_v45 }
 0x175   : > { %v990_v33 = vpack.c.bf16 %v1466_v30, %v1466_v30  ;;  %667 = vst.msk [vmem:[%s1764_s5 + $0xbc] sm:$0xf] %vm339_vm7, %v635_v31 }
 0x176   : > { %v1523_v28 = vpop.trf.xlu0  ;;  %v974_v47 = vpack.c.bf16 %v1463_v32, %v1463_v32  ;;  %651 = vst.msk [vmem:[%s1764_s5 + $0x7c] sm:$0xf] %vm339_vm7, %v619_v46 }
 0x177   : > { %v1527_v53 = vunpack.i.h.bf16 %v1523_v28  ;;  %v1524_v54 = vunpack.i.l.bf16 %v1523_v28  ;;  %1054 = vst.msk [vmem:[%s1764_s5 + $0x13c] sm:$0xf] %vm339_vm7, %v990_v33 }
 0x178   : > { %1038 = vst.msk [vmem:[%s1764_s5 + $0xfc] sm:$0xf] %vm339_vm7, %v974_v47 }
 0x179   : > { %v1015_v58 = vpack.c.bf16 %v1527_v53, %v1527_v53  ;;  %v999_v59 = vpack.c.bf16 %v1524_v54, %v1524_v54 }
 0x17b   : > { %1079 = vst.msk [vmem:[%s1764_s5 + $0x1a0] sm:$0xf] %vm339_vm7, %v1015_v58 }
 0x17c   : > { %1063 = vst.msk [vmem:[%s1764_s5 + $0x160] sm:$0xf] %vm339_vm7, %v999_v59 }
 0x17e   : > { %v1528_v2 = vpop.trf.xlu0 }
 0x17f   : > { %v1532_v4 = vunpack.i.h.bf16 %v1528_v2  ;;  %v1529_v5 = vunpack.i.l.bf16 %v1528_v2 }
 0x181   : > { %v1016_v11 = vpack.c.bf16 %v1532_v4, %v1532_v4  ;;  %v1000_v51 = vpack.c.bf16 %v1529_v5, %v1529_v5 }
 0x183   : > { %1080 = vst.msk [vmem:[%s1764_s5 + $0x1a4] sm:$0xf] %vm339_vm7, %v1016_v11 }
 0x184   : > { %1064 = vst.msk [vmem:[%s1764_s5 + $0x164] sm:$0xf] %vm339_vm7, %v1000_v51 }
 0x186   : > { %v1533_v21 = vpop.trf.xlu0 }
 0x187   : > { %v1537_v23 = vunpack.i.h.bf16 %v1533_v21  ;;  %v1534_v24 = vunpack.i.l.bf16 %v1533_v21 }
 0x189   : > { %v1017_v9 = vpack.c.bf16 %v1537_v23, %v1537_v23  ;;  %v1001_v27 = vpack.c.bf16 %v1534_v24, %v1534_v24 }
 0x18b   : > { %1081 = vst.msk [vmem:[%s1764_s5 + $0x1a8] sm:$0xf] %vm339_vm7, %v1017_v9 }
 0x18c   : > { %1065 = vst.msk [vmem:[%s1764_s5 + $0x168] sm:$0xf] %vm339_vm7, %v1001_v27 }
 0x18e   : > { %v1538_v38 = vpop.trf.xlu0 }
 0x18f   : > { %v1542_v19 = vunpack.i.h.bf16 %v1538_v38  ;;  %v1539_v20 = vunpack.i.l.bf16 %v1538_v38 }
 0x191   : > { %v1018_v14 = vpack.c.bf16 %v1542_v19, %v1542_v19  ;;  %v1002_v17 = vpack.c.bf16 %v1539_v20, %v1539_v20 }
 0x193   : > { %1082 = vst.msk [vmem:[%s1764_s5 + $0x1ac] sm:$0xf] %vm339_vm7, %v1018_v14 }
 0x194   : > { %1066 = vst.msk [vmem:[%s1764_s5 + $0x16c] sm:$0xf] %vm339_vm7, %v1002_v17 }
 0x196   : > { %v1543_v48 = vpop.trf.xlu0 }
 0x197   : > { %v1547_v49 = vunpack.i.h.bf16 %v1543_v48  ;;  %v1544_v50 = vunpack.i.l.bf16 %v1543_v48 }
 0x199   : > { %v1019_v42 = vpack.c.bf16 %v1547_v49, %v1547_v49  ;;  %v1003_v28 = vpack.c.bf16 %v1544_v50, %v1544_v50 }
 0x19b   : > { %1083 = vst.msk [vmem:[%s1764_s5 + $0x1b0] sm:$0xf] %vm339_vm7, %v1019_v42 }
 0x19c   : > { %1067 = vst.msk [vmem:[%s1764_s5 + $0x170] sm:$0xf] %vm339_vm7, %v1003_v28 }
 0x19e   : > { %v1548_v43 = vpop.trf.xlu0 }
 0x19f   : > { %v1552_v53 = vunpack.i.h.bf16 %v1548_v43  ;;  %v1549_v54 = vunpack.i.l.bf16 %v1548_v43 }
 0x1a1   : > { %v1020_v55 = vpack.c.bf16 %v1552_v53, %v1552_v53  ;;  %v1004_v56 = vpack.c.bf16 %v1549_v54, %v1549_v54 }
 0x1a3   : > { %1084 = vst.msk [vmem:[%s1764_s5 + $0x1b4] sm:$0xf] %vm339_vm7, %v1020_v55 }
 0x1a4   : > { %1068 = vst.msk [vmem:[%s1764_s5 + $0x174] sm:$0xf] %vm339_vm7, %v1004_v56 }
 0x1a6   : > { %v1553_v57 = vpop.trf.xlu0 }
 0x1a7   : > { %v1557_v58 = vunpack.i.h.bf16 %v1553_v57  ;;  %v1554_v59 = vunpack.i.l.bf16 %v1553_v57 }
 0x1a9   : > { %v1021_v60 = vpack.c.bf16 %v1557_v58, %v1557_v58  ;;  %v1005_v61 = vpack.c.bf16 %v1554_v59, %v1554_v59 }
 0x1ab   : > { %1085 = vst.msk [vmem:[%s1764_s5 + $0x1b8] sm:$0xf] %vm339_vm7, %v1021_v60 }
 0x1ac   : > { %1069 = vst.msk [vmem:[%s1764_s5 + $0x178] sm:$0xf] %vm339_vm7, %v1005_v61 }
 0x1ae   : > { %v1558_v62 = vpop.trf.xlu0 }
 0x1af   : > { %v1562_v63 = vunpack.i.h.bf16 %v1558_v62  ;;  %v1559_v0 = vunpack.i.l.bf16 %v1558_v62 }
 0x1b1   : > { %v1022_v1 = vpack.c.bf16 %v1562_v63, %v1562_v63  ;;  %v1006_v2 = vpack.c.bf16 %v1559_v0, %v1559_v0 }
 0x1b3   : > { %1086 = vst.msk [vmem:[%s1764_s5 + $0x1bc] sm:$0xf] %vm339_vm7, %v1022_v1 }
 0x1b4   : > { %1070 = vst.msk [vmem:[%s1764_s5 + $0x17c] sm:$0xf] %vm339_vm7, %v1006_v2 }
 0x1b5 PF: > { %s13_s14 = sadd.s32 1, %s1585_s14   ;;  %s2003_s12 = smov %s1581_s13 }
 0x1b6   : > { %p10_p6 = scmp.ge.s32.totalorder %s13_s14, 4   ;;  %s2004_s13 = smov %s2006_s15 }
 0x1b8   :  { %12 = sbr.rel (!%p10_p6) target bundleno = 2 (0x2), region = 82 }

// kernel: protoad_forward.6
= control target key start
LH: loop header
LB: loop body
LE: loop exit
PB: predicated region body
PF: predicated region fallthrough
CT: control target
= control target key end

     0   :  { %s4952_s1 = inlined_call_operand.vmem [shape: bf16[1024,512], index: 1, kind: input, shape index: {}]   ;;  %s4953_s0 = inlined_call_operand.vmem [shape: bf16[8,1024], index: 0, kind: input, shape index: {}]   ;;  %s4954_s2 = inlined_call_operand.vmem [shape: f32[1,512], index: 2, kind: input, shape index: {}]   ;;  %s4955_s3 = inlined_call_operand.vmem [shape: bf16[8,512], index: 3, kind: output, shape index: {}]  }
   0x1   :  { %v2134_v0 = vld [vmem:[%s4952_s1 + $0xe0] sm:$0xf]  ;;  %v3074_v1 = vld [vmem:[%s4952_s1 + $0xec] sm:$0xf0] }
   0x2   :  { %v2262_v2 = vld [vmem:[%s4952_s1 + $0x1e0] sm:$0xf]  ;;  %v2135_v3 = vor.u32 %v3074_v1, %v2134_v0  ;;  %v3106_v4 = vld [vmem:[%s4952_s1 + $0x1ec] sm:$0xf0] }
   0x3   :  { %v2390_v5 = vld [vmem:[%s4952_s1 + $0x2e0] sm:$0xf]  ;;  %v3138_v6 = vld [vmem:[%s4952_s1 + $0x2ec] sm:$0xf0]  ;;  %v2263_v7 = vor.u32 %v3106_v4, %v2262_v2 }
   0x4   :  { %v2391_v8 = vor.u32 %v3138_v6, %v2390_v5  ;;  %v2518_v9 = vld [vmem:[%s4952_s1 + $0x3e0] sm:$0xf]  ;;  %v3170_v10 = vld [vmem:[%s4952_s1 + $0x3ec] sm:$0xf0]  ;;  %1592 = vmatpush.bf16.msra.mxu0 %v2135_v3 }
   0x5   :  { %v2118_v11 = vld [vmem:[%s4952_s1 + $0xc0] sm:$0xf]  ;;  %v2519_v12 = vor.u32 %v3170_v10, %v2518_v9  ;;  %v3070_v13 = vld [vmem:[%s4952_s1 + $0xcc] sm:$0xf0]  ;;  %1605 = vmatpush.bf16.msra.mxu1 %v2263_v7 }
   0x6   :  { %v2246_v14 = vld [vmem:[%s4952_s1 + $0x1c0] sm:$0xf]  ;;  %v3102_v15 = vld [vmem:[%s4952_s1 + $0x1cc] sm:$0xf0]  ;;  %1618 = vmatpush.bf16.msra.mxu2 %v2391_v8  ;;  %v2119_v16 = vor.u32 %v3070_v13, %v2118_v11 }
   0x7   :  { %v2247_v17 = vor.u32 %v3102_v15, %v2246_v14  ;;  %v2374_v18 = vld [vmem:[%s4952_s1 + $0x2c0] sm:$0xf]  ;;  %v3134_v19 = vld [vmem:[%s4952_s1 + $0x2cc] sm:$0xf0]  ;;  %1631 = vmatpush.bf16.msra.mxu3 %v2519_v12 }
   0x8   :  { %v2502_v20 = vld [vmem:[%s4952_s1 + $0x3c0] sm:$0xf]  ;;  %v2375_v21 = vor.u32 %v3134_v19, %v2374_v18  ;;  %v3166_v22 = vld [vmem:[%s4952_s1 + $0x3cc] sm:$0xf0]  ;;  %1593 = vmatpush.bf16.msra.mxu0 %v2119_v16 }
   0x9   :  { %v2102_v23 = vld [vmem:[%s4952_s1 + $0xa0] sm:$0xf]  ;;  %v3066_v24 = vld [vmem:[%s4952_s1 + $0xac] sm:$0xf0]  ;;  %v2503_v25 = vor.u32 %v3166_v22, %v2502_v20  ;;  %1606 = vmatpush.bf16.msra.mxu1 %v2247_v17 }
   0xa   :  { %v2230_v26 = vld [vmem:[%s4952_s1 + $0x1a0] sm:$0xf]  ;;  %v3098_v27 = vld [vmem:[%s4952_s1 + $0x1ac] sm:$0xf0]  ;;  %v2103_v29 = vor.u32 %v3066_v24, %v2102_v23  ;;  %1619 = vmatpush.bf16.msra.mxu2 %v2375_v21 }
   0xb   :  { %v2358_v28 = vld [vmem:[%s4952_s1 + $0x2a0] sm:$0xf]  ;;  %v3130_v30 = vld [vmem:[%s4952_s1 + $0x2ac] sm:$0xf0]  ;;  %v2231_v33 = vor.u32 %v3098_v27, %v2230_v26  ;;  %1632 = vmatpush.bf16.msra.mxu3 %v2503_v25 }
   0xc   :  { %v2486_v31 = vld [vmem:[%s4952_s1 + $0x3a0] sm:$0xf]  ;;  %v3162_v32 = vld [vmem:[%s4952_s1 + $0x3ac] sm:$0xf0]  ;;  %v2359_v34 = vor.u32 %v3130_v30, %v2358_v28  ;;  %1594 = vmatpush.bf16.msra.mxu0 %v2103_v29 }
   0xd   :  { %v2086_v35 = vld [vmem:[%s4952_s1 + $0x80] sm:$0xf]  ;;  %v3062_v36 = vld [vmem:[%s4952_s1 + $0x8c] sm:$0xf0]  ;;  %v2487_v38 = vor.u32 %v3162_v32, %v2486_v31  ;;  %1607 = vmatpush.bf16.msra.mxu1 %v2231_v33 }
   0xe   :  { %v2214_v37 = vld [vmem:[%s4952_s1 + $0x180] sm:$0xf]  ;;  %v3094_v39 = vld [vmem:[%s4952_s1 + $0x18c] sm:$0xf0]  ;;  %v2087_v44 = vor.u32 %v3062_v36, %v2086_v35  ;;  %1620 = vmatpush.bf16.msra.mxu2 %v2359_v34 }
   0xf   :  { %v2342_v40 = vld [vmem:[%s4952_s1 + $0x280] sm:$0xf]  ;;  %v3126_v41 = vld [vmem:[%s4952_s1 + $0x28c] sm:$0xf0]  ;;  %v2215_v45 = vor.u32 %v3094_v39, %v2214_v37  ;;  %1633 = vmatpush.bf16.msra.mxu3 %v2487_v38 }
  0x10   :  { %v2470_v42 = vld [vmem:[%s4952_s1 + $0x380] sm:$0xf]  ;;  %v3158_v43 = vld [vmem:[%s4952_s1 + $0x38c] sm:$0xf0]  ;;  %v2343_v46 = vor.u32 %v3126_v41, %v2342_v40  ;;  %1595 = vmatpush.bf16.msra.mxu0 %v2087_v44 }
  0x11   :  { %v2070_v47 = vld [vmem:[%s4952_s1 + $0x60] sm:$0xf]  ;;  %v3058_v48 = vld [vmem:[%s4952_s1 + $0x6c] sm:$0xf0]  ;;  %v2471_v50 = vor.u32 %v3158_v43, %v2470_v42  ;;  %1608 = vmatpush.bf16.msra.mxu1 %v2215_v45 }
  0x12   :  { %v2198_v49 = vld [vmem:[%s4952_s1 + $0x160] sm:$0xf]  ;;  %v3090_v51 = vld [vmem:[%s4952_s1 + $0x16c] sm:$0xf0]  ;;  %v2071_v56 = vor.u32 %v3058_v48, %v2070_v47  ;;  %1621 = vmatpush.bf16.msra.mxu2 %v2343_v46 }
  0x13   :  { %v2326_v52 = vld [vmem:[%s4952_s1 + $0x260] sm:$0xf]  ;;  %v3122_v53 = vld [vmem:[%s4952_s1 + $0x26c] sm:$0xf0]  ;;  %v2199_v57 = vor.u32 %v3090_v51, %v2198_v49  ;;  %1634 = vmatpush.bf16.msra.mxu3 %v2471_v50 }
  0x14   :  { %v2454_v54 = vld [vmem:[%s4952_s1 + $0x360] sm:$0xf]  ;;  %v3154_v55 = vld [vmem:[%s4952_s1 + $0x36c] sm:$0xf0]  ;;  %v2327_v58 = vor.u32 %v3122_v53, %v2326_v52  ;;  %1596 = vmatpush.bf16.msra.mxu0 %v2071_v56 }
  0x15   :  { %v2054_v59 = vld [vmem:[%s4952_s1 + $0x40] sm:$0xf]  ;;  %v3054_v60 = vld [vmem:[%s4952_s1 + $0x4c] sm:$0xf0]  ;;  %v2455_v62 = vor.u32 %v3154_v55, %v2454_v54  ;;  %1609 = vmatpush.bf16.msra.mxu1 %v2199_v57 }
  0x16   :  { %v2182_v61 = vld [vmem:[%s4952_s1 + $0x140] sm:$0xf]  ;;  %v3086_v63 = vld [vmem:[%s4952_s1 + $0x14c] sm:$0xf0]  ;;  %v2055_v4 = vor.u32 %v3054_v60, %v2054_v59  ;;  %1622 = vmatpush.bf16.msra.mxu2 %v2327_v58  ;;  %v15_v58 = vld [vmem:[%s4953_s0 + $0x8] sm:$0xff] }
  0x17   :  { %v2310_v0 = vld [vmem:[%s4952_s1 + $0x240] sm:$0xf]  ;;  %v3118_v1 = vld [vmem:[%s4952_s1 + $0x24c] sm:$0xf0]  ;;  %v2183_v5 = vor.u32 %v3086_v63, %v2182_v61  ;;  %1635 = vmatpush.bf16.msra.mxu3 %v2455_v62  ;;  %v290_v63 = vunpack.c.l.b16 %v15_v58 }
  0x18   :  { %v2438_v2 = vld [vmem:[%s4952_s1 + $0x340] sm:$0xf]  ;;  %v3150_v3 = vld [vmem:[%s4952_s1 + $0x34c] sm:$0xf0]  ;;  %v2311_v6 = vor.u32 %v3118_v1, %v2310_v0  ;;  %1597 = vmatpush.bf16.msra.mxu0 %v2055_v4  ;;  %v291_v0 = vunpack.c.h.b16 %v15_v58 }
  0x19   :  { %v2038_v7 = vld [vmem:[%s4952_s1 + $0x20] sm:$0xf]  ;;  %v3050_v8 = vld [vmem:[%s4952_s1 + $0x2c] sm:$0xf0]  ;;  %v2439_v10 = vor.u32 %v3150_v3, %v2438_v2  ;;  %1610 = vmatpush.bf16.msra.mxu1 %v2183_v5  ;;  %v3587_v4 = vpack.c.b16 %v290_v63, %v290_v63 }
  0x1a   :  { %v2166_v9 = vld [vmem:[%s4952_s1 + $0x120] sm:$0xf]  ;;  %v3082_v11 = vld [vmem:[%s4952_s1 + $0x12c] sm:$0xf0]  ;;  %v2039_v16 = vor.u32 %v3050_v8, %v2038_v7  ;;  %1623 = vmatpush.bf16.msra.mxu2 %v2311_v6  ;;  %v3592_v6 = vpack.c.b16 %v291_v0, %v291_v0 }
  0x1b   :  { %v2294_v12 = vld [vmem:[%s4952_s1 + $0x220] sm:$0xf]  ;;  %v3114_v13 = vld [vmem:[%s4952_s1 + $0x22c] sm:$0xf0]  ;;  %v2167_v19 = vor.u32 %v3082_v11, %v2166_v9  ;;  %1636 = vmatpush.bf16.msra.mxu3 %v2439_v10 }
  0x1c   :  { %v2422_v14 = vld [vmem:[%s4952_s1 + $0x320] sm:$0xf]  ;;  %v3146_v15 = vld [vmem:[%s4952_s1 + $0x32c] sm:$0xf0]  ;;  %v2295_v20 = vor.u32 %v3114_v13, %v2294_v12  ;;  %1598 = vmatpush.bf16.msra.mxu0 %v2039_v16 }
  0x1d   :  { %v2022_v17 = vld [vmem:[%s4952_s1] sm:$0xf]  ;;  %v3046_v18 = vld [vmem:[%s4952_s1 + $0xc] sm:$0xf0]  ;;  %v2423_v24 = vor.u32 %v3146_v15, %v2422_v14  ;;  %1611 = vmatpush.bf16.msra.mxu1 %v2167_v19 }
  0x1e   :  { %v2150_v21 = vld [vmem:[%s4952_s1 + $0x100] sm:$0xf]  ;;  %v3078_v22 = vld [vmem:[%s4952_s1 + $0x10c] sm:$0xf0]  ;;  %v2023_v31 = vor.u32 %v3046_v18, %v2022_v17  ;;  %1624 = vmatpush.bf16.msra.mxu2 %v2295_v20 }
  0x1f   :  { %v2278_v23 = vld [vmem:[%s4952_s1 + $0x200] sm:$0xf]  ;;  %v3110_v25 = vld [vmem:[%s4952_s1 + $0x20c] sm:$0xf0]  ;;  %v2151_v35 = vor.u32 %v3078_v22, %v2150_v21  ;;  %1637 = vmatpush.bf16.msra.mxu3 %v2423_v24 }
  0x20   :  { %v2406_v26 = vld [vmem:[%s4952_s1 + $0x300] sm:$0xf]  ;;  %v3142_v27 = vld [vmem:[%s4952_s1 + $0x30c] sm:$0xf0]  ;;  %v2279_v36 = vor.u32 %v3110_v25, %v2278_v23  ;;  %1599 = vmatpush.bf16.msra.mxu0 %v2023_v31 }
  0x21   :  { %v2646_v28 = vld [vmem:[%s4952_s1 + $0x4e0] sm:$0xf]  ;;  %v3202_v29 = vld [vmem:[%s4952_s1 + $0x4ec] sm:$0xf0]  ;;  %v2407_v39 = vor.u32 %v3142_v27, %v2406_v26  ;;  %1612 = vmatpush.bf16.msra.mxu1 %v2151_v35 }
  0x22   :  { %v2774_v30 = vld [vmem:[%s4952_s1 + $0x5e0] sm:$0xf]  ;;  %v3234_v32 = vld [vmem:[%s4952_s1 + $0x5ec] sm:$0xf0]  ;;  %v2647_v40 = vor.u32 %v3202_v29, %v2646_v28  ;;  %1625 = vmatpush.bf16.msra.mxu2 %v2279_v36 }
  0x23   :  { %v2902_v33 = vld [vmem:[%s4952_s1 + $0x6e0] sm:$0xf]  ;;  %v3266_v34 = vld [vmem:[%s4952_s1 + $0x6ec] sm:$0xf0]  ;;  %v2775_v41 = vor.u32 %v3234_v32, %v2774_v30  ;;  %1638 = vmatpush.bf16.msra.mxu3 %v2407_v39 }
  0x24   :  { %v3030_v37 = vld [vmem:[%s4952_s1 + $0x7e0] sm:$0xf]  ;;  %v3298_v38 = vld [vmem:[%s4952_s1 + $0x7ec] sm:$0xf0]  ;;  %v2903_v42 = vor.u32 %v3266_v34, %v2902_v33  ;;  %1644 = vmatpush.bf16.msrb.mxu0 %v2647_v40 }
  0x25   :  { %v2630_v43 = vld [vmem:[%s4952_s1 + $0x4c0] sm:$0xf]  ;;  %v3198_v44 = vld [vmem:[%s4952_s1 + $0x4cc] sm:$0xf0]  ;;  %v3031_v46 = vor.u32 %v3298_v38, %v3030_v37  ;;  %1657 = vmatpush.bf16.msrb.mxu1 %v2775_v41  ;;  %1626 = vmatmul.bf16.vlgmr.msra.gmra.mxu2 %v3587_v4 }
  0x26   :  { %v2758_v45 = vld [vmem:[%s4952_s1 + $0x5c0] sm:$0xf]  ;;  %v3230_v47 = vld [vmem:[%s4952_s1 + $0x5cc] sm:$0xf0]  ;;  %v2631_v52 = vor.u32 %v3198_v44, %v2630_v43  ;;  %1670 = vmatpush.bf16.msrb.mxu2 %v2903_v42  ;;  %1639 = vmatmul.bf16.vlgmr.msra.gmra.mxu3 %v3592_v6 }
  0x27   :  { %v2886_v48 = vld [vmem:[%s4952_s1 + $0x6c0] sm:$0xf]  ;;  %v3262_v49 = vld [vmem:[%s4952_s1 + $0x6cc] sm:$0xf0]  ;;  %v2759_v54 = vor.u32 %v3230_v47, %v2758_v45  ;;  %1683 = vmatpush.bf16.msrb.mxu3 %v3031_v46 }
  0x28   :  { %v3014_v50 = vld [vmem:[%s4952_s1 + $0x7c0] sm:$0xf]  ;;  %v3294_v51 = vld [vmem:[%s4952_s1 + $0x7cc] sm:$0xf0]  ;;  %v2887_v55 = vor.u32 %v3262_v49, %v2886_v48  ;;  %1645 = vmatpush.bf16.msrb.mxu0 %v2631_v52 }
  0x29   :  { %v2614_v53 = vld [vmem:[%s4952_s1 + $0x4a0] sm:$0xf]  ;;  %v3194_v56 = vld [vmem:[%s4952_s1 + $0x4ac] sm:$0xf0]  ;;  %v3015_v59 = vor.u32 %v3294_v51, %v3014_v50  ;;  %1658 = vmatpush.bf16.msrb.mxu1 %v2759_v54 }
  0x2a   :  { %v2742_v57 = vld [vmem:[%s4952_s1 + $0x5a0] sm:$0xf]  ;;  %v3226_v60 = vld [vmem:[%s4952_s1 + $0x5ac] sm:$0xf0]  ;;  %v2615_v3 = vor.u32 %v3194_v56, %v2614_v53  ;;  %1671 = vmatpush.bf16.msrb.mxu2 %v2887_v55 }
  0x2b   :  { %v2870_v61 = vld [vmem:[%s4952_s1 + $0x6a0] sm:$0xf]  ;;  %v3258_v62 = vld [vmem:[%s4952_s1 + $0x6ac] sm:$0xf0]  ;;  %v2743_v7 = vor.u32 %v3226_v60, %v2742_v57  ;;  %1684 = vmatpush.bf16.msrb.mxu3 %v3015_v59 }
  0x2c   :  { %v2998_v1 = vld [vmem:[%s4952_s1 + $0x7a0] sm:$0xf]  ;;  %v3290_v2 = vld [vmem:[%s4952_s1 + $0x7ac] sm:$0xf0]  ;;  %v2871_v8 = vor.u32 %v3258_v62, %v2870_v61  ;;  %1646 = vmatpush.bf16.msrb.mxu0 %v2615_v3  ;;  %v17_v3 = vld [vmem:[%s4953_s0 + $0x18] sm:$0xff] }
  0x2d   :  { %v14_v5 = vld [vmem:[%s4953_s0] sm:$0xff]  ;;  %v3190_v10 = vld [vmem:[%s4952_s1 + $0x48c] sm:$0xf0]  ;;  %v2999_v14 = vor.u32 %v3290_v2, %v2998_v1  ;;  %1659 = vmatpush.bf16.msrb.mxu1 %v2743_v7 }
  0x2e   :  { %v2598_v9 = vld [vmem:[%s4952_s1 + $0x480] sm:$0xf]  ;;  %v288_v12 = vunpack.c.l.b16 %v14_v5  ;;  %v289_v13 = vunpack.c.h.b16 %v14_v5  ;;  %v3222_v15 = vld [vmem:[%s4952_s1 + $0x58c] sm:$0xf0]  ;;  %1672 = vmatpush.bf16.msrb.mxu2 %v2871_v8 }
  0x2f   :  { %v2726_v11 = vld [vmem:[%s4952_s1 + $0x580] sm:$0xf]  ;;  %v3254_v17 = vld [vmem:[%s4952_s1 + $0x68c] sm:$0xf0]  ;;  %v2599_v22 = vor.u32 %v3190_v10, %v2598_v9  ;;  %1685 = vmatpush.bf16.msrb.mxu3 %v2999_v14  ;;  %v3072_v10 = vld [vmem:[%s4952_s1 + $0xe4] sm:$0xf] }
  0x30   :  { %v2854_v16 = vld [vmem:[%s4952_s1 + $0x680] sm:$0xf]  ;;  %v3286_v19 = vld [vmem:[%s4952_s1 + $0x78c] sm:$0xf0]  ;;  %v3619_v20 = vpack.c.b16 %v288_v12, %v288_v12  ;;  %v3622_v21 = vpack.c.b16 %v289_v13, %v289_v13  ;;  %v2727_v23 = vor.u32 %v3222_v15, %v2726_v11  ;;  %v2136_v11 = vld [vmem:[%s4952_s1 + $0xf0] sm:$0xf0] }
  0x31   :  { %v2982_v18 = vld [vmem:[%s4952_s1 + $0x780] sm:$0xf]  ;;  %v2855_v24 = vor.u32 %v3254_v17, %v2854_v16  ;;  %v3186_v26 = vld [vmem:[%s4952_s1 + $0x46c] sm:$0xf0]  ;;  %1647 = vmatpush.bf16.msrb.mxu0 %v2599_v22  ;;  %v3104_v12 = vld [vmem:[%s4952_s1 + $0x1e4] sm:$0xf]  ;;  %v294_v17 = vunpack.c.l.b16 %v17_v3 }
  0x32   :  { %v2582_v25 = vld [vmem:[%s4952_s1 + $0x460] sm:$0xf]  ;;  %v2983_v28 = vor.u32 %v3286_v19, %v2982_v18  ;;  %v3218_v29 = vld [vmem:[%s4952_s1 + $0x56c] sm:$0xf0]  ;;  %1600 = vmatmul.bf16.vlgmr.msra.gmra.mxu0 %v3619_v20  ;;  %1613 = vmatmul.bf16.vlgmr.msra.gmra.mxu1 %v3622_v21  ;;  %v2264_v14 = vld [vmem:[%s4952_s1 + $0x1f0] sm:$0xf0] }
  0x33   :  { %v2710_v27 = vld [vmem:[%s4952_s1 + $0x560] sm:$0xf]  ;;  %v3250_v31 = vld [vmem:[%s4952_s1 + $0x66c] sm:$0xf0]  ;;  %v2583_v34 = vor.u32 %v3186_v26, %v2582_v25  ;;  %1660 = vmatpush.bf16.msrb.mxu1 %v2727_v23  ;;  %1673 = vmatpush.bf16.msrb.mxu2 %v2855_v24  ;;  %v3136_v15 = vld [vmem:[%s4952_s1 + $0x2e4] sm:$0xf]  ;;  %v295_v25 = vunpack.c.h.b16 %v17_v3 }
  0x34   :  { %v2838_v30 = vld [vmem:[%s4952_s1 + $0x660] sm:$0xf]  ;;  %v3282_v33 = vld [vmem:[%s4952_s1 + $0x76c] sm:$0xf0]  ;;  %v2711_v35 = vor.u32 %v3218_v29, %v2710_v27  ;;  %1686 = vmatpush.bf16.msrb.mxu3 %v2983_v28  ;;  %v2392_v16 = vld [vmem:[%s4952_s1 + $0x2f0] sm:$0xf0]  ;;  %v2139_v27 = vor.u32 %v3072_v10, %v2136_v11  ;;  %v2267_v29 = vor.u32 %v3104_v12, %v2264_v14 }
  0x35   :  { %v2966_v32 = vld [vmem:[%s4952_s1 + $0x760] sm:$0xf]  ;;  %v2839_v36 = vor.u32 %v3250_v31, %v2838_v30  ;;  %v3182_v38 = vld [vmem:[%s4952_s1 + $0x44c] sm:$0xf0]  ;;  %1648 = vmatpush.bf16.msrb.mxu0 %v2583_v34  ;;  %v3168_v22 = vld [vmem:[%s4952_s1 + $0x3e4] sm:$0xf]  ;;  %v2395_v30 = vor.u32 %v3136_v15, %v2392_v16 }
  0x36   :  { %v2566_v37 = vld [vmem:[%s4952_s1 + $0x440] sm:$0xf]  ;;  %v2967_v40 = vor.u32 %v3282_v33, %v2966_v32  ;;  %v3214_v41 = vld [vmem:[%s4952_s1 + $0x54c] sm:$0xf0]  ;;  %v2520_v23 = vld [vmem:[%s4952_s1 + $0x3f0] sm:$0xf0] }
  0x37   :  { %v2694_v39 = vld [vmem:[%s4952_s1 + $0x540] sm:$0xf]  ;;  %v3246_v43 = vld [vmem:[%s4952_s1 + $0x64c] sm:$0xf0]  ;;  %v2567_v46 = vor.u32 %v3182_v38, %v2566_v37  ;;  %1661 = vmatpush.bf16.msrb.mxu1 %v2711_v35  ;;  %1674 = vmatpush.bf16.msrb.mxu2 %v2839_v36  ;;  %v3068_v31 = vld [vmem:[%s4952_s1 + $0xc4] sm:$0xf]  ;;  %v2523_v34 = vor.u32 %v3168_v22, %v2520_v23  ;;  %v3770_v38 = vpack.c.b16 %v294_v17, %v294_v17 }
  0x38   :  { %v2822_v42 = vld [vmem:[%s4952_s1 + $0x640] sm:$0xf]  ;;  %v3278_v45 = vld [vmem:[%s4952_s1 + $0x74c] sm:$0xf0]  ;;  %v2695_v47 = vor.u32 %v3214_v41, %v2694_v39  ;;  %1687 = vmatpush.bf16.msrb.mxu3 %v2967_v40  ;;  %v2120_v32 = vld [vmem:[%s4952_s1 + $0xd0] sm:$0xf0] }
  0x39   :  { %v2950_v44 = vld [vmem:[%s4952_s1 + $0x740] sm:$0xf]  ;;  %v2823_v48 = vor.u32 %v3246_v43, %v2822_v42  ;;  %v3178_v50 = vld [vmem:[%s4952_s1 + $0x42c] sm:$0xf0]  ;;  %1649 = vmatpush.bf16.msrb.mxu0 %v2567_v46  ;;  %v3100_v33 = vld [vmem:[%s4952_s1 + $0x1c4] sm:$0xf]  ;;  %v3780_v42 = vpack.c.b16 %v295_v25, %v295_v25  ;;  %v2123_v43 = vor.u32 %v3068_v31, %v2120_v32 }
  0x3a   :  { %v2550_v49 = vld [vmem:[%s4952_s1 + $0x420] sm:$0xf]  ;;  %v2951_v52 = vor.u32 %v3278_v45, %v2950_v44  ;;  %v3210_v53 = vld [vmem:[%s4952_s1 + $0x52c] sm:$0xf0]  ;;  %v2248_v35 = vld [vmem:[%s4952_s1 + $0x1d0] sm:$0xf0] }
  0x3b   :  { %v2678_v51 = vld [vmem:[%s4952_s1 + $0x520] sm:$0xf]  ;;  %v3242_v55 = vld [vmem:[%s4952_s1 + $0x62c] sm:$0xf0]  ;;  %v2551_v59 = vor.u32 %v3178_v50, %v2550_v49  ;;  %1662 = vmatpush.bf16.msrb.mxu1 %v2695_v47  ;;  %1675 = vmatpush.bf16.msrb.mxu2 %v2823_v48  ;;  %v3132_v36 = vld [vmem:[%s4952_s1 + $0x2c4] sm:$0xf]  ;;  %v2251_v45 = vor.u32 %v3100_v33, %v2248_v35 }
  0x3c   :  { %v2806_v54 = vld [vmem:[%s4952_s1 + $0x620] sm:$0xf]  ;;  %v3274_v57 = vld [vmem:[%s4952_s1 + $0x72c] sm:$0xf0]  ;;  %v2679_v63 = vor.u32 %v3210_v53, %v2678_v51  ;;  %1688 = vmatpush.bf16.msrb.mxu3 %v2951_v52  ;;  %v2376_v37 = vld [vmem:[%s4952_s1 + $0x2d0] sm:$0xf0] }
  0x3d   :  { %v2934_v56 = vld [vmem:[%s4952_s1 + $0x720] sm:$0xf]  ;;  %v3174_v60 = vld [vmem:[%s4952_s1 + $0x40c] sm:$0xf0]  ;;  %v2807_v0 = vor.u32 %v3242_v55, %v2806_v54  ;;  %1650 = vmatpush.bf16.msrb.mxu0 %v2551_v59  ;;  %v3164_v39 = vld [vmem:[%s4952_s1 + $0x3c4] sm:$0xf]  ;;  %v2379_v46 = vor.u32 %v3132_v36, %v2376_v37 }
  0x3e   :  { %v2534_v58 = vld [vmem:[%s4952_s1 + $0x400] sm:$0xf]  ;;  %v3206_v62 = vld [vmem:[%s4952_s1 + $0x50c] sm:$0xf0]  ;;  %v2935_v5 = vor.u32 %v3274_v57, %v2934_v56  ;;  %v2504_v40 = vld [vmem:[%s4952_s1 + $0x3d0] sm:$0xf0] }
  0x3f   :  { %v2662_v61 = vld [vmem:[%s4952_s1 + $0x500] sm:$0xf]  ;;  %v3238_v2 = vld [vmem:[%s4952_s1 + $0x60c] sm:$0xf0]  ;;  %v2535_v13 = vor.u32 %v3174_v60, %v2534_v58  ;;  %1663 = vmatpush.bf16.msrb.mxu1 %v2679_v63  ;;  %1676 = vmatpush.bf16.msrb.mxu2 %v2807_v0  ;;  %v3064_v47 = vld [vmem:[%s4952_s1 + $0xa4] sm:$0xf]  ;;  %v2507_v50 = vor.u32 %v3164_v39, %v2504_v40 }
  0x40   :  { %v2790_v1 = vld [vmem:[%s4952_s1 + $0x600] sm:$0xf]  ;;  %v3270_v8 = vld [vmem:[%s4952_s1 + $0x70c] sm:$0xf0]  ;;  %v2663_v18 = vor.u32 %v3206_v62, %v2662_v61  ;;  %1689 = vmatpush.bf16.msrb.mxu3 %v2935_v5  ;;  %v2104_v48 = vld [vmem:[%s4952_s1 + $0xb0] sm:$0xf0] }
  0x41   :  { %v2918_v7 = vld [vmem:[%s4952_s1 + $0x700] sm:$0xf]  ;;  %v16_v9 = vld [vmem:[%s4953_s0 + $0x10] sm:$0xff]  ;;  %v2791_v19 = vor.u32 %v3238_v2, %v2790_v1  ;;  %1651 = vmatpush.bf16.msrb.mxu0 %v2535_v13  ;;  %v3096_v49 = vld [vmem:[%s4952_s1 + $0x1a4] sm:$0xf]  ;;  %v2107_v56 = vor.u32 %v3064_v47, %v2104_v48 }
  0x42   :  { %v292_v24 = vunpack.c.l.b16 %v16_v9  ;;  %v2919_v26 = vor.u32 %v3270_v8, %v2918_v7  ;;  %v293_v28 = vunpack.c.h.b16 %v16_v9  ;;  %v2232_v51 = vld [vmem:[%s4952_s1 + $0x1b0] sm:$0xf0]  ;;  %v3128_v52 = vld [vmem:[%s4952_s1 + $0x2a4] sm:$0xf] }
  0x43   :  { %1664 = vmatpush.bf16.msrb.mxu1 %v2663_v18  ;;  %1677 = vmatpush.bf16.msrb.mxu2 %v2791_v19  ;;  %v2360_v53 = vld [vmem:[%s4952_s1 + $0x2b0] sm:$0xf0]  ;;  %v3160_v54 = vld [vmem:[%s4952_s1 + $0x3a4] sm:$0xf]  ;;  %v2235_v57 = vor.u32 %v3096_v49, %v2232_v51 }
  0x44   :  { %v3778_v41 = vpack.c.b16 %v292_v24, %v292_v24  ;;  %1690 = vmatpush.bf16.msrb.mxu3 %v2919_v26  ;;  %v3782_v44 = vpack.c.b16 %v293_v28, %v293_v28  ;;  %v2488_v55 = vld [vmem:[%s4952_s1 + $0x3b0] sm:$0xf0]  ;;  %v2363_v58 = vor.u32 %v3128_v52, %v2360_v53  ;;  %v3060_v59 = vld [vmem:[%s4952_s1 + $0x84] sm:$0xf] }
  0x45   :  { %1696 = vmatpush.bf16.msra.mxu0 %v2139_v27  ;;  %v2088_v60 = vld [vmem:[%s4952_s1 + $0x90] sm:$0xf0]  ;;  %v3092_v61 = vld [vmem:[%s4952_s1 + $0x184] sm:$0xf]  ;;  %v2491_v62 = vor.u32 %v3160_v54, %v2488_v55 }
  0x46   :  { %1678 = vmatmul.bf16.vlgmr.msrb.gmra.mxu2 %v3770_v38  ;;  %1652 = vmatmul.bf16.vlgmr.msrb.gmra.mxu0 %v3778_v41  ;;  %v2216_v63 = vld [vmem:[%s4952_s1 + $0x190] sm:$0xf0]  ;;  %v3124_v0 = vld [vmem:[%s4952_s1 + $0x284] sm:$0xf]  ;;  %v2091_v5 = vor.u32 %v3060_v59, %v2088_v60 }
  0x47   :  { %1709 = vmatpush.bf16.msra.mxu1 %v2267_v29  ;;  %1722 = vmatpush.bf16.msra.mxu2 %v2395_v30  ;;  %v2344_v1 = vld [vmem:[%s4952_s1 + $0x290] sm:$0xf0]  ;;  %v3156_v2 = vld [vmem:[%s4952_s1 + $0x384] sm:$0xf]  ;;  %v2219_v7 = vor.u32 %v3092_v61, %v2216_v63 }
  0x48   :  { %1735 = vmatpush.bf16.msra.mxu3 %v2523_v34  ;;  %1665 = vmatmul.bf16.vlgmr.msrb.gmra.mxu1 %v3782_v44  ;;  %v2472_v3 = vld [vmem:[%s4952_s1 + $0x390] sm:$0xf0]  ;;  %v2347_v8 = vor.u32 %v3124_v0, %v2344_v1  ;;  %v3056_v9 = vld [vmem:[%s4952_s1 + $0x64] sm:$0xf] }
  0x49   :  { %1691 = vmatmul.bf16.vlgmr.msrb.gmra.mxu3 %v3780_v42  ;;  %1697 = vmatpush.bf16.msra.mxu0 %v2123_v43  ;;  %v2072_v10 = vld [vmem:[%s4952_s1 + $0x70] sm:$0xf0]  ;;  %v3088_v11 = vld [vmem:[%s4952_s1 + $0x164] sm:$0xf]  ;;  %v2475_v12 = vor.u32 %v3156_v2, %v2472_v3 }
  0x4a   :  { %v2200_v13 = vld [vmem:[%s4952_s1 + $0x170] sm:$0xf0]  ;;  %v3120_v14 = vld [vmem:[%s4952_s1 + $0x264] sm:$0xf]  ;;  %v2075_v18 = vor.u32 %v3056_v9, %v2072_v10 }
  0x4b   :  { %1710 = vmatpush.bf16.msra.mxu1 %v2251_v45  ;;  %1723 = vmatpush.bf16.msra.mxu2 %v2379_v46  ;;  %v2328_v15 = vld [vmem:[%s4952_s1 + $0x270] sm:$0xf0]  ;;  %v3152_v16 = vld [vmem:[%s4952_s1 + $0x364] sm:$0xf]  ;;  %v2203_v19 = vor.u32 %v3088_v11, %v2200_v13 }
  0x4c   :  { %1736 = vmatpush.bf16.msra.mxu3 %v2507_v50  ;;  %v2456_v17 = vld [vmem:[%s4952_s1 + $0x370] sm:$0xf0]  ;;  %v2331_v22 = vor.u32 %v3120_v14, %v2328_v15  ;;  %v3052_v23 = vld [vmem:[%s4952_s1 + $0x44] sm:$0xf] }
  0x4d   :  { %1698 = vmatpush.bf16.msra.mxu0 %v2107_v56  ;;  %v2056_v24 = vld [vmem:[%s4952_s1 + $0x50] sm:$0xf0]  ;;  %v3084_v25 = vld [vmem:[%s4952_s1 + $0x144] sm:$0xf]  ;;  %v2459_v26 = vor.u32 %v3152_v16, %v2456_v17 }
  0x4e   :  { %v2184_v27 = vld [vmem:[%s4952_s1 + $0x150] sm:$0xf0]  ;;  %v3116_v28 = vld [vmem:[%s4952_s1 + $0x244] sm:$0xf]  ;;  %v2059_v32 = vor.u32 %v3052_v23, %v2056_v24 }
  0x4f   :  { %1711 = vmatpush.bf16.msra.mxu1 %v2235_v57  ;;  %1724 = vmatpush.bf16.msra.mxu2 %v2363_v58  ;;  %v2312_v29 = vld [vmem:[%s4952_s1 + $0x250] sm:$0xf0]  ;;  %v3148_v30 = vld [vmem:[%s4952_s1 + $0x344] sm:$0xf]  ;;  %v2187_v33 = vor.u32 %v3084_v25, %v2184_v27 }
  0x50   :  { %1737 = vmatpush.bf16.msra.mxu3 %v2491_v62  ;;  %v2440_v31 = vld [vmem:[%s4952_s1 + $0x350] sm:$0xf0]  ;;  %v2315_v34 = vor.u32 %v3116_v28, %v2312_v29  ;;  %v3048_v35 = vld [vmem:[%s4952_s1 + $0x24] sm:$0xf] }
  0x51   :  { %1699 = vmatpush.bf16.msra.mxu0 %v2091_v5  ;;  %v2040_v36 = vld [vmem:[%s4952_s1 + $0x30] sm:$0xf0]  ;;  %v3080_v37 = vld [vmem:[%s4952_s1 + $0x124] sm:$0xf]  ;;  %v2443_v39 = vor.u32 %v3148_v30, %v2440_v31 }
  0x52   :  { %v2168_v40 = vld [vmem:[%s4952_s1 + $0x130] sm:$0xf0]  ;;  %v3112_v43 = vld [vmem:[%s4952_s1 + $0x224] sm:$0xf]  ;;  %v2043_v48 = vor.u32 %v3048_v35, %v2040_v36 }
  0x53   :  { %1712 = vmatpush.bf16.msra.mxu1 %v2219_v7  ;;  %1725 = vmatpush.bf16.msra.mxu2 %v2347_v8  ;;  %v2296_v45 = vld [vmem:[%s4952_s1 + $0x230] sm:$0xf0]  ;;  %v3144_v46 = vld [vmem:[%s4952_s1 + $0x324] sm:$0xf]  ;;  %v2171_v51 = vor.u32 %v3080_v37, %v2168_v40 }
  0x54   :  { %1738 = vmatpush.bf16.msra.mxu3 %v2475_v12  ;;  %v2424_v47 = vld [vmem:[%s4952_s1 + $0x330] sm:$0xf0]  ;;  %v3044_v49 = vld [vmem:[%s4952_s1 + $0x4] sm:$0xf]  ;;  %v2299_v52 = vor.u32 %v3112_v43, %v2296_v45 }
  0x55   :  { %1700 = vmatpush.bf16.msra.mxu0 %v2075_v18  ;;  %v2024_v50 = vld [vmem:[%s4952_s1 + $0x10] sm:$0xf0]  ;;  %v3076_v53 = vld [vmem:[%s4952_s1 + $0x104] sm:$0xf]  ;;  %v2427_v56 = vor.u32 %v3144_v46, %v2424_v47 }
  0x56   :  { %v2152_v54 = vld [vmem:[%s4952_s1 + $0x110] sm:$0xf0]  ;;  %v3108_v55 = vld [vmem:[%s4952_s1 + $0x204] sm:$0xf]  ;;  %v2027_v63 = vor.u32 %v3044_v49, %v2024_v50 }
  0x57   :  { %1713 = vmatpush.bf16.msra.mxu1 %v2203_v19  ;;  %1726 = vmatpush.bf16.msra.mxu2 %v2331_v22  ;;  %v2280_v57 = vld [vmem:[%s4952_s1 + $0x210] sm:$0xf0]  ;;  %v3140_v58 = vld [vmem:[%s4952_s1 + $0x304] sm:$0xf]  ;;  %v2155_v3 = vor.u32 %v3076_v53, %v2152_v54 }
  0x58   :  { %1739 = vmatpush.bf16.msra.mxu3 %v2459_v26  ;;  %v2408_v59 = vld [vmem:[%s4952_s1 + $0x310] sm:$0xf0]  ;;  %v3200_v60 = vld [vmem:[%s4952_s1 + $0x4e4] sm:$0xf]  ;;  %v2283_v5 = vor.u32 %v3108_v55, %v2280_v57 }
  0x59   :  { %1701 = vmatpush.bf16.msra.mxu0 %v2059_v32  ;;  %v2648_v61 = vld [vmem:[%s4952_s1 + $0x4f0] sm:$0xf0]  ;;  %v3232_v62 = vld [vmem:[%s4952_s1 + $0x5e4] sm:$0xf]  ;;  %v2411_v9 = vor.u32 %v3140_v58, %v2408_v59 }
  0x5a   :  { %v2776_v0 = vld [vmem:[%s4952_s1 + $0x5f0] sm:$0xf0]  ;;  %v3264_v1 = vld [vmem:[%s4952_s1 + $0x6e4] sm:$0xf]  ;;  %v2651_v10 = vor.u32 %v3200_v60, %v2648_v61 }
  0x5b   :  { %1714 = vmatpush.bf16.msra.mxu1 %v2187_v33  ;;  %1727 = vmatpush.bf16.msra.mxu2 %v2315_v34  ;;  %v2904_v2 = vld [vmem:[%s4952_s1 + $0x6f0] sm:$0xf0]  ;;  %v3296_v7 = vld [vmem:[%s4952_s1 + $0x7e4] sm:$0xf]  ;;  %v2779_v11 = vor.u32 %v3232_v62, %v2776_v0 }
  0x5c   :  { %1740 = vmatpush.bf16.msra.mxu3 %v2443_v39  ;;  %v3032_v8 = vld [vmem:[%s4952_s1 + $0x7f0] sm:$0xf0]  ;;  %v2907_v12 = vor.u32 %v3264_v1, %v2904_v2  ;;  %v3196_v13 = vld [vmem:[%s4952_s1 + $0x4c4] sm:$0xf] }
  0x5d   :  { %1702 = vmatpush.bf16.msra.mxu0 %v2043_v48  ;;  %v2632_v14 = vld [vmem:[%s4952_s1 + $0x4d0] sm:$0xf0]  ;;  %v3228_v15 = vld [vmem:[%s4952_s1 + $0x5c4] sm:$0xf]  ;;  %v3035_v16 = vor.u32 %v3296_v7, %v3032_v8 }
  0x5e   :  { %v2760_v17 = vld [vmem:[%s4952_s1 + $0x5d0] sm:$0xf0]  ;;  %v3260_v18 = vld [vmem:[%s4952_s1 + $0x6c4] sm:$0xf]  ;;  %v2635_v24 = vor.u32 %v3196_v13, %v2632_v14 }
  0x5f   :  { %1715 = vmatpush.bf16.msra.mxu1 %v2171_v51  ;;  %1728 = vmatpush.bf16.msra.mxu2 %v2299_v52  ;;  %v2888_v19 = vld [vmem:[%s4952_s1 + $0x6d0] sm:$0xf0]  ;;  %v3292_v22 = vld [vmem:[%s4952_s1 + $0x7c4] sm:$0xf]  ;;  %v2763_v25 = vor.u32 %v3228_v15, %v2760_v17 }
  0x60   :  { %1741 = vmatpush.bf16.msra.mxu3 %v2427_v56  ;;  %v3016_v23 = vld [vmem:[%s4952_s1 + $0x7d0] sm:$0xf0]  ;;  %v2891_v26 = vor.u32 %v3260_v18, %v2888_v19  ;;  %v3192_v27 = vld [vmem:[%s4952_s1 + $0x4a4] sm:$0xf] }
  0x61   :  { %1703 = vmatpush.bf16.msra.mxu0 %v2027_v63  ;;  %v2616_v28 = vld [vmem:[%s4952_s1 + $0x4b0] sm:$0xf0]  ;;  %v3224_v29 = vld [vmem:[%s4952_s1 + $0x5a4] sm:$0xf]  ;;  %v3019_v30 = vor.u32 %v3292_v22, %v3016_v23 }
  0x62   :  { %v2744_v31 = vld [vmem:[%s4952_s1 + $0x5b0] sm:$0xf0]  ;;  %v3256_v32 = vld [vmem:[%s4952_s1 + $0x6a4] sm:$0xf]  ;;  %v2619_v36 = vor.u32 %v3192_v27, %v2616_v28 }
  0x63   :  { %1716 = vmatpush.bf16.msra.mxu1 %v2155_v3  ;;  %1729 = vmatpush.bf16.msra.mxu2 %v2283_v5  ;;  %v2872_v33 = vld [vmem:[%s4952_s1 + $0x6b0] sm:$0xf0]  ;;  %v3288_v34 = vld [vmem:[%s4952_s1 + $0x7a4] sm:$0xf]  ;;  %v2747_v37 = vor.u32 %v3224_v29, %v2744_v31 }
  0x64   :  { %1742 = vmatpush.bf16.msra.mxu3 %v2411_v9  ;;  %v3000_v35 = vld [vmem:[%s4952_s1 + $0x7b0] sm:$0xf0]  ;;  %1704 = vmatmul.bf16.vlgmr.msra.gmra.mxu0 %v3619_v20  ;;  %v2875_v39 = vor.u32 %v3256_v32, %v2872_v33  ;;  %v3188_v40 = vld [vmem:[%s4952_s1 + $0x484] sm:$0xf] }
  0x65   :  { %1748 = vmatpush.bf16.msrb.mxu0 %v2651_v10  ;;  %v2600_v43 = vld [vmem:[%s4952_s1 + $0x490] sm:$0xf0]  ;;  %v3220_v45 = vld [vmem:[%s4952_s1 + $0x584] sm:$0xf]  ;;  %v3003_v46 = vor.u32 %v3288_v34, %v3000_v35 }
  0x66   :  { %1730 = vmatmul.bf16.vlgmr.msra.gmra.mxu2 %v3587_v4  ;;  %1717 = vmatmul.bf16.vlgmr.msra.gmra.mxu1 %v3622_v21  ;;  %v2728_v47 = vld [vmem:[%s4952_s1 + $0x590] sm:$0xf0]  ;;  %v3252_v48 = vld [vmem:[%s4952_s1 + $0x684] sm:$0xf]  ;;  %v2603_v52 = vor.u32 %v3188_v40, %v2600_v43  ;;  %v2142_v43 = vld [vmem:[%s4952_s1 + $0xe8] sm:$0xf] }
  0x67   :  { %1761 = vmatpush.bf16.msrb.mxu1 %v2779_v11  ;;  %1774 = vmatpush.bf16.msrb.mxu2 %v2907_v12  ;;  %v2856_v49 = vld [vmem:[%s4952_s1 + $0x690] sm:$0xf0]  ;;  %v3284_v50 = vld [vmem:[%s4952_s1 + $0x784] sm:$0xf]  ;;  %v2731_v53 = vor.u32 %v3220_v45, %v2728_v47  ;;  %v3075_v45 = vld [vmem:[%s4952_s1 + $0xf4] sm:$0xf0] }
  0x68   :  { %1787 = vmatpush.bf16.msrb.mxu3 %v3035_v16  ;;  %v2984_v51 = vld [vmem:[%s4952_s1 + $0x790] sm:$0xf0]  ;;  %v2859_v54 = vor.u32 %v3252_v48, %v2856_v49  ;;  %v3184_v55 = vld [vmem:[%s4952_s1 + $0x464] sm:$0xf]  ;;  %v3107_v48 = vld [vmem:[%s4952_s1 + $0x1f4] sm:$0xf0] }
  0x69   :  { %1743 = vmatmul.bf16.vlgmr.msra.gmra.mxu3 %v3592_v6  ;;  %1749 = vmatpush.bf16.msrb.mxu0 %v2635_v24  ;;  %v2584_v56 = vld [vmem:[%s4952_s1 + $0x470] sm:$0xf0]  ;;  %v3216_v57 = vld [vmem:[%s4952_s1 + $0x564] sm:$0xf]  ;;  %v2987_v58 = vor.u32 %v3284_v50, %v2984_v51  ;;  %v2398_v49 = vld [vmem:[%s4952_s1 + $0x2e8] sm:$0xf] }
  0x6a   :  { %v2712_v59 = vld [vmem:[%s4952_s1 + $0x570] sm:$0xf0]  ;;  %v3248_v60 = vld [vmem:[%s4952_s1 + $0x664] sm:$0xf]  ;;  %v2587_v0 = vor.u32 %v3184_v55, %v2584_v56  ;;  %v3139_v50 = vld [vmem:[%s4952_s1 + $0x2f4] sm:$0xf0]  ;;  %v2143_v56 = vor.u32 %v3075_v45, %v2142_v43 }
  0x6b   :  { %1762 = vmatpush.bf16.msrb.mxu1 %v2763_v25  ;;  %1775 = vmatpush.bf16.msrb.mxu2 %v2891_v26  ;;  %v2840_v61 = vld [vmem:[%s4952_s1 + $0x670] sm:$0xf0]  ;;  %v3280_v62 = vld [vmem:[%s4952_s1 + $0x764] sm:$0xf]  ;;  %v2715_v1 = vor.u32 %v3216_v57, %v2712_v59  ;;  %v2126_v59 = vld [vmem:[%s4952_s1 + $0xc8] sm:$0xf] }
  0x6c   :  { %1788 = vmatpush.bf16.msrb.mxu3 %v3019_v30  ;;  %v2968_v63 = vld [vmem:[%s4952_s1 + $0x770] sm:$0xf0]  ;;  %v2843_v2 = vor.u32 %v3248_v60, %v2840_v61  ;;  %v3180_v3 = vld [vmem:[%s4952_s1 + $0x444] sm:$0xf]  ;;  %v3071_v60 = vld [vmem:[%s4952_s1 + $0xd4] sm:$0xf0] }
  0x6d   :  { %1750 = vmatpush.bf16.msrb.mxu0 %v2619_v36  ;;  %v2568_v5 = vld [vmem:[%s4952_s1 + $0x450] sm:$0xf0]  ;;  %v3212_v7 = vld [vmem:[%s4952_s1 + $0x544] sm:$0xf]  ;;  %v2971_v8 = vor.u32 %v3280_v62, %v2968_v63  ;;  %v2254_v61 = vld [vmem:[%s4952_s1 + $0x1c8] sm:$0xf] }
  0x6e   :  { %v2696_v9 = vld [vmem:[%s4952_s1 + $0x550] sm:$0xf0]  ;;  %v3244_v10 = vld [vmem:[%s4952_s1 + $0x644] sm:$0xf]  ;;  %v2571_v14 = vor.u32 %v3180_v3, %v2568_v5  ;;  %v3103_v63 = vld [vmem:[%s4952_s1 + $0x1d4] sm:$0xf0]  ;;  %v2127_v5 = vor.u32 %v3071_v60, %v2126_v59 }
  0x6f   :  { %1763 = vmatpush.bf16.msrb.mxu1 %v2747_v37  ;;  %1776 = vmatpush.bf16.msrb.mxu2 %v2875_v39  ;;  %v2824_v11 = vld [vmem:[%s4952_s1 + $0x650] sm:$0xf0]  ;;  %v3276_v12 = vld [vmem:[%s4952_s1 + $0x744] sm:$0xf]  ;;  %v2699_v15 = vor.u32 %v3212_v7, %v2696_v9  ;;  %v3167_v3 = vld [vmem:[%s4952_s1 + $0x3d4] sm:$0xf0]  ;;  %v2255_v7 = vor.u32 %v3103_v63, %v2254_v61 }
  0x70   :  { %1789 = vmatpush.bf16.msrb.mxu3 %v3003_v46  ;;  %v2952_v13 = vld [vmem:[%s4952_s1 + $0x750] sm:$0xf0]  ;;  %v2827_v16 = vor.u32 %v3244_v10, %v2824_v11  ;;  %v3176_v17 = vld [vmem:[%s4952_s1 + $0x424] sm:$0xf]  ;;  %v2270_v46 = vld [vmem:[%s4952_s1 + $0x1e8] sm:$0xf] }
  0x71   :  { %1751 = vmatpush.bf16.msrb.mxu0 %v2603_v52  ;;  %v2552_v18 = vld [vmem:[%s4952_s1 + $0x430] sm:$0xf0]  ;;  %v3208_v19 = vld [vmem:[%s4952_s1 + $0x524] sm:$0xf]  ;;  %v2955_v22 = vor.u32 %v3276_v12, %v2952_v13  ;;  %v2271_v57 = vor.u32 %v3107_v48, %v2270_v46  ;;  %v2110_v9 = vld [vmem:[%s4952_s1 + $0xa8] sm:$0xf] }
  0x72   :  { %v2680_v23 = vld [vmem:[%s4952_s1 + $0x530] sm:$0xf0]  ;;  %v3240_v24 = vld [vmem:[%s4952_s1 + $0x624] sm:$0xf]  ;;  %v2555_v28 = vor.u32 %v3176_v17, %v2552_v18  ;;  %v3067_v10 = vld [vmem:[%s4952_s1 + $0xb4] sm:$0xf0] }
  0x73   :  { %1764 = vmatpush.bf16.msrb.mxu1 %v2731_v53  ;;  %1777 = vmatpush.bf16.msrb.mxu2 %v2859_v54  ;;  %v2808_v25 = vld [vmem:[%s4952_s1 + $0x630] sm:$0xf0]  ;;  %v3272_v26 = vld [vmem:[%s4952_s1 + $0x724] sm:$0xf]  ;;  %v2683_v31 = vor.u32 %v3208_v19, %v2680_v23  ;;  %v2526_v53 = vld [vmem:[%s4952_s1 + $0x3e8] sm:$0xf]  ;;  %v2111_v18 = vor.u32 %v3067_v10, %v2110_v9 }
  0x74   :  { %1790 = vmatpush.bf16.msrb.mxu3 %v2987_v58  ;;  %v2936_v27 = vld [vmem:[%s4952_s1 + $0x730] sm:$0xf0]  ;;  %v3172_v29 = vld [vmem:[%s4952_s1 + $0x404] sm:$0xf]  ;;  %v2811_v32 = vor.u32 %v3240_v24, %v2808_v25  ;;  %v3171_v54 = vld [vmem:[%s4952_s1 + $0x3f4] sm:$0xf0]  ;;  %v2399_v58 = vor.u32 %v3139_v50, %v2398_v49 }
  0x75   :  { %1752 = vmatpush.bf16.msrb.mxu0 %v2587_v0  ;;  %v2536_v30 = vld [vmem:[%s4952_s1 + $0x410] sm:$0xf0]  ;;  %v3204_v33 = vld [vmem:[%s4952_s1 + $0x504] sm:$0xf]  ;;  %v2939_v36 = vor.u32 %v3272_v26, %v2936_v27  ;;  %v2527_v62 = vor.u32 %v3171_v54, %v2526_v53  ;;  %v2382_v0 = vld [vmem:[%s4952_s1 + $0x2c8] sm:$0xf] }
  0x76   :  { %v2664_v34 = vld [vmem:[%s4952_s1 + $0x510] sm:$0xf0]  ;;  %v3236_v35 = vld [vmem:[%s4952_s1 + $0x604] sm:$0xf]  ;;  %v2539_v47 = vor.u32 %v3172_v29, %v2536_v30  ;;  %v2238_v11 = vld [vmem:[%s4952_s1 + $0x1a8] sm:$0xf] }
  0x77   :  { %1765 = vmatpush.bf16.msrb.mxu1 %v2715_v1  ;;  %1778 = vmatpush.bf16.msrb.mxu2 %v2843_v2  ;;  %v2792_v37 = vld [vmem:[%s4952_s1 + $0x610] sm:$0xf0]  ;;  %v3268_v39 = vld [vmem:[%s4952_s1 + $0x704] sm:$0xf]  ;;  %v2667_v51 = vor.u32 %v3204_v33, %v2664_v34  ;;  %v3135_v1 = vld [vmem:[%s4952_s1 + $0x2d4] sm:$0xf0] }
  0x78   :  { %1791 = vmatpush.bf16.msrb.mxu3 %v2971_v8  ;;  %v2920_v40 = vld [vmem:[%s4952_s1 + $0x710] sm:$0xf0]  ;;  %v2795_v52 = vor.u32 %v3236_v35, %v2792_v37  ;;  %v2510_v2 = vld [vmem:[%s4952_s1 + $0x3c8] sm:$0xf]  ;;  %v2383_v8 = vor.u32 %v3135_v1, %v2382_v0  ;;  %v3099_v13 = vld [vmem:[%s4952_s1 + $0x1b4] sm:$0xf0] }
  0x79   :  { %1753 = vmatpush.bf16.msrb.mxu0 %v2571_v14  ;;  %v2923_v55 = vor.u32 %v3268_v39, %v2920_v40  ;;  %v2511_v12 = vor.u32 %v3167_v3, %v2510_v2  ;;  %v2366_v14 = vld [vmem:[%s4952_s1 + $0x2a8] sm:$0xf]  ;;  %v3163_v17 = vld [vmem:[%s4952_s1 + $0x3b4] sm:$0xf0]  ;;  %v2239_v19 = vor.u32 %v3099_v13, %v2238_v11 }
  0x7a   :  { %v2094_v23 = vld [vmem:[%s4952_s1 + $0x88] sm:$0xf]  ;;  %v3063_v24 = vld [vmem:[%s4952_s1 + $0x94] sm:$0xf0] }
  0x7b   :  { %1766 = vmatpush.bf16.msrb.mxu1 %v2699_v15  ;;  %1779 = vmatpush.bf16.msrb.mxu2 %v2827_v16  ;;  %v3131_v15 = vld [vmem:[%s4952_s1 + $0x2b4] sm:$0xf0]  ;;  %v2494_v16 = vld [vmem:[%s4952_s1 + $0x3a8] sm:$0xf] }
  0x7c   :  { %1792 = vmatpush.bf16.msrb.mxu3 %v2955_v22  ;;  %v2367_v22 = vor.u32 %v3131_v15, %v2366_v14  ;;  %v2222_v25 = vld [vmem:[%s4952_s1 + $0x188] sm:$0xf]  ;;  %v2495_v26 = vor.u32 %v3163_v17, %v2494_v16  ;;  %v3095_v27 = vld [vmem:[%s4952_s1 + $0x194] sm:$0xf0] }
  0x7d   :  { %1754 = vmatpush.bf16.msrb.mxu0 %v2555_v28  ;;  %v2350_v28 = vld [vmem:[%s4952_s1 + $0x288] sm:$0xf]  ;;  %v3127_v29 = vld [vmem:[%s4952_s1 + $0x294] sm:$0xf0]  ;;  %v2223_v33 = vor.u32 %v3095_v27, %v2222_v25 }
  0x7e   :  { %v2478_v30 = vld [vmem:[%s4952_s1 + $0x388] sm:$0xf]  ;;  %v2351_v34 = vor.u32 %v3127_v29, %v2350_v28  ;;  %v3091_v40 = vld [vmem:[%s4952_s1 + $0x174] sm:$0xf0] }
  0x7f   :  { %1767 = vmatpush.bf16.msrb.mxu1 %v2683_v31  ;;  %1780 = vmatpush.bf16.msrb.mxu2 %v2811_v32  ;;  %v3159_v31 = vld [vmem:[%s4952_s1 + $0x394] sm:$0xf0]  ;;  %v2095_v32 = vor.u32 %v3063_v24, %v2094_v23  ;;  %v2078_v35 = vld [vmem:[%s4952_s1 + $0x68] sm:$0xf] }
  0x80   :  { %1793 = vmatpush.bf16.msrb.mxu3 %v2939_v36  ;;  %v3059_v36 = vld [vmem:[%s4952_s1 + $0x74] sm:$0xf0]  ;;  %v2206_v37 = vld [vmem:[%s4952_s1 + $0x168] sm:$0xf]  ;;  %v2479_v39 = vor.u32 %v3159_v31, %v2478_v30 }
  0x81   :  { %1755 = vmatpush.bf16.msrb.mxu0 %v2539_v47  ;;  %v2334_v43 = vld [vmem:[%s4952_s1 + $0x268] sm:$0xf]  ;;  %v3123_v45 = vld [vmem:[%s4952_s1 + $0x274] sm:$0xf0]  ;;  %v2079_v48 = vor.u32 %v3059_v36, %v2078_v35  ;;  %v2207_v49 = vor.u32 %v3091_v40, %v2206_v37 }
  0x82   :  { %v2462_v46 = vld [vmem:[%s4952_s1 + $0x368] sm:$0xf]  ;;  %v3155_v47 = vld [vmem:[%s4952_s1 + $0x374] sm:$0xf0]  ;;  %v2335_v50 = vor.u32 %v3123_v45, %v2334_v43 }
  0x83   :  { %1768 = vmatpush.bf16.msrb.mxu1 %v2667_v51  ;;  %1781 = vmatpush.bf16.msrb.mxu2 %v2795_v52  ;;  %v2062_v51 = vld [vmem:[%s4952_s1 + $0x48] sm:$0xf]  ;;  %v3055_v52 = vld [vmem:[%s4952_s1 + $0x54] sm:$0xf0]  ;;  %v2463_v54 = vor.u32 %v3155_v47, %v2462_v46 }
  0x84   :  { %1794 = vmatpush.bf16.msrb.mxu3 %v2923_v55  ;;  %1756 = vmatmul.bf16.vlgmr.msrb.gmra.mxu0 %v3778_v41  ;;  %v2190_v53 = vld [vmem:[%s4952_s1 + $0x148] sm:$0xf]  ;;  %v3087_v55 = vld [vmem:[%s4952_s1 + $0x154] sm:$0xf0]  ;;  %v2063_v60 = vor.u32 %v3055_v52, %v2062_v51 }
  0x85   :  { %1800 = vmatpush.bf16.msra.mxu0 %v2143_v56  ;;  %v2318_v56 = vld [vmem:[%s4952_s1 + $0x248] sm:$0xf]  ;;  %v3151_v59 = vld [vmem:[%s4952_s1 + $0x354] sm:$0xf0]  ;;  %v2191_v61 = vor.u32 %v3087_v55, %v2190_v53 }
  0x86   :  { %1782 = vmatmul.bf16.vlgmr.msrb.gmra.mxu2 %v3770_v38  ;;  %1769 = vmatmul.bf16.vlgmr.msrb.gmra.mxu1 %v3782_v44  ;;  %v2046_v63 = vld [vmem:[%s4952_s1 + $0x28] sm:$0xf]  ;;  %v3051_v0 = vld [vmem:[%s4952_s1 + $0x34] sm:$0xf0] }
  0x87   :  { %1813 = vmatpush.bf16.msra.mxu1 %v2271_v57  ;;  %1826 = vmatpush.bf16.msra.mxu2 %v2399_v58  ;;  %v3119_v57 = vld [vmem:[%s4952_s1 + $0x254] sm:$0xf0]  ;;  %v2446_v58 = vld [vmem:[%s4952_s1 + $0x348] sm:$0xf]  ;;  %v2047_v10 = vor.u32 %v3051_v0, %v2046_v63 }
  0x88   :  { %1839 = vmatpush.bf16.msra.mxu3 %v2527_v62  ;;  %v2319_v62 = vor.u32 %v3119_v57, %v2318_v56  ;;  %v2174_v1 = vld [vmem:[%s4952_s1 + $0x128] sm:$0xf]  ;;  %v2447_v2 = vor.u32 %v3151_v59, %v2446_v58  ;;  %v3083_v3 = vld [vmem:[%s4952_s1 + $0x134] sm:$0xf0] }
  0x89   :  { %1795 = vmatmul.bf16.vlgmr.msrb.gmra.mxu3 %v3780_v42  ;;  %1801 = vmatpush.bf16.msra.mxu0 %v2127_v5  ;;  %v2302_v5 = vld [vmem:[%s4952_s1 + $0x228] sm:$0xf]  ;;  %v3147_v9 = vld [vmem:[%s4952_s1 + $0x334] sm:$0xf0]  ;;  %v2175_v13 = vor.u32 %v3083_v3, %v2174_v1 }
  0x8a   :  { %v2030_v11 = vld [vmem:[%s4952_s1 + $0x8] sm:$0xf]  ;;  %v3079_v16 = vld [vmem:[%s4952_s1 + $0x114] sm:$0xf0] }
  0x8b   :  { %1814 = vmatpush.bf16.msra.mxu1 %v2255_v7  ;;  %1827 = vmatpush.bf16.msra.mxu2 %v2383_v8  ;;  %v3115_v7 = vld [vmem:[%s4952_s1 + $0x234] sm:$0xf0]  ;;  %v2430_v8 = vld [vmem:[%s4952_s1 + $0x328] sm:$0xf] }
  0x8c   :  { %1840 = vmatpush.bf16.msra.mxu3 %v2511_v12  ;;  %v3047_v12 = vld [vmem:[%s4952_s1 + $0x14] sm:$0xf0]  ;;  %v2303_v14 = vor.u32 %v3115_v7, %v2302_v5  ;;  %v2158_v15 = vld [vmem:[%s4952_s1 + $0x108] sm:$0xf] }
  0x8d   :  { %1802 = vmatpush.bf16.msra.mxu0 %v2111_v18  ;;  %v2286_v17 = vld [vmem:[%s4952_s1 + $0x208] sm:$0xf]  ;;  %v2431_v18 = vor.u32 %v3147_v9, %v2430_v8  ;;  %v3143_v23 = vld [vmem:[%s4952_s1 + $0x314] sm:$0xf0]  ;;  %v2031_v27 = vor.u32 %v3047_v12, %v2030_v11  ;;  %v2159_v31 = vor.u32 %v3079_v16, %v2158_v15 }
  0x8e   :  { %v2654_v24 = vld [vmem:[%s4952_s1 + $0x4e8] sm:$0xf]  ;;  %v3203_v25 = vld [vmem:[%s4952_s1 + $0x4f4] sm:$0xf0] }
  0x8f   :  { %1815 = vmatpush.bf16.msra.mxu1 %v2239_v19  ;;  %1828 = vmatpush.bf16.msra.mxu2 %v2367_v22  ;;  %v3111_v19 = vld [vmem:[%s4952_s1 + $0x214] sm:$0xf0]  ;;  %v2414_v22 = vld [vmem:[%s4952_s1 + $0x308] sm:$0xf]  ;;  %v2655_v36 = vor.u32 %v3203_v25, %v2654_v24 }
  0x90   :  { %1841 = vmatpush.bf16.msra.mxu3 %v2495_v26  ;;  %v2782_v26 = vld [vmem:[%s4952_s1 + $0x5e8] sm:$0xf]  ;;  %v3235_v28 = vld [vmem:[%s4952_s1 + $0x5f4] sm:$0xf0]  ;;  %v2415_v35 = vor.u32 %v3143_v23, %v2414_v22  ;;  %v4436_v22 = vld [vmem:[%s4954_s2] sm:$0xf] }
  0x91   :  { %1803 = vmatpush.bf16.msra.mxu0 %v2095_v32  ;;  %v2910_v29 = vld [vmem:[%s4952_s1 + $0x6e8] sm:$0xf]  ;;  %v3267_v30 = vld [vmem:[%s4952_s1 + $0x6f4] sm:$0xf0]  ;;  %v2287_v32 = vor.u32 %v3111_v19, %v2286_v17  ;;  %v2783_v37 = vor.u32 %v3235_v28, %v2782_v26 }
  0x92   :  { %v2638_v40 = vld [vmem:[%s4952_s1 + $0x4c8] sm:$0xf]  ;;  %v3199_v43 = vld [vmem:[%s4952_s1 + $0x4d4] sm:$0xf0] }
  0x93   :  { %1816 = vmatpush.bf16.msra.mxu1 %v2223_v33  ;;  %1829 = vmatpush.bf16.msra.mxu2 %v2351_v34  ;;  %v3038_v33 = vld [vmem:[%s4952_s1 + $0x7e8] sm:$0xf]  ;;  %v3299_v34 = vld [vmem:[%s4952_s1 + $0x7f4] sm:$0xf0]  ;;  %v2639_v52 = vor.u32 %v3199_v43, %v2638_v40 }
  0x94   :  { %1842 = vmatpush.bf16.msra.mxu3 %v2479_v39  ;;  %v2911_v39 = vor.u32 %v3267_v30, %v2910_v29  ;;  %v2766_v45 = vld [vmem:[%s4952_s1 + $0x5c8] sm:$0xf]  ;;  %v3039_v46 = vor.u32 %v3299_v34, %v3038_v33  ;;  %v3231_v47 = vld [vmem:[%s4952_s1 + $0x5d4] sm:$0xf0]  ;;  %v276_v30 = vperm.slane %v4436_v22, 0 }
  0x95   :  { %1804 = vmatpush.bf16.msra.mxu0 %v2079_v48  ;;  %v2894_v48 = vld [vmem:[%s4952_s1 + $0x6c8] sm:$0xf]  ;;  %v3295_v51 = vld [vmem:[%s4952_s1 + $0x7d4] sm:$0xf0]  ;;  %v2767_v53 = vor.u32 %v3231_v47, %v2766_v45 }
  0x96   :  { %v2622_v55 = vld [vmem:[%s4952_s1 + $0x4a8] sm:$0xf]  ;;  %v3195_v56 = vld [vmem:[%s4952_s1 + $0x4b4] sm:$0xf0] }
  0x97   :  { %1817 = vmatpush.bf16.msra.mxu1 %v2207_v49  ;;  %1830 = vmatpush.bf16.msra.mxu2 %v2335_v50  ;;  %v3263_v49 = vld [vmem:[%s4952_s1 + $0x6d4] sm:$0xf0]  ;;  %v3022_v50 = vld [vmem:[%s4952_s1 + $0x7c8] sm:$0xf]  ;;  %v2623_v0 = vor.u32 %v3195_v56, %v2622_v55 }
  0x98   :  { %1843 = vmatpush.bf16.msra.mxu3 %v2463_v54  ;;  %v2895_v54 = vor.u32 %v3263_v49, %v2894_v48  ;;  %v2750_v57 = vld [vmem:[%s4952_s1 + $0x5a8] sm:$0xf]  ;;  %v3023_v58 = vor.u32 %v3295_v51, %v3022_v50  ;;  %v3227_v59 = vld [vmem:[%s4952_s1 + $0x5b4] sm:$0xf0] }
  0x99   :  { %1805 = vmatpush.bf16.msra.mxu0 %v2063_v60  ;;  %v2878_v60 = vld [vmem:[%s4952_s1 + $0x6a8] sm:$0xf]  ;;  %v3291_v63 = vld [vmem:[%s4952_s1 + $0x7b4] sm:$0xf0]  ;;  %v2751_v1 = vor.u32 %v3227_v59, %v2750_v57 }
  0x9a   :  { %v2606_v3 = vld [vmem:[%s4952_s1 + $0x488] sm:$0xf]  ;;  %v3191_v5 = vld [vmem:[%s4952_s1 + $0x494] sm:$0xf0] }
  0x9b   :  { %1818 = vmatpush.bf16.msra.mxu1 %v2191_v61  ;;  %1831 = vmatpush.bf16.msra.mxu2 %v2319_v62  ;;  %v3259_v61 = vld [vmem:[%s4952_s1 + $0x6b4] sm:$0xf0]  ;;  %v3006_v62 = vld [vmem:[%s4952_s1 + $0x7a8] sm:$0xf] }
  0x9c   :  { %1844 = vmatpush.bf16.msra.mxu3 %v2447_v2  ;;  %v2879_v2 = vor.u32 %v3259_v61, %v2878_v60  ;;  %v2734_v7 = vld [vmem:[%s4952_s1 + $0x588] sm:$0xf]  ;;  %v3007_v8 = vor.u32 %v3291_v63, %v3006_v62  ;;  %v3223_v9 = vld [vmem:[%s4952_s1 + $0x594] sm:$0xf0] }
  0x9d   :  { %1806 = vmatpush.bf16.msra.mxu0 %v2047_v10  ;;  %v2862_v10 = vld [vmem:[%s4952_s1 + $0x688] sm:$0xf]  ;;  %v3255_v11 = vld [vmem:[%s4952_s1 + $0x694] sm:$0xf0]  ;;  %v2735_v16 = vor.u32 %v3223_v9, %v2734_v7 }
  0x9e   :  { %v2990_v12 = vld [vmem:[%s4952_s1 + $0x788] sm:$0xf]  ;;  %v2863_v17 = vor.u32 %v3255_v11, %v2862_v10  ;;  %v3219_v24 = vld [vmem:[%s4952_s1 + $0x574] sm:$0xf0] }
  0x9f   :  { %1819 = vmatpush.bf16.msra.mxu1 %v2175_v13  ;;  %1832 = vmatpush.bf16.msra.mxu2 %v2303_v14  ;;  %v3287_v13 = vld [vmem:[%s4952_s1 + $0x794] sm:$0xf0]  ;;  %v2607_v14 = vor.u32 %v3191_v5, %v2606_v3  ;;  %v2590_v15 = vld [vmem:[%s4952_s1 + $0x468] sm:$0xf] }
  0xa0   :  { %1845 = vmatpush.bf16.msra.mxu3 %v2431_v18  ;;  %v3187_v18 = vld [vmem:[%s4952_s1 + $0x474] sm:$0xf0]  ;;  %v2718_v19 = vld [vmem:[%s4952_s1 + $0x568] sm:$0xf]  ;;  %v2991_v23 = vor.u32 %v3287_v13, %v2990_v12 }
  0xa1   :  { %1807 = vmatpush.bf16.msra.mxu0 %v2031_v27  ;;  %v2846_v25 = vld [vmem:[%s4952_s1 + $0x668] sm:$0xf]  ;;  %v3251_v26 = vld [vmem:[%s4952_s1 + $0x674] sm:$0xf0]  ;;  %v2591_v29 = vor.u32 %v3187_v18, %v2590_v15  ;;  %v3105_v18 = vld [vmem:[%s4952_s1 + $0x1ec] sm:$0xf] }
  0xa2   :  { %v2974_v27 = vld [vmem:[%s4952_s1 + $0x768] sm:$0xf]  ;;  %v3283_v28 = vld [vmem:[%s4952_s1 + $0x774] sm:$0xf0] }
  0xa3   :  { %1820 = vmatpush.bf16.msra.mxu1 %v2159_v31  ;;  %1833 = vmatpush.bf16.msra.mxu2 %v2287_v32  ;;  %v2719_v31 = vor.u32 %v3219_v24, %v2718_v19  ;;  %v2847_v32 = vor.u32 %v3251_v26, %v2846_v25  ;;  %v2574_v33 = vld [vmem:[%s4952_s1 + $0x448] sm:$0xf]  ;;  %v3183_v34 = vld [vmem:[%s4952_s1 + $0x454] sm:$0xf0]  ;;  %v2272_v24 = vld [vmem:[%s4952_s1 + $0x1f8] sm:$0xf0] }
  0xa4   :  { %1846 = vmatpush.bf16.msra.mxu3 %v2415_v35  ;;  %1808 = vmatmul.bf16.vlgmr.msra.gmra.mxu0 %v3619_v20  ;;  %v2702_v35 = vld [vmem:[%s4952_s1 + $0x548] sm:$0xf]  ;;  %v3247_v40 = vld [vmem:[%s4952_s1 + $0x654] sm:$0xf0]  ;;  %v2575_v47 = vor.u32 %v3183_v34, %v2574_v33  ;;  %v3137_v25 = vld [vmem:[%s4952_s1 + $0x2ec] sm:$0xf] }
  0xa5   :  { %1852 = vmatpush.bf16.msrb.mxu0 %v2655_v36  ;;  %v2975_v36 = vor.u32 %v3283_v28, %v2974_v27  ;;  %v2958_v43 = vld [vmem:[%s4952_s1 + $0x748] sm:$0xf]  ;;  %v3279_v45 = vld [vmem:[%s4952_s1 + $0x754] sm:$0xf0]  ;;  %v2400_v26 = vld [vmem:[%s4952_s1 + $0x2f8] sm:$0xf0] }
  0xa6   :  { %1834 = vmatmul.bf16.vlgmr.msra.gmra.mxu2 %v3587_v4  ;;  %1821 = vmatmul.bf16.vlgmr.msra.gmra.mxu1 %v3622_v21  ;;  %v2959_v56 = vor.u32 %v3279_v45, %v2958_v43  ;;  %v3211_v57 = vld [vmem:[%s4952_s1 + $0x534] sm:$0xf0]  ;;  %v2942_v62 = vld [vmem:[%s4952_s1 + $0x728] sm:$0xf]  ;;  %v3101_v43 = vld [vmem:[%s4952_s1 + $0x1cc] sm:$0xf] }
  0xa7   :  { %1865 = vmatpush.bf16.msrb.mxu1 %v2783_v37  ;;  %1878 = vmatpush.bf16.msrb.mxu2 %v2911_v39  ;;  %v3215_v37 = vld [vmem:[%s4952_s1 + $0x554] sm:$0xf0]  ;;  %v2830_v39 = vld [vmem:[%s4952_s1 + $0x648] sm:$0xf] }
  0xa8   :  { %1891 = vmatpush.bf16.msrb.mxu3 %v3039_v46  ;;  %v2703_v50 = vor.u32 %v3215_v37, %v2702_v35  ;;  %v2831_v51 = vor.u32 %v3247_v40, %v2830_v39  ;;  %v1627_v55 = vpop.f32.mrf.mxu2  ;;  %v3243_v59 = vld [vmem:[%s4952_s1 + $0x634] sm:$0xf0]  ;;  %v2798_v10 = vld [vmem:[%s4952_s1 + $0x608] sm:$0xf]  ;;  %v2403_v37 = vor.u32 %v3137_v25, %v2400_v26  ;;  %v3069_v39 = vld [vmem:[%s4952_s1 + $0xcc] sm:$0xf] }
  0xa9   :  { %1847 = vmatmul.bf16.vlgmr.msra.gmra.mxu3 %v3592_v6  ;;  %1853 = vmatpush.bf16.msrb.mxu0 %v2639_v52  ;;  %v2558_v52 = vld [vmem:[%s4952_s1 + $0x428] sm:$0xf]  ;;  %v1640_v61 = vpop.f32.mrf.mxu3  ;;  %v3275_v63 = vld [vmem:[%s4952_s1 + $0x734] sm:$0xf0]  ;;  %v2128_v40 = vld [vmem:[%s4952_s1 + $0xd8] sm:$0xf0] }
  0xaa   :  { %v3207_v9 = vld [vmem:[%s4952_s1 + $0x514] sm:$0xf0]  ;;  %v2943_v11 = vor.u32 %v3275_v63, %v2942_v62  ;;  %v2926_v13 = vld [vmem:[%s4952_s1 + $0x708] sm:$0xf]  ;;  %v2496_v62 = vld [vmem:[%s4952_s1 + $0x3b8] sm:$0xf0] }
  0xab   :  { %1866 = vmatpush.bf16.msrb.mxu1 %v2767_v53  ;;  %1879 = vmatpush.bf16.msrb.mxu2 %v2895_v54  ;;  %v3179_v53 = vld [vmem:[%s4952_s1 + $0x434] sm:$0xf0]  ;;  %v2686_v54 = vld [vmem:[%s4952_s1 + $0x528] sm:$0xf]  ;;  %v2208_v26 = vld [vmem:[%s4952_s1 + $0x178] sm:$0xf0] }
  0xac   :  { %1892 = vmatpush.bf16.msrb.mxu3 %v3023_v58  ;;  %v2814_v58 = vld [vmem:[%s4952_s1 + $0x628] sm:$0xf]  ;;  %v2687_v5 = vor.u32 %v3211_v57, %v2686_v54  ;;  %v3239_v12 = vld [vmem:[%s4952_s1 + $0x614] sm:$0xf0]  ;;  %v3065_v54 = vld [vmem:[%s4952_s1 + $0xac] sm:$0xf] }
  0xad   :  { %1854 = vmatpush.bf16.msrb.mxu0 %v2623_v0  ;;  %v2559_v0 = vor.u32 %v3179_v53, %v2558_v52  ;;  %v2815_v7 = vor.u32 %v3243_v59, %v2814_v58  ;;  %v2240_v58 = vld [vmem:[%s4952_s1 + $0x1b8] sm:$0xf0]  ;;  %v3129_v59 = vld [vmem:[%s4952_s1 + $0x2ac] sm:$0xf] }
  0xaf   :  { %1867 = vmatpush.bf16.msrb.mxu1 %v2751_v1  ;;  %1880 = vmatpush.bf16.msrb.mxu2 %v2879_v2  ;;  %v1601_v46 = vpop.f32.mrf.mxu0  ;;  %v1614_v49 = vpop.f32.mrf.mxu1  ;;  %v2542_v1 = vld [vmem:[%s4952_s1 + $0x408] sm:$0xf]  ;;  %v3175_v2 = vld [vmem:[%s4952_s1 + $0x414] sm:$0xf0] }
  0xb0   :  { %1893 = vmatpush.bf16.msrb.mxu3 %v3007_v8  ;;  %v1602_v48 = vadd.f32 %v1601_v46, %v276_v30  ;;  %v2670_v8 = vld [vmem:[%s4952_s1 + $0x508] sm:$0xf]  ;;  %v3169_v30 = vld [vmem:[%s4952_s1 + $0x3ec] sm:$0xf]  ;;  %v2256_v46 = vld [vmem:[%s4952_s1 + $0x1d8] sm:$0xf0] }
  0xb1   :  { %1855 = vmatpush.bf16.msrb.mxu0 %v2607_v14  ;;  %v3271_v14 = vld [vmem:[%s4952_s1 + $0x714] sm:$0xf0]  ;;  %v2671_v28 = vor.u32 %v3207_v9, %v2670_v8  ;;  %v1642_v35 = vpop.f32.mrf.mxu3  ;;  %v2259_v52 = vor.u32 %v3101_v43, %v2256_v46  ;;  %v2224_v8 = vld [vmem:[%s4952_s1 + $0x198] sm:$0xf0]  ;;  %v3125_v9 = vld [vmem:[%s4952_s1 + $0x28c] sm:$0xf] }
  0xb2   :  { %v1615_v60 = vadd.f32 %v1614_v49, %v1602_v48  ;;  %v2927_v33 = vor.u32 %v3271_v14, %v2926_v13  ;;  %v2384_v48 = vld [vmem:[%s4952_s1 + $0x2d8] sm:$0xf0]  ;;  %v3165_v49 = vld [vmem:[%s4952_s1 + $0x3cc] sm:$0xf] }
  0xb3   :  { %1868 = vmatpush.bf16.msrb.mxu1 %v2735_v16  ;;  %1881 = vmatpush.bf16.msrb.mxu2 %v2863_v17  ;;  %v3073_v16 = vld [vmem:[%s4952_s1 + $0xec] sm:$0xf]  ;;  %v2144_v17 = vld [vmem:[%s4952_s1 + $0xf8] sm:$0xf0] }
  0xb4   :  { %1894 = vmatpush.bf16.msrb.mxu3 %v2991_v23  ;;  %v1628_v3 = vadd.f32 %v1627_v55, %v1615_v60  ;;  %v2543_v23 = vor.u32 %v3175_v2, %v2542_v1  ;;  %v2147_v34 = vor.u32 %v3073_v16, %v2144_v17  ;;  %v2112_v55 = vld [vmem:[%s4952_s1 + $0xb8] sm:$0xf0]  ;;  %v3061_v2 = vld [vmem:[%s4952_s1 + $0x8c] sm:$0xf] }
  0xb5   :  { %1856 = vmatpush.bf16.msrb.mxu0 %v2591_v29  ;;  %v2799_v29 = vor.u32 %v3239_v12, %v2798_v10  ;;  %v2368_v60 = vld [vmem:[%s4952_s1 + $0x2b8] sm:$0xf0]  ;;  %v2115_v63 = vor.u32 %v3065_v54, %v2112_v55  ;;  %v3117_v43 = vld [vmem:[%s4952_s1 + $0x24c] sm:$0xf] }
  0xb6   :  { %v4526_v15 = vadd.f32 %v1640_v61, %v1628_v3  ;;  %v3161_v61 = vld [vmem:[%s4952_s1 + $0x3ac] sm:$0xf]  ;;  %v2371_v1 = vor.u32 %v3129_v59, %v2368_v60  ;;  %v2096_v3 = vld [vmem:[%s4952_s1 + $0x98] sm:$0xf0] }
  0xb7   :  { %1869 = vmatpush.bf16.msrb.mxu1 %v2719_v31  ;;  %1882 = vmatpush.bf16.msrb.mxu2 %v2847_v32  ;;  %v1603_v19 = vpop.f32.mrf.mxu0  ;;  %v1616_v27 = vpop.f32.mrf.mxu1  ;;  %v2528_v31 = vld [vmem:[%s4952_s1 + $0x3f8] sm:$0xf0]  ;;  %v2099_v13 = vor.u32 %v3061_v2, %v2096_v3  ;;  %v3081_v55 = vld [vmem:[%s4952_s1 + $0x12c] sm:$0xf] }
  0xb8   :  { %1895 = vmatpush.bf16.msrb.mxu3 %v2975_v36  ;;  %v1629_v32 = vpop.f32.mrf.mxu2  ;;  %v2275_v36 = vor.u32 %v3105_v18, %v2272_v24  ;;  %v2531_v45 = vor.u32 %v3169_v30, %v2528_v31  ;;  %v2352_v10 = vld [vmem:[%s4952_s1 + $0x298] sm:$0xf0]  ;;  %v3057_v18 = vld [vmem:[%s4952_s1 + $0x6c] sm:$0xf] }
  0xb9   :  { %1857 = vmatpush.bf16.msrb.mxu0 %v2575_v47  ;;  %v3133_v47 = vld [vmem:[%s4952_s1 + $0x2cc] sm:$0xf]  ;;  %v2480_v12 = vld [vmem:[%s4952_s1 + $0x398] sm:$0xf0]  ;;  %v2355_v17 = vor.u32 %v3125_v9, %v2352_v10 }
  0xba   :  { %v2387_v53 = vor.u32 %v3133_v47, %v2384_v48  ;;  %v2080_v19 = vld [vmem:[%s4952_s1 + $0x78] sm:$0xf0]  ;;  %v3121_v27 = vld [vmem:[%s4952_s1 + $0x26c] sm:$0xf] }
  0xbb   :  { %1870 = vmatpush.bf16.msrb.mxu1 %v2703_v50  ;;  %1883 = vmatpush.bf16.msrb.mxu2 %v2831_v51  ;;  %v2512_v50 = vld [vmem:[%s4952_s1 + $0x3d8] sm:$0xf0]  ;;  %v2131_v51 = vor.u32 %v3069_v39, %v2128_v40  ;;  %v2083_v31 = vor.u32 %v3057_v18, %v2080_v19  ;;  %v3149_v47 = vld [vmem:[%s4952_s1 + $0x34c] sm:$0xf] }
  0xbc   :  { %1896 = vmatpush.bf16.msrb.mxu3 %v2959_v56  ;;  %v3097_v56 = vld [vmem:[%s4952_s1 + $0x1ac] sm:$0xf]  ;;  %v2515_v57 = vor.u32 %v3165_v49, %v2512_v50  ;;  %v2464_v30 = vld [vmem:[%s4952_s1 + $0x378] sm:$0xf0] }
  0xbd   :  { %1858 = vmatpush.bf16.msrb.mxu0 %v2559_v0  ;;  %v2243_v0 = vor.u32 %v3097_v56, %v2240_v58  ;;  %v2064_v35 = vld [vmem:[%s4952_s1 + $0x58] sm:$0xf0]  ;;  %v3113_v59 = vld [vmem:[%s4952_s1 + $0x22c] sm:$0xf] }
  0xbe   :  { %v2192_v40 = vld [vmem:[%s4952_s1 + $0x158] sm:$0xf0]  ;;  %v3233_v19 = vld [vmem:[%s4952_s1 + $0x5ec] sm:$0xf] }
  0xbf   :  { %1871 = vmatpush.bf16.msrb.mxu1 %v2687_v5  ;;  %1884 = vmatpush.bf16.msrb.mxu2 %v2815_v7  ;;  %v3093_v5 = vld [vmem:[%s4952_s1 + $0x18c] sm:$0xf]  ;;  %v2499_v7 = vor.u32 %v3161_v61, %v2496_v62  ;;  %v2448_v48 = vld [vmem:[%s4952_s1 + $0x358] sm:$0xf0] }
  0xc0   :  { %1897 = vmatpush.bf16.msrb.mxu3 %v2943_v11  ;;  %v3157_v11 = vld [vmem:[%s4952_s1 + $0x38c] sm:$0xf]  ;;  %v2227_v16 = vor.u32 %v3093_v5, %v2224_v8  ;;  %v2048_v54 = vld [vmem:[%s4952_s1 + $0x38] sm:$0xf0] }
  0xc1   :  { %1859 = vmatpush.bf16.msrb.mxu0 %v2543_v23  ;;  %v3089_v23 = vld [vmem:[%s4952_s1 + $0x16c] sm:$0xf]  ;;  %v2483_v25 = vor.u32 %v3157_v11, %v2480_v12  ;;  %v2176_v58 = vld [vmem:[%s4952_s1 + $0x138] sm:$0xf0] }
  0xc2   :  { %v2211_v32 = vor.u32 %v3089_v23, %v2208_v26  ;;  %v2304_v60 = vld [vmem:[%s4952_s1 + $0x238] sm:$0xf0]  ;;  %v3145_v61 = vld [vmem:[%s4952_s1 + $0x32c] sm:$0xf]  ;;  %v2179_v2 = vor.u32 %v3081_v55, %v2176_v58 }
  0xc3   :  { %1872 = vmatpush.bf16.msrb.mxu1 %v2671_v28  ;;  %1885 = vmatpush.bf16.msrb.mxu2 %v2799_v29  ;;  %v4628_v14 = vpop.f32.mrf.mxu0  ;;  %v2336_v28 = vld [vmem:[%s4952_s1 + $0x278] sm:$0xf0]  ;;  %v3153_v29 = vld [vmem:[%s4952_s1 + $0x36c] sm:$0xf]  ;;  %v2307_v3 = vor.u32 %v3113_v59, %v2304_v60 }
  0xc4   :  { %1898 = vmatpush.bf16.msrb.mxu3 %v2927_v33  ;;  %1860 = vmatmul.bf16.vlgmr.msrb.gmra.mxu0 %v3778_v41  ;;  %v2339_v33 = vor.u32 %v3121_v27, %v2336_v28  ;;  %v2467_v39 = vor.u32 %v3153_v29, %v2464_v30  ;;  %v2432_v62 = vld [vmem:[%s4952_s1 + $0x338] sm:$0xf0]  ;;  %v3077_v5 = vld [vmem:[%s4952_s1 + $0x10c] sm:$0xf] }
  0xc5   :  { %1904 = vmatpush.bf16.msra.mxu0 %v2147_v34  ;;  %v4639_v24 = vpop.f32.mrf.mxu1  ;;  %v3053_v34 = vld [vmem:[%s4952_s1 + $0x4c] sm:$0xf]  ;;  %v2435_v10 = vor.u32 %v3145_v61, %v2432_v62  ;;  %v2288_v11 = vld [vmem:[%s4952_s1 + $0x218] sm:$0xf0] }
  0xc6   :  { %1886 = vmatmul.bf16.vlgmr.msrb.gmra.mxu2 %v3770_v38  ;;  %1873 = vmatmul.bf16.vlgmr.msrb.gmra.mxu1 %v3782_v44  ;;  %v2067_v49 = vor.u32 %v3053_v34, %v2064_v35  ;;  %v3109_v8 = vld [vmem:[%s4952_s1 + $0x20c] sm:$0xf]  ;;  %v2656_v18 = vld [vmem:[%s4952_s1 + $0x4f8] sm:$0xf0] }
  0xc7   :  { %1917 = vmatpush.bf16.msra.mxu1 %v2275_v36  ;;  %1930 = vmatpush.bf16.msra.mxu2 %v2403_v37  ;;  %v3085_v36 = vld [vmem:[%s4952_s1 + $0x14c] sm:$0xf]  ;;  %v2912_v27 = vld [vmem:[%s4952_s1 + $0x6f8] sm:$0xf0]  ;;  %v2291_v29 = vor.u32 %v3109_v8, %v2288_v11 }
  0xc8   :  { %1943 = vmatpush.bf16.msra.mxu3 %v2531_v45  ;;  %v2320_v45 = vld [vmem:[%s4952_s1 + $0x258] sm:$0xf0]  ;;  %v3141_v12 = vld [vmem:[%s4952_s1 + $0x30c] sm:$0xf] }
  0xc9   :  { %1899 = vmatmul.bf16.vlgmr.msrb.gmra.mxu3 %v3780_v42  ;;  %1905 = vmatpush.bf16.msra.mxu0 %v2131_v51  ;;  %v4665_v37 = vpop.f32.mrf.mxu2  ;;  %v2195_v51 = vor.u32 %v3085_v36, %v2192_v40  ;;  %v3265_v26 = vld [vmem:[%s4952_s1 + $0x6ec] sm:$0xf]  ;;  %v2624_v55 = vld [vmem:[%s4952_s1 + $0x4b8] sm:$0xf0] }
  0xca   :  { %v3297_v30 = vld [vmem:[%s4952_s1 + $0x7ec] sm:$0xf]  ;;  %v2915_v35 = vor.u32 %v3265_v26, %v2912_v27  ;;  %v2752_v58 = vld [vmem:[%s4952_s1 + $0x5b8] sm:$0xf0] }
  0xcb   :  { %1918 = vmatpush.bf16.msra.mxu1 %v2259_v52  ;;  %1931 = vmatpush.bf16.msra.mxu2 %v2387_v53  ;;  %v1655_v50 = vpop.f32.mrf.mxu0  ;;  %v2323_v52 = vor.u32 %v3117_v43, %v2320_v45  ;;  %v3049_v53 = vld [vmem:[%s4952_s1 + $0x2c] sm:$0xf]  ;;  %v2768_v45 = vld [vmem:[%s4952_s1 + $0x5d8] sm:$0xf0] }
  0xcc   :  { %1944 = vmatpush.bf16.msra.mxu3 %v2515_v57  ;;  %v4676_v46 = vpop.f32.mrf.mxu3  ;;  %v2451_v57 = vor.u32 %v3149_v47, %v2448_v48  ;;  %v3197_v36 = vld [vmem:[%s4952_s1 + $0x4cc] sm:$0xf]  ;;  %v2896_v48 = vld [vmem:[%s4952_s1 + $0x6d8] sm:$0xf0] }
  0xcd   :  { %1906 = vmatpush.bf16.msra.mxu0 %v2115_v63  ;;  %v1668_v56 = vpop.f32.mrf.mxu1  ;;  %v2051_v63 = vor.u32 %v3049_v53, %v2048_v54  ;;  %v3229_v40 = vld [vmem:[%s4952_s1 + $0x5cc] sm:$0xf]  ;;  %v3024_v50 = vld [vmem:[%s4952_s1 + $0x7d8] sm:$0xf0] }
  0xce   :  { %v3261_v47 = vld [vmem:[%s4952_s1 + $0x6cc] sm:$0xf]  ;;  %v2880_v60 = vld [vmem:[%s4952_s1 + $0x6b8] sm:$0xf0] }
  0xcf   :  { %1919 = vmatpush.bf16.msra.mxu1 %v2243_v0  ;;  %1932 = vmatpush.bf16.msra.mxu2 %v2371_v1  ;;  %v3045_v0 = vld [vmem:[%s4952_s1 + $0xc] sm:$0xf]  ;;  %v2032_v1 = vld [vmem:[%s4952_s1 + $0x18] sm:$0xf0]  ;;  %v2899_v53 = vor.u32 %v3261_v47, %v2896_v48 }
  0xd0   :  { %1945 = vmatpush.bf16.msra.mxu3 %v2499_v7  ;;  %v2160_v7 = vld [vmem:[%s4952_s1 + $0x118] sm:$0xf0]  ;;  %v2035_v23 = vor.u32 %v3045_v0, %v2032_v1  ;;  %v3193_v54 = vld [vmem:[%s4952_s1 + $0x4ac] sm:$0xf] }
  0xd1   :  { %1907 = vmatpush.bf16.msra.mxu0 %v2099_v13  ;;  %v1681_v9 = vpop.f32.mrf.mxu2  ;;  %v2416_v13 = vld [vmem:[%s4952_s1 + $0x318] sm:$0xf0]  ;;  %v2163_v28 = vor.u32 %v3077_v5, %v2160_v7  ;;  %v3225_v56 = vld [vmem:[%s4952_s1 + $0x5ac] sm:$0xf]  ;;  %v2627_v62 = vor.u32 %v3193_v54, %v2624_v55 }
  0xd2   :  { %v3257_v59 = vld [vmem:[%s4952_s1 + $0x6ac] sm:$0xf]  ;;  %v2608_v1 = vld [vmem:[%s4952_s1 + $0x498] sm:$0xf0] }
  0xd3   :  { %1920 = vmatpush.bf16.msra.mxu1 %v2227_v16  ;;  %1933 = vmatpush.bf16.msra.mxu2 %v2355_v17  ;;  %v3201_v17 = vld [vmem:[%s4952_s1 + $0x4ec] sm:$0xf]  ;;  %v2883_v0 = vor.u32 %v3257_v59, %v2880_v60  ;;  %v2864_v5 = vld [vmem:[%s4952_s1 + $0x698] sm:$0xf0] }
  0xd4   :  { %1946 = vmatpush.bf16.msra.mxu3 %v2483_v25  ;;  %v1694_v16 = vpop.f32.mrf.mxu3  ;;  %v2784_v25 = vld [vmem:[%s4952_s1 + $0x5f8] sm:$0xf0]  ;;  %v3289_v61 = vld [vmem:[%s4952_s1 + $0x7ac] sm:$0xf] }
  0xd5   :  { %1908 = vmatpush.bf16.msra.mxu0 %v2083_v31  ;;  %v3040_v31 = vld [vmem:[%s4952_s1 + $0x7f8] sm:$0xf0]  ;;  %v2787_v34 = vor.u32 %v3233_v19, %v2784_v25  ;;  %v3285_v7 = vld [vmem:[%s4952_s1 + $0x78c] sm:$0xf] }
  0xd6   :  { %v3043_v43 = vor.u32 %v3297_v30, %v3040_v31  ;;  %v2992_v8 = vld [vmem:[%s4952_s1 + $0x798] sm:$0xf0]  ;;  %v3249_v25 = vld [vmem:[%s4952_s1 + $0x66c] sm:$0xf] }
  0xd7   :  { %1921 = vmatpush.bf16.msra.mxu1 %v2211_v32  ;;  %1934 = vmatpush.bf16.msra.mxu2 %v2339_v33  ;;  %v2419_v32 = vor.u32 %v3141_v12, %v2416_v13  ;;  %v2659_v33 = vor.u32 %v3201_v17, %v2656_v18  ;;  %v3185_v13 = vld [vmem:[%s4952_s1 + $0x46c] sm:$0xf]  ;;  %v2592_v16 = vld [vmem:[%s4952_s1 + $0x478] sm:$0xf0]  ;;  %v2995_v19 = vor.u32 %v3285_v7, %v2992_v8 }
  0xd8   :  { %1947 = vmatpush.bf16.msra.mxu3 %v2467_v39  ;;  %v2640_v39 = vld [vmem:[%s4952_s1 + $0x4d8] sm:$0xf0]  ;;  %v3217_v17 = vld [vmem:[%s4952_s1 + $0x56c] sm:$0xf] }
  0xd9   :  { %1909 = vmatpush.bf16.msra.mxu0 %v2067_v49  ;;  %v3293_v49 = vld [vmem:[%s4952_s1 + $0x7cc] sm:$0xf]  ;;  %v2848_v26 = vld [vmem:[%s4952_s1 + $0x678] sm:$0xf0] }
  0xda   :  { %v3281_v27 = vld [vmem:[%s4952_s1 + $0x76c] sm:$0xf]  ;;  %v2851_v31 = vor.u32 %v3249_v25, %v2848_v26  ;;  %v2960_v48 = vld [vmem:[%s4952_s1 + $0x758] sm:$0xf0]  ;;  %v1654_v26 = vadd.f32 %v4628_v14, %v4526_v15 }
  0xdb   :  { %1922 = vmatpush.bf16.msra.mxu1 %v2195_v51  ;;  %1935 = vmatpush.bf16.msra.mxu2 %v2323_v52  ;;  %v2643_v51 = vor.u32 %v3197_v36, %v2640_v39  ;;  %v2771_v52 = vor.u32 %v3229_v40, %v2768_v45  ;;  %v2704_v39 = vld [vmem:[%s4952_s1 + $0x558] sm:$0xf0]  ;;  %v3245_v40 = vld [vmem:[%s4952_s1 + $0x64c] sm:$0xf] }
  0xdc   :  { %1948 = vmatpush.bf16.msra.mxu3 %v2451_v57  ;;  %v3027_v57 = vor.u32 %v3293_v49, %v3024_v50  ;;  %v3277_v47 = vld [vmem:[%s4952_s1 + $0x74c] sm:$0xf]  ;;  %v2560_v54 = vld [vmem:[%s4952_s1 + $0x438] sm:$0xf0] }
  0xdd   :  { %1910 = vmatpush.bf16.msra.mxu0 %v2051_v63  ;;  %v2755_v63 = vor.u32 %v3225_v56, %v2752_v58  ;;  %v3209_v55 = vld [vmem:[%s4952_s1 + $0x52c] sm:$0xf]  ;;  %v2688_v58 = vld [vmem:[%s4952_s1 + $0x538] sm:$0xf0] }
  0xde   :  { %v3241_v59 = vld [vmem:[%s4952_s1 + $0x62c] sm:$0xf]  ;;  %v2816_v60 = vld [vmem:[%s4952_s1 + $0x638] sm:$0xf0] }
  0xdf   :  { %1923 = vmatpush.bf16.msra.mxu1 %v2179_v2  ;;  %1936 = vmatpush.bf16.msra.mxu2 %v2307_v3  ;;  %v3253_v3 = vld [vmem:[%s4952_s1 + $0x68c] sm:$0xf]  ;;  %v2800_v8 = vld [vmem:[%s4952_s1 + $0x618] sm:$0xf0] }
  0xe0   :  { %1949 = vmatpush.bf16.msra.mxu3 %v2435_v10  ;;  %v2867_v12 = vor.u32 %v3253_v3, %v2864_v5  ;;  %v2672_v5 = vld [vmem:[%s4952_s1 + $0x518] sm:$0xf0]  ;;  %v3237_v7 = vld [vmem:[%s4952_s1 + $0x60c] sm:$0xf] }
  0xe1   :  { %1911 = vmatpush.bf16.msra.mxu0 %v2035_v23  ;;  %v4832_v10 = vpop.f32.mrf.mxu0  ;;  %v2720_v23 = vld [vmem:[%s4952_s1 + $0x578] sm:$0xf0] }
  0xe2   :  { %v2723_v30 = vor.u32 %v3217_v17, %v2720_v23 }
  0xe3   :  { %1924 = vmatpush.bf16.msra.mxu1 %v2163_v28  ;;  %1937 = vmatpush.bf16.msra.mxu2 %v2291_v29  ;;  %v4843_v18 = vpop.f32.mrf.mxu1  ;;  %v2976_v28 = vld [vmem:[%s4952_s1 + $0x778] sm:$0xf0]  ;;  %v2595_v29 = vor.u32 %v3185_v13, %v2592_v16 }
  0xe4   :  { %1950 = vmatpush.bf16.msra.mxu3 %v2419_v32  ;;  %1912 = vmatmul.bf16.vlgmr.msra.gmra.mxu0 %v3619_v20  ;;  %v3221_v20 = vld [vmem:[%s4952_s1 + $0x58c] sm:$0xf]  ;;  %v2979_v36 = vor.u32 %v3281_v27, %v2976_v28  ;;  %v2928_v13 = vld [vmem:[%s4952_s1 + $0x718] sm:$0xf0]  ;;  %v1667_v28 = vadd.f32 %v4639_v24, %v1654_v26 }
  0xe5   :  { %1956 = vmatpush.bf16.msrb.mxu0 %v2659_v33  ;;  %v3181_v32 = vld [vmem:[%s4952_s1 + $0x44c] sm:$0xf]  ;;  %v2576_v33 = vld [vmem:[%s4952_s1 + $0x458] sm:$0xf0] }
  0xe6   :  { %1938 = vmatmul.bf16.vlgmr.msra.gmra.mxu2 %v3587_v4  ;;  %v3008_v4 = vld [vmem:[%s4952_s1 + $0x7b8] sm:$0xf0]  ;;  %1925 = vmatmul.bf16.vlgmr.msra.gmra.mxu1 %v3622_v21  ;;  %v2579_v49 = vor.u32 %v3181_v32, %v2576_v33 }
  0xe7   :  { %1969 = vmatpush.bf16.msrb.mxu1 %v2787_v34  ;;  %1982 = vmatpush.bf16.msrb.mxu2 %v2915_v35  ;;  %v3011_v2 = vor.u32 %v3289_v61, %v3008_v4  ;;  %v2736_v21 = vld [vmem:[%s4952_s1 + $0x598] sm:$0xf0]  ;;  %v3213_v34 = vld [vmem:[%s4952_s1 + $0x54c] sm:$0xf] }
  0xe8   :  { %1995 = vmatpush.bf16.msrb.mxu3 %v3043_v43  ;;  %v2739_v11 = vor.u32 %v3221_v20, %v2736_v21  ;;  %v2832_v43 = vld [vmem:[%s4952_s1 + $0x658] sm:$0xf0]  ;;  %v3273_v61 = vld [vmem:[%s4952_s1 + $0x72c] sm:$0xf] }
  0xe9   :  { %1951 = vmatmul.bf16.vlgmr.msra.gmra.mxu3 %v3592_v6  ;;  %1957 = vmatpush.bf16.msrb.mxu0 %v2643_v51  ;;  %v3189_v6 = vld [vmem:[%s4952_s1 + $0x48c] sm:$0xf]  ;;  %v1731_v35 = vpop.f32.mrf.mxu2  ;;  %v1707_v50 = vpop.f32.mrf.mxu0  ;;  %v2707_v51 = vor.u32 %v3213_v34, %v2704_v39  ;;  %v2944_v4 = vld [vmem:[%s4952_s1 + $0x738] sm:$0xf0] }
  0xea   :  { %v2611_v9 = vor.u32 %v3189_v6, %v2608_v1  ;;  %v2819_v6 = vor.u32 %v3241_v59, %v2816_v60  ;;  %v3173_v1 = vld [vmem:[%s4952_s1 + $0x40c] sm:$0xf]  ;;  %v2544_v20 = vld [vmem:[%s4952_s1 + $0x418] sm:$0xf0]  ;;  %v2947_v3 = vor.u32 %v3273_v61, %v2944_v4 }
  0xeb   :  { %1970 = vmatpush.bf16.msrb.mxu1 %v2771_v52  ;;  %1983 = vmatpush.bf16.msrb.mxu2 %v2899_v53  ;;  %v2835_v52 = vor.u32 %v3245_v40, %v2832_v43  ;;  %v3177_v53 = vld [vmem:[%s4952_s1 + $0x42c] sm:$0xf]  ;;  %v1720_v56 = vpop.f32.mrf.mxu1  ;;  %v2547_v16 = vor.u32 %v3173_v1, %v2544_v20 }
  0xec   :  { %1996 = vmatpush.bf16.msrb.mxu3 %v3027_v57  ;;  %v1744_v45 = vpop.f32.mrf.mxu3  ;;  %v2963_v57 = vor.u32 %v3277_v47, %v2960_v48 }
  0xed   :  { %1958 = vmatpush.bf16.msrb.mxu0 %v2627_v62  ;;  %v277_v62 = vperm.slane %v4436_v22, 1 }
  0xef   :  { %1971 = vmatpush.bf16.msrb.mxu1 %v2755_v63  ;;  %1984 = vmatpush.bf16.msrb.mxu2 %v2883_v0  ;;  %v2563_v63 = vor.u32 %v3177_v53, %v2560_v54  ;;  %v2691_v0 = vor.u32 %v3209_v55, %v2688_v58 }
  0xf0   :  { %1997 = vmatpush.bf16.msrb.mxu3 %v3011_v2  ;;  %v3205_v2 = vld [vmem:[%s4952_s1 + $0x50c] sm:$0xf] }
  0xf1   :  { %1959 = vmatpush.bf16.msrb.mxu0 %v2611_v9  ;;  %v1733_v21 = vpop.f32.mrf.mxu2  ;;  %v2675_v17 = vor.u32 %v3205_v2, %v2672_v5  ;;  %v279_v2 = vperm.slane %v4436_v22, 3 }
  0xf3   :  { %1972 = vmatpush.bf16.msrb.mxu1 %v2739_v11  ;;  %1985 = vmatpush.bf16.msrb.mxu2 %v2867_v12  ;;  %v1706_v11 = vadd.f32 %v4832_v10, %v277_v62  ;;  %v3269_v12 = vld [vmem:[%s4952_s1 + $0x70c] sm:$0xf] }
  0xf4   :  { %1998 = vmatpush.bf16.msrb.mxu3 %v2995_v19  ;;  %v1746_v9 = vpop.f32.mrf.mxu3  ;;  %v2803_v19 = vor.u32 %v3237_v7, %v2800_v8  ;;  %v2931_v23 = vor.u32 %v3269_v12, %v2928_v13 }
  0xf5   :  { %1960 = vmatpush.bf16.msrb.mxu0 %v2595_v29  ;;  %v1719_v25 = vadd.f32 %v4843_v18, %v1706_v11 }
  0xf7   :  { %1973 = vmatpush.bf16.msrb.mxu1 %v2723_v30  ;;  %1986 = vmatpush.bf16.msrb.mxu2 %v2851_v31  ;;  %v1732_v10 = vadd.f32 %v1731_v35, %v1719_v25  ;;  %v1680_v31 = vadd.f32 %v4665_v37, %v1667_v28  ;;  %v278_v37 = vperm.slane %v4436_v22, 2 }
  0xf8   :  { %1999 = vmatpush.bf16.msrb.mxu3 %v2979_v36 }
  0xf9   :  { %1961 = vmatpush.bf16.msrb.mxu0 %v2579_v49  ;;  %v1745_v27 = vadd.f32 %v1744_v45, %v1732_v10 }
  0xfb   :  { %1974 = vmatpush.bf16.msrb.mxu1 %v2707_v51  ;;  %1987 = vmatpush.bf16.msrb.mxu2 %v2835_v52 }
  0xfc   :  { %2000 = vmatpush.bf16.msrb.mxu3 %v2963_v57 }
  0xfd   :  { %1962 = vmatpush.bf16.msrb.mxu0 %v2563_v63 }
  0xff   :  { %1975 = vmatpush.bf16.msrb.mxu1 %v2691_v0  ;;  %1988 = vmatpush.bf16.msrb.mxu2 %v2819_v6 }
 0x100   :  { %2001 = vmatpush.bf16.msrb.mxu3 %v2947_v3 }
 0x101   :  { %1963 = vmatpush.bf16.msrb.mxu0 %v2547_v16  ;;  %v1757_v18 = vpop.f32.mrf.mxu0 }
 0x102   :  { %v1758_v29 = vadd.f32 %v1757_v18, %v1745_v27 }
 0x103   :  { %1976 = vmatpush.bf16.msrb.mxu1 %v2675_v17  ;;  %1989 = vmatpush.bf16.msrb.mxu2 %v2803_v19  ;;  %v1770_v30 = vpop.f32.mrf.mxu1 }
 0x104   :  { %2002 = vmatpush.bf16.msrb.mxu3 %v2931_v23  ;;  %1964 = vmatmul.bf16.vlgmr.msrb.gmra.mxu0 %v3778_v41  ;;  %v1771_v32 = vadd.f32 %v1770_v30, %v1758_v29  ;;  %v1693_v41 = vadd.f32 %v4676_v46, %v1680_v31 }
 0x106   :  { %1977 = vmatmul.bf16.vlgmr.msrb.gmra.mxu1 %v3782_v44  ;;  %1990 = vmatmul.bf16.vlgmr.msrb.gmra.mxu2 %v3770_v38  ;;  %v2008_v38 = vmax.f32 %v1693_v41, 0.0 }
 0x107   :  { %2003 = vmatmul.bf16.vlgmr.msrb.gmra.mxu3 %v3780_v42 }
 0x109   :  { %v1783_v33 = vpop.f32.mrf.mxu2  ;;  %v1759_v44 = vpop.f32.mrf.mxu0 }
 0x10a   :  { %v1784_v34 = vadd.f32 %v1783_v33, %v1771_v32 }
 0x10b   :  { %v1772_v35 = vpop.f32.mrf.mxu1 }
 0x10c   :  { %v1796_v15 = vpop.f32.mrf.mxu3 }
 0x10d   :  { %v1797_v14 = vadd.f32 %v1796_v15, %v1784_v34 }
 0x10f   :  { %v2009_v36 = vmax.f32 %v1797_v14, 0.0 }
 0x111   :  { %v2012_v42 = vpack.c.bf16 %v2009_v36, %v2008_v38  ;;  %v1785_v39 = vpop.f32.mrf.mxu2 }
 0x113   :  { %2014 = vst [vmem:[%s4955_s3] sm:$0xff] %v2012_v42 }
 0x114   :  { %v1798_v24 = vpop.f32.mrf.mxu3 }
 0x121   :  { %v1809_v40 = vpop.f32.mrf.mxu0 }
 0x122   :  { %v1810_v43 = vadd.f32 %v1809_v40, %v278_v37 }
 0x123   :  { %v1822_v45 = vpop.f32.mrf.mxu1 }
 0x124   :  { %v1823_v46 = vadd.f32 %v1822_v45, %v1810_v43 }
 0x129   :  { %v1835_v47 = vpop.f32.mrf.mxu2  ;;  %v1811_v51 = vpop.f32.mrf.mxu0 }
 0x12a   :  { %v1836_v48 = vadd.f32 %v1835_v47, %v1823_v46 }
 0x12b   :  { %v1824_v52 = vpop.f32.mrf.mxu1 }
 0x12c   :  { %v1848_v49 = vpop.f32.mrf.mxu3 }
 0x12d   :  { %v1849_v50 = vadd.f32 %v1848_v49, %v1836_v48 }
 0x131   :  { %v1837_v53 = vpop.f32.mrf.mxu2 }
 0x134   :  { %v1850_v54 = vpop.f32.mrf.mxu3 }
 0x141   :  { %v1861_v55 = vpop.f32.mrf.mxu0 }
 0x142   :  { %v1862_v8 = vadd.f32 %v1861_v55, %v1849_v50 }
 0x143   :  { %v1874_v56 = vpop.f32.mrf.mxu1 }
 0x144   :  { %v1875_v11 = vadd.f32 %v1874_v56, %v1862_v8 }
 0x149   :  { %v1887_v57 = vpop.f32.mrf.mxu2  ;;  %v1863_v59 = vpop.f32.mrf.mxu0 }
 0x14a   :  { %v1888_v19 = vadd.f32 %v1887_v57, %v1875_v11 }
 0x14b   :  { %v1876_v60 = vpop.f32.mrf.mxu1 }
 0x14c   :  { %v1900_v58 = vpop.f32.mrf.mxu3 }
 0x14d   :  { %v1901_v10 = vadd.f32 %v1900_v58, %v1888_v19 }
 0x14f   :  { %v2010_v29 = vmax.f32 %v1901_v10, 0.0 }
 0x151   :  { %v1889_v61 = vpop.f32.mrf.mxu2 }
 0x154   :  { %v1902_v4 = vpop.f32.mrf.mxu3 }
 0x161   :  { %v1913_v62 = vpop.f32.mrf.mxu0 }
 0x162   :  { %v1914_v5 = vadd.f32 %v1913_v62, %v279_v2 }
 0x163   :  { %v1926_v63 = vpop.f32.mrf.mxu1 }
 0x164   :  { %v1927_v7 = vadd.f32 %v1926_v63, %v1914_v5 }
 0x169   :  { %v1939_v0 = vpop.f32.mrf.mxu2  ;;  %v1915_v1 = vpop.f32.mrf.mxu0 }
 0x16a   :  { %v1940_v9 = vadd.f32 %v1939_v0, %v1927_v7 }
 0x16b   :  { %v1928_v20 = vpop.f32.mrf.mxu1 }
 0x16c   :  { %v1952_v6 = vpop.f32.mrf.mxu3 }
 0x16d   :  { %v1953_v12 = vadd.f32 %v1952_v6, %v1940_v9 }
 0x171   :  { %v1941_v21 = vpop.f32.mrf.mxu2 }
 0x174   :  { %v1954_v3 = vpop.f32.mrf.mxu3 }
 0x181   :  { %v1965_v13 = vpop.f32.mrf.mxu0 }
 0x182   :  { %v1966_v17 = vadd.f32 %v1965_v13, %v1953_v12 }
 0x183   :  { %v1978_v16 = vpop.f32.mrf.mxu1 }
 0x184   :  { %v1979_v23 = vadd.f32 %v1978_v16, %v1966_v17 }
 0x189   :  { %v1991_v25 = vpop.f32.mrf.mxu2  ;;  %v1967_v28 = vpop.f32.mrf.mxu0 }
 0x18a   :  { %v1992_v26 = vadd.f32 %v1991_v25, %v1979_v23  ;;  %v2004_v27 = vpop.f32.mrf.mxu3 }
 0x18b   :  { %v1980_v18 = vpop.f32.mrf.mxu1 }
 0x18c   :  { %v2005_v22 = vadd.f32 %v2004_v27, %v1992_v26 }
 0x18e   :  { %v2011_v30 = vmax.f32 %v2005_v22, 0.0 }
 0x190   :  { %v2013_v31 = vpack.c.bf16 %v2011_v30, %v2010_v29 }
 0x191   :  { %v1993_v32 = vpop.f32.mrf.mxu2 }
 0x192   :  { %2015 = vst [vmem:[%s4955_s3 + $0x8] sm:$0xff] %v2013_v31  ;;  %v2006_v33 = vpop.f32.mrf.mxu3 }

</bundles_post_ra>
